<compile_context>
chip_gen: v6e
topology: v6e:2x2x1
jax: 0.10.0
libtpu: 0.0.40
codegen_flags: <defaults>
</compile_context>

<pallas_src>
import functools
import math

import jax
import jax.numpy as jnp
import numpy as np
from jax.experimental import pallas as pl
from jax.experimental.pallas import tpu as pltpu


# Deep-tower matmul operand dtype.  bf16 runs at full MXU rate on v6e/v7x (f32
# is decomposed) and halves the resident fc-weight bytes; accumulation stays
# f32.  Set back to jnp.float32 for bit-tight accuracy vs the f32 reference.
DEEP_MATMUL_DTYPE = jnp.bfloat16


def _round_up(x, m):
    return ((x + m - 1) // m) * m


# ------------------------------ Pallas kernel -------------------------------

def make_dcn_fused_kernel(cross_depth, n_fc, deep_dtype):
    """Fused cross tower + deep tower + (scrambled) final-projection partials."""

    def kernel(*refs):
        x0_ref, wfc_ref, wfh_ref, split_ref, wc_ref = refs[:5]
        fc_w = refs[5:5 + n_fc]          # resident fc weight matrices (deep_dtype)
        sb_ref = refs[5 + n_fc]          # SMEM (cross_depth + n_fc,) scalar biases
        p_ref = refs[6 + n_fc]           # (TB, 4) output partial sums

        x0 = x0_ref[...]                 # (TB, D) float32

        # ---- cross tower: x_{l+1} = x0 * (x_l @ w_l) + b_l + x_l ----
        xl = x0
        for i in range(cross_depth):
            w = wc_ref[i:i + 1, :]                            # (1, D)
            t = jnp.sum(xl * w, axis=-1, keepdims=True)       # (TB, 1) == x_l @ w_l
            xl = x0 * t + sb_ref[i] + xl

        # ---- deep tower: h = relu(h @ W + b), bf16 MXU / f32 accumulate ----
        h = x0
        for j in range(n_fc):
            h = jnp.dot(h.astype(deep_dtype), fc_w[j][...],
                        preferred_element_type=jnp.float32)
            h = jnp.maximum(h + sb_ref[cross_depth + j], 0.0)

        # ---- fused final projection (flatten-concat-reshape semantics) ----
        # Each source row contributes to at most two consecutive logit rows.
        # wfc/wfh hold wf[(flat_index) % L] for this row pattern (resident, it
        # repeats with the tile period); split_* holds how many leading lane
        # elements belong to the first logit row.
        split_c = split_ref[:, 0:1]                           # (TB, 1) int32
        split_h = split_ref[:, 1:2]
        prod_c = xl * wfc_ref[...]                            # (TB, D)
        prod_h = h * wfh_ref[...]                             # (TB, F)
        lane_c = jax.lax.broadcasted_iota(jnp.int32, prod_c.shape, 1)
        lane_h = jax.lax.broadcasted_iota(jnp.int32, prod_h.shape, 1)
        pc_tot = jnp.sum(prod_c, axis=-1, keepdims=True)
        ph_tot = jnp.sum(prod_h, axis=-1, keepdims=True)
        pc0 = jnp.sum(jnp.where(lane_c < split_c, prod_c, 0.0),
                      axis=-1, keepdims=True)
        ph0 = jnp.sum(jnp.where(lane_h < split_h, prod_h, 0.0),
                      axis=-1, keepdims=True)

        # single lane-packed store instead of four 1-lane masked stores
        p_ref[...] = jnp.concatenate(
            [pc0, pc_tot - pc0, ph0, ph_tot - ph0], axis=1)

    return kernel


# --------------------------------- wrapper ----------------------------------

@functools.partial(jax.jit, static_argnums=(0,))
def dcnet_forward(batch_size, index, feats, values, params):
    dt_bytes = jnp.dtype(DEEP_MATMUL_DTYPE).itemsize

    # ---- XLA glue: embedding gathers + first-order term ----
    emb = params["embedding"][feats]                       # (N, E)
    w_feat = params["weights"][feats]                      # (N, 1)
    srcs = w_feat.reshape(-1) * values.reshape(-1)
    # TODO(synk): torch.scatter_add_ over an arbitrary `index` stays in XLA;
    # data-dependent scatter has no clean rectangular-BlockSpec equivalent.
    first = jnp.zeros((batch_size,), jnp.float32).at[index].add(srcs)
    first = first + params["bias"][0, 0]

    # TODO(synk): the embedding-gather result round-trips through HBM before
    # the kernel; fusing it (scalar-prefetched feats + resident table) would
    # save one (B, D) read/write but is left in XLA glue for simplicity.
    x0 = emb.reshape(batch_size, -1).astype(jnp.float32)   # (B, D)
    B, D = x0.shape
    cross_depth = params["wc"].shape[0]
    fc_ws = [w.astype(DEEP_MATMUL_DTYPE) for w in params["fc_ws"]]
    n_fc = len(fc_ws)
    F = fc_ws[-1].shape[1]
    L = D + F

    # ---- batch tiling ----
    # The scrambled final-projection rows / split points repeat in the batch
    # index with periods period_c / period_h; making TB a multiple of
    # lcm(8, period_c, period_h) lets a single TB-row block serve every grid
    # step as a RESIDENT VMEM table (no per-row streaming of wf_c/wf_h/splits).
    period_c = L // math.gcd(D, L)
    period_h = L // math.gcd(F, L)
    unit = math.lcm(8, period_c, period_h)

    # Size TB from a conservative VMEM byte budget (v5e/v6e/v7x scoped
    # defaults: 16/32/32 MiB; v7x physical is only 64 MiB).  Cap ~2K rows:
    # step overhead is already fully amortized there.
    weight_bytes = (4 * int(cross_depth) * D
                    + dt_bytes * sum(int(w.shape[0]) * int(w.shape[1]) for w in fc_ws)
                    + 4 * (int(cross_depth) + n_fc))
    per_row_bytes = 2 * 4 * (D + 4) + 2 * 4 * (D + F + 2)   # streamed + resident, x2 buffers
    vmem_budget = 8 * 1024 * 1024
    tb_cap = max(unit, ((vmem_budget - weight_bytes) // per_row_bytes) // unit * unit)
    tb_cap = min(tb_cap, _round_up(2048, unit))
    TB = min(tb_cap, _round_up(B, unit))
    B_pad = _round_up(B, TB)
    # keep the grid even when it has >1 step so ("parallel",) uses both v7x TCs
    if B_pad // TB > 1 and (B_pad // TB) % 2 == 1 and TB % (2 * unit) == 0:
        TB //= 2
    grid_n = B_pad // TB
    assert TB % period_c == 0 and TB % period_h == 0 and TB % 8 == 0

    if B_pad != B:
        x0 = jnp.pad(x0, ((0, B_pad - B), (0, 0)))

    # ---- resident scrambled final-projection block (TB rows, read once) ----
    wf = params["wf"].reshape(-1)                          # (L,)
    r_idx = jnp.arange(TB, dtype=jnp.int32)[:, None]
    d_idx = jnp.arange(D, dtype=jnp.int32)[None, :]
    f_idx = jnp.arange(F, dtype=jnp.int32)[None, :]
    wf_c = wf[(r_idx * D + d_idx) % L]                     # (TB, D)
    wf_h = wf[(B * D + r_idx * F + f_idx) % L]             # (TB, F)
    start_c = r_idx * D
    start_h = B * D + r_idx * F
    split_c = (start_c // L + 1) * L - start_c
    split_h = (start_h // L + 1) * L - start_h
    splits = jnp.concatenate([split_c, split_h], axis=1).astype(jnp.int32)

    # ---- scalar biases packed into a single SMEM vector ----
    sbias = jnp.concatenate(
        [params["bc"].reshape(-1).astype(jnp.float32)]
        + [b.reshape(-1).astype(jnp.float32) for b in params["fc_bs"]])

    grid = (grid_n,)
    in_specs = ([
        pl.BlockSpec((TB, D), lambda i: (i, 0)),               # x0 tile (streamed)
        pl.BlockSpec((TB, D), lambda i: (0, 0)),               # wf_c (resident)
        pl.BlockSpec((TB, F), lambda i: (0, 0)),               # wf_h (resident)
        pl.BlockSpec((TB, 2), lambda i: (0, 0)),               # splits (resident)
        pl.BlockSpec(params["wc"].shape, lambda i: (0, 0)),    # cross W (resident)
    ] + [pl.BlockSpec(w.shape, lambda i: (0, 0)) for w in fc_ws]
      + [pl.BlockSpec(memory_space=pltpu.MemorySpace.SMEM)])   # packed biases
    out_spec = pl.BlockSpec((TB, 4), lambda i: (i, 0))

    flops = (4 * B_pad * D * int(cross_depth)
             + 2 * B_pad * sum(int(w.shape[0]) * int(w.shape[1]) for w in fc_ws)
             + 4 * B_pad * L)
    bytes_accessed = (4 * B_pad * D                            # x0 read
                      + 4 * B_pad * 4                          # partials write
                      + 4 * TB * (D + F + 2)                   # resident scrambled block
                      + 4 * int(cross_depth) * D
                      + dt_bytes * sum(int(w.shape[0]) * int(w.shape[1]) for w in fc_ws)
                      + 4 * int(sbias.shape[0]))
    cost = pl.CostEstimate(flops=int(flops), transcendentals=0,
                           bytes_accessed=int(bytes_accessed))

    partials = pl.pallas_call(
        make_dcn_fused_kernel(int(cross_depth), n_fc, DEEP_MATMUL_DTYPE),
        grid=grid,
        in_specs=in_specs,
        out_specs=out_spec,
        out_shape=jax.ShapeDtypeStruct((B_pad, 4), jnp.float32),
        compiler_params=pltpu.CompilerParams(
            dimension_semantics=("parallel",),
            vmem_limit_bytes=32 * 1024 * 1024),
        cost_estimate=cost,
    )(x0, wf_c, wf_h, splits, params["wc"], *fc_ws, sbias)

    # ---- O(B) epilogue: route the 4 per-row partial sums to their (scrambled)
    # logit rows, add first-order term + final bias, sigmoid.
    # TODO(synk): this tiny cross-row scatter + sigmoid stays in XLA because the
    # PyTorch flatten-concat-reshape couples adjacent batch rows across tiles.
    p = partials[:B]
    b_all = jnp.arange(B, dtype=jnp.int32)
    r0_c = (b_all * D) // L
    r1_c = jnp.minimum(r0_c + 1, B - 1)          # safe: partial is 0 when clamped
    r0_h = (B * D + b_all * F) // L
    r1_h = jnp.minimum(r0_h + 1, B - 1)
    rows = jnp.concatenate([r0_c, r1_c, r0_h, r1_h])
    vals = jnp.concatenate([p[:, 0], p[:, 1], p[:, 2], p[:, 3]])
    logits = jnp.zeros((B,), jnp.float32).at[rows].add(vals)
    return jax.nn.sigmoid(logits + first + params["bf"][0, 0])


# ---------------------------- pure-JAX reference -----------------------------

def reference_forward(batch_size, index, feats, values, params):
    emb = params["embedding"][feats]
    w_feat = params["weights"][feats]
    srcs = w_feat.reshape(-1) * values.reshape(-1)
    first = jnp.zeros((batch_size,), jnp.float32).at[index].add(srcs) + params["bias"][0, 0]

    x0 = emb.reshape(batch_size, -1)
    xl = x0
    for i in range(params["wc"].shape[0]):
        t = xl @ params["wc"][i].reshape(-1, 1)
        xl = x0 * t + params["bc"][i, 0] + xl
    h = x0
    for W, b in zip(params["fc_ws"], params["fc_bs"]):
        h = jax.nn.relu(h @ W + b[0, 0])
    flat = jnp.concatenate([xl.reshape(-1), h.reshape(-1)])
    z = flat.reshape(-1, params["wf"].shape[0])
    out = (z @ params["wf"]).reshape(-1) + first + params["bf"].reshape(-1)
    return jax.nn.sigmoid(out)


# -------------------------- parameter initialization -------------------------

def xavier_uniform(key, shape):
    fan_in, fan_out = shape[0], shape[1]
    limit = float(np.sqrt(6.0 / (fan_in + fan_out)))
    return jax.random.uniform(key, shape, jnp.float32, -limit, limit)


def kaiming_uniform(key, shape):
    fan_in = shape[0]
    limit = float(np.sqrt(6.0 / fan_in))
    return jax.random.uniform(key, shape, jnp.float32, -limit, limit)


def init_params(key, n_fields, embedding_dim, cross_depth, fc_dims, fake_input_dim=10):
    D = n_fields * embedding_dim
    keys = jax.random.split(key, 2 + cross_depth + len(fc_dims) + 1)
    k_idx = 0

    params = {}
    params["bias"] = jnp.zeros((1, 1), jnp.float32)
    params["weights"] = xavier_uniform(keys[k_idx], (fake_input_dim, 1)); k_idx += 1
    params["embedding"] = xavier_uniform(keys[k_idx], (fake_input_dim, embedding_dim)); k_idx += 1

    wc = []
    for _ in range(cross_depth):
        wx = xavier_uniform(keys[k_idx], (n_fields, embedding_dim)); k_idx += 1
        wc.append(wx.reshape(-1))                    # matches torch .view(-1, 1)
    params["wc"] = jnp.stack(wc, axis=0)             # (cross_depth, D)
    params["bc"] = jnp.zeros((cross_depth, 1), jnp.float32)

    fc_ws, fc_bs = [], []
    dim = D
    for fc_dim in fc_dims:
        fc_ws.append(kaiming_uniform(keys[k_idx], (dim, fc_dim))); k_idx += 1
        fc_bs.append(jnp.zeros((1, 1), jnp.float32))
        dim = fc_dim
    params["fc_ws"] = tuple(fc_ws)
    params["fc_bs"] = tuple(fc_bs)

    params["wf"] = xavier_uniform(keys[k_idx], (dim + D, 1)); k_idx += 1
    params["bf"] = jnp.zeros((1, 1), jnp.float32)
    return params


# ----------------------------------- main ------------------------------------

if __name__ == "__main__":
    batch_size = 256
    n_fields = 4
    embedding_dim = 8
    cross_depth = 2
    fc_dims = [32, 16]
    fake_input_dim = 10

    key = jax.random.PRNGKey(0)
    k_param, k_feat, k_val = jax.random.split(key, 3)

    params = init_params(k_param, n_fields, embedding_dim, cross_depth, fc_dims,
                         fake_input_dim=fake_input_dim)

    n = batch_size * n_fields
    feats = jax.random.randint(k_feat, (n,), 0, fake_input_dim, dtype=jnp.int32)
    values = jax.random.uniform(k_val, (n,), jnp.float32)
    # one-hot encoding: each sample owns exactly n_fields consecutive features
    index = jnp.repeat(jnp.arange(batch_size, dtype=jnp.int32), n_fields)

    out = dcnet_forward(batch_size, index, feats, values, params)
    out = jax.block_until_ready(out)

    ref = reference_forward(batch_size, index, feats, values, params)
    assert out.shape == (batch_size,)
    assert np.all(np.isfinite(np.asarray(out)))
    if DEEP_MATMUL_DTYPE == jnp.float32:
        rtol = atol = 1e-5
    else:
        # bf16 deep-tower matmuls (f32 accumulate); sigmoid-bounded outputs.
        rtol = atol = 1e-2
    np.testing.assert_allclose(np.asarray(out), np.asarray(ref), rtol=rtol, atol=atol)

    print("KERNEL_OK")
</pallas_src>

<mosaic_0001>
module attributes {stable_mosaic.version = 11 : i64} {
  func.func private @main(%arg0: i32) attributes {dimension_semantics = [#tpu.dimension_semantics<core_parallel>], iteration_bounds = array<i64: 2>, tpu.core_type = #tpu.core_type<sc_scalar_subcore>, window_params = []} {
    return
  }
}

module attributes {stable_mosaic.version = 11 : i64} {
  func.func private @main(%arg0: i32) attributes {dimension_semantics = [#tpu.dimension_semantics<core_parallel>], iteration_bounds = array<i64: 2>, tpu.core_type = #tpu.core_type<sc_scalar_subcore>, window_params = []} {
    return
  }
}

module attributes {stable_mosaic.version = 11 : i64} {
  func.func @kernel(%arg0: i32, %arg1: memref<264x32xf32, #tpu.memory_space<vmem>>, %arg2: memref<264x32xf32, #tpu.memory_space<vmem>>, %arg3: memref<264x16xf32, #tpu.memory_space<vmem>>, %arg4: memref<264x2xi32, #tpu.memory_space<vmem>>, %arg5: memref<2x32xf32, #tpu.memory_space<vmem>>, %arg6: memref<32x32xbf16, #tpu.memory_space<vmem>>, %arg7: memref<32x16xbf16, #tpu.memory_space<vmem>>, %arg8: memref<4xf32, #tpu.memory_space<smem>>, %arg9: memref<264x4xf32, #tpu.memory_space<vmem>>) attributes {dimension_semantics = [#tpu.dimension_semantics<parallel>], iteration_bounds = array<i64: 1>, scalar_prefetch = 0 : i64, scratch_operands = 0 : i64, tpu.core_type = #tpu.core_type<tc>, window_params = [{transform_indices = @transform_0, window_bounds = array<i64: 264, 32>}, {pipeline_mode = #tpu.pipeline_mode<synchronous>, transform_indices = @transform_1, window_bounds = array<i64: 264, 32>}, {pipeline_mode = #tpu.pipeline_mode<synchronous>, transform_indices = @transform_2, window_bounds = array<i64: 264, 16>}, {pipeline_mode = #tpu.pipeline_mode<synchronous>, transform_indices = @transform_3, window_bounds = array<i64: 264, 2>}, {pipeline_mode = #tpu.pipeline_mode<synchronous>, transform_indices = @transform_4, window_bounds = array<i64: 2, 32>}, {pipeline_mode = #tpu.pipeline_mode<synchronous>, transform_indices = @transform_5, window_bounds = array<i64: 32, 32>}, {pipeline_mode = #tpu.pipeline_mode<synchronous>, transform_indices = @transform_6, window_bounds = array<i64: 32, 16>}, {transform_indices = @transform_7, window_bounds = array<i64: 4>}, {transform_indices = @transform_8, window_bounds = array<i64: 264, 4>}]} {
    %c0 = arith.constant 0 : index
    %c0_0 = arith.constant 0 : index
    %0 = vector.load %arg1[%c0, %c0_0] : memref<264x32xf32, #tpu.memory_space<vmem>>, vector<264x32xf32>
    %c0_1 = arith.constant 0 : index
    %c0_2 = arith.constant 0 : index
    %1 = vector.load %arg5[%c0_1, %c0_2] : memref<2x32xf32, #tpu.memory_space<vmem>>, vector<1x32xf32>
    %2 = vector.broadcast %1 : vector<1x32xf32> to vector<264x32xf32>
    %3 = arith.mulf %0, %2 : vector<264x32xf32>
    %cst = arith.constant dense<0.000000e+00> : vector<264xf32>
    %4 = vector.multi_reduction <add>, %3, %cst [1] : vector<264x32xf32> to vector<264xf32>
    %5 = vector.shape_cast %4 : vector<264xf32> to vector<264x1xf32>
    %6 = vector.broadcast %5 : vector<264x1xf32> to vector<264x32xf32>
    %7 = arith.mulf %0, %6 : vector<264x32xf32>
    %c0_3 = arith.constant 0 : index
    %8 = memref.load %arg8[%c0_3] : memref<4xf32, #tpu.memory_space<smem>>
    %9 = vector.broadcast %8 : f32 to vector<264x32xf32>
    %10 = arith.addf %7, %9 : vector<264x32xf32>
    %11 = arith.addf %10, %0 : vector<264x32xf32>
    %c1 = arith.constant 1 : index
    %c0_4 = arith.constant 0 : index
    %12 = vector.load %arg5[%c1, %c0_4] : memref<2x32xf32, #tpu.memory_space<vmem>>, vector<1x32xf32>
    %13 = vector.broadcast %12 : vector<1x32xf32> to vector<264x32xf32>
    %14 = arith.mulf %11, %13 : vector<264x32xf32>
    %cst_5 = arith.constant dense<0.000000e+00> : vector<264xf32>
    %15 = vector.multi_reduction <add>, %14, %cst_5 [1] : vector<264x32xf32> to vector<264xf32>
    %16 = vector.shape_cast %15 : vector<264xf32> to vector<264x1xf32>
    %17 = vector.broadcast %16 : vector<264x1xf32> to vector<264x32xf32>
    %18 = arith.mulf %0, %17 : vector<264x32xf32>
    %c1_6 = arith.constant 1 : index
    %19 = memref.load %arg8[%c1_6] : memref<4xf32, #tpu.memory_space<smem>>
    %20 = vector.broadcast %19 : f32 to vector<264x32xf32>
    %21 = arith.addf %18, %20 : vector<264x32xf32>
    %22 = arith.addf %21, %11 : vector<264x32xf32>
    %23 = arith.truncf %0 : vector<264x32xf32> to vector<264x32xbf16>
    %c0_7 = arith.constant 0 : index
    %c0_8 = arith.constant 0 : index
    %24 = vector.load %arg6[%c0_7, %c0_8] : memref<32x32xbf16, #tpu.memory_space<vmem>>, vector<32x32xbf16>
    %cst_9 = arith.constant dense<0.000000e+00> : vector<264x32xf32>
    %25 = tpu.matmul %23, %24, %cst_9 {dimension_numbers = #tpu.dot_dimension_numbers<[1], [0], [0], [1], [0, 0, 1, 1], [], []>} : vector<264x32xbf16>, vector<32x32xbf16>, vector<264x32xf32> -> vector<264x32xf32>
    %c2 = arith.constant 2 : index
    %26 = memref.load %arg8[%c2] : memref<4xf32, #tpu.memory_space<smem>>
    %27 = vector.broadcast %26 : f32 to vector<264x32xf32>
    %28 = arith.addf %25, %27 : vector<264x32xf32>
    %cst_10 = arith.constant 0.000000e+00 : f32
    %29 = vector.broadcast %cst_10 : f32 to vector<264x32xf32>
    %30 = arith.maximumf %28, %29 : vector<264x32xf32>
    %31 = arith.truncf %30 : vector<264x32xf32> to vector<264x32xbf16>
    %c0_11 = arith.constant 0 : index
    %c0_12 = arith.constant 0 : index
    %32 = vector.load %arg7[%c0_11, %c0_12] : memref<32x16xbf16, #tpu.memory_space<vmem>>, vector<32x16xbf16>
    %cst_13 = arith.constant dense<0.000000e+00> : vector<264x16xf32>
    %33 = tpu.matmul %31, %32, %cst_13 {dimension_numbers = #tpu.dot_dimension_numbers<[1], [0], [0], [1], [0, 0, 1, 1], [], []>} : vector<264x32xbf16>, vector<32x16xbf16>, vector<264x16xf32> -> vector<264x16xf32>
    %c3 = arith.constant 3 : index
    %34 = memref.load %arg8[%c3] : memref<4xf32, #tpu.memory_space<smem>>
    %35 = vector.broadcast %34 : f32 to vector<264x16xf32>
    %36 = arith.addf %33, %35 : vector<264x16xf32>
    %cst_14 = arith.constant 0.000000e+00 : f32
    %37 = vector.broadcast %cst_14 : f32 to vector<264x16xf32>
    %38 = arith.maximumf %36, %37 : vector<264x16xf32>
    %c0_15 = arith.constant 0 : index
    %c0_16 = arith.constant 0 : index
    %39 = vector.load %arg4[%c0_15, %c0_16] : memref<264x2xi32, #tpu.memory_space<vmem>>, vector<264x1xi32>
    %c0_17 = arith.constant 0 : index
    %c1_18 = arith.constant 1 : index
    %40 = vector.load %arg4[%c0_17, %c1_18] : memref<264x2xi32, #tpu.memory_space<vmem>>, vector<264x1xi32>
    %c0_19 = arith.constant 0 : index
    %c0_20 = arith.constant 0 : index
    %41 = vector.load %arg2[%c0_19, %c0_20] : memref<264x32xf32, #tpu.memory_space<vmem>>, vector<264x32xf32>
    %42 = arith.mulf %22, %41 : vector<264x32xf32>
    %c0_21 = arith.constant 0 : index
    %c0_22 = arith.constant 0 : index
    %43 = vector.load %arg3[%c0_21, %c0_22] : memref<264x16xf32, #tpu.memory_space<vmem>>, vector<264x16xf32>
    %44 = arith.mulf %38, %43 : vector<264x16xf32>
    %45 = tpu.iota {dimensions = array<i32: 1>} : vector<264x32xi32>
    %46 = tpu.iota {dimensions = array<i32: 1>} : vector<264x16xi32>
    %cst_23 = arith.constant dense<0.000000e+00> : vector<264xf32>
    %47 = vector.multi_reduction <add>, %42, %cst_23 [1] : vector<264x32xf32> to vector<264xf32>
    %48 = vector.shape_cast %47 : vector<264xf32> to vector<264x1xf32>
    %cst_24 = arith.constant dense<0.000000e+00> : vector<264xf32>
    %49 = vector.multi_reduction <add>, %44, %cst_24 [1] : vector<264x16xf32> to vector<264xf32>
    %50 = vector.shape_cast %49 : vector<264xf32> to vector<264x1xf32>
    %51 = vector.broadcast %39 : vector<264x1xi32> to vector<264x32xi32>
    %52 = arith.cmpi slt, %45, %51 : vector<264x32xi32>
    %cst_25 = arith.constant 0.000000e+00 : f32
    %53 = vector.broadcast %cst_25 : f32 to vector<264x32xf32>
    %54 = arith.select %52, %42, %53 : vector<264x32xi1>, vector<264x32xf32>
    %cst_26 = arith.constant dense<0.000000e+00> : vector<264xf32>
    %55 = vector.multi_reduction <add>, %54, %cst_26 [1] : vector<264x32xf32> to vector<264xf32>
    %56 = vector.shape_cast %55 : vector<264xf32> to vector<264x1xf32>
    %57 = vector.broadcast %40 : vector<264x1xi32> to vector<264x16xi32>
    %58 = arith.cmpi slt, %46, %57 : vector<264x16xi32>
    %cst_27 = arith.constant 0.000000e+00 : f32
    %59 = vector.broadcast %cst_27 : f32 to vector<264x16xf32>
    %60 = arith.select %58, %44, %59 : vector<264x16xi1>, vector<264x16xf32>
    %cst_28 = arith.constant dense<0.000000e+00> : vector<264xf32>
    %61 = vector.multi_reduction <add>, %60, %cst_28 [1] : vector<264x16xf32> to vector<264xf32>
    %62 = vector.shape_cast %61 : vector<264xf32> to vector<264x1xf32>
    %63 = arith.subf %48, %56 : vector<264x1xf32>
    %64 = arith.subf %50, %62 : vector<264x1xf32>
    %65 = tpu.concatenate %56, %63, %62, %64 in 1 : vector<264x1xf32>, vector<264x1xf32>, vector<264x1xf32>, vector<264x1xf32> -> vector<264x4xf32>
    %c0_29 = arith.constant 0 : index
    %c0_30 = arith.constant 0 : index
    %66 = vector.load %arg9[%c0_29, %c0_30] : memref<264x4xf32, #tpu.memory_space<vmem>>, vector<264x4xf32>
    tpu.vector_store %arg9[%c0_29, %c0_30], %65 {strides = array<i32>} : memref<264x4xf32, #tpu.memory_space<vmem>>, vector<264x4xf32>,
    return
  }
  func.func @transform_0(%arg0: i32) -> (i32, i32) {
    %c0_i32 = arith.constant 0 : i32
    %c0_i32_0 = arith.constant 0 : i32
    return %arg0, %c0_i32 : i32, i32
  }
  func.func @transform_1(%arg0: i32) -> (i32, i32) {
    %c0_i32 = arith.constant 0 : i32
    %c0_i32_0 = arith.constant 0 : i32
    %c0_i32_1 = arith.constant 0 : i32
    return %c0_i32, %c0_i32_0 : i32, i32
  }
  func.func @transform_2(%arg0: i32) -> (i32, i32) {
    %c0_i32 = arith.constant 0 : i32
    %c0_i32_0 = arith.constant 0 : i32
    %c0_i32_1 = arith.constant 0 : i32
    return %c0_i32, %c0_i32_0 : i32, i32
  }
  func.func @transform_3(%arg0: i32) -> (i32, i32) {
    %c0_i32 = arith.constant 0 : i32
    %c0_i32_0 = arith.constant 0 : i32
    %c0_i32_1 = arith.constant 0 : i32
    return %c0_i32, %c0_i32_0 : i32, i32
  }
  func.func @transform_4(%arg0: i32) -> (i32, i32) {
    %c0_i32 = arith.constant 0 : i32
    %c0_i32_0 = arith.constant 0 : i32
    %c0_i32_1 = arith.constant 0 : i32
    return %c0_i32, %c0_i32_0 : i32, i32
  }
  func.func @transform_5(%arg0: i32) -> (i32, i32) {
    %c0_i32 = arith.constant 0 : i32
    %c0_i32_0 = arith.constant 0 : i32
    %c0_i32_1 = arith.constant 0 : i32
    return %c0_i32, %c0_i32_0 : i32, i32
  }
  func.func @transform_6(%arg0: i32) -> (i32, i32) {
    %c0_i32 = arith.constant 0 : i32
    %c0_i32_0 = arith.constant 0 : i32
    %c0_i32_1 = arith.constant 0 : i32
    return %c0_i32, %c0_i32_0 : i32, i32
  }
  func.func @transform_7(%arg0: i32) -> i32 {
    %c0_i32 = arith.constant 0 : i32
    %c0_i32_0 = arith.constant 0 : i32
    return %c0_i32 : i32
  }
  func.func @transform_8(%arg0: i32) -> (i32, i32) {
    %c0_i32 = arith.constant 0 : i32
    %c0_i32_0 = arith.constant 0 : i32
    return %arg0, %c0_i32 : i32, i32
  }
}

</mosaic_0001>

<bundles_post_ra>
// kernel: dcnet_forward.1
= control target key start
LH: loop header
LB: loop body
LE: loop exit
PB: predicated region body
PF: predicated region fallthrough
CT: control target
= control target key end

     0   :  { %13 = vsyncpa [#allocation3], 0  ;;  %s5212_s0 = inlined_call_operand.vmem [shape: f32[264,32], index: 0, kind: input, shape index: {}]   ;;  %s5213_s1 = inlined_call_operand.vmem [shape: f32[264,32], index: 1, kind: input, shape index: {}]   ;;  %s5214_s2 = inlined_call_operand.vmem [shape: f32[264,16], index: 2, kind: input, shape index: {}]   ;;  %s5215_s3 = inlined_call_operand.vmem [shape: s32[264,2], index: 3, kind: input, shape index: {}]   ;;  %s5216_s4 = inlined_call_operand.vmem [shape: f32[2,32], index: 4, kind: input, shape index: {}]   ;;  %s5217_s5 = inlined_call_operand.vmem [shape: bf16[32,32], index: 5, kind: input, shape index: {}]   ;;  %s5218_s6 = inlined_call_operand.vmem [shape: bf16[32,16], index: 6, kind: input, shape index: {}]   ;;  %s5219_s7 = inlined_call_operand.vmem [shape: f32[4], index: 7, kind: input, shape index: {}]   ;;  %s5220_s8 = inlined_call_operand.vmem [shape: f32[264,4], index: 8, kind: output, shape index: {}]  }
   0x1   :  { %s34_s29 = sshll.u32 %s5219_s7, 4  ;;  %s35_s29 = int_to_ptr.vmem [resolvable:$true] %s34_s29 }
   0x2   :  { %s2532_s30 = scalar_lea.vmem %s35_s29, 16  ;;  %p2537_p1 = scmp.lt.s32.totalorder %s35_s29, %s35_s29 }
   0x3   :  { %p2533_p0 = scmp.ne.s32.totalorder %s35_s29, %s2532_s30  ;;  %p2538_p2 = scmp.lt.s32.totalorder %s2532_s30, %s2532_s30 }
   0x5   :  { %p2539_p3 = por %p2538_p2, %p2537_p1 }
   0x7   :  { %p2540_p4 = pnand %p2539_p3, %p2533_p0 }
   0x9   :  { %2543 = shalt.err (!%p2540_p4)
}
   0xa   :  { %s2546_s9 = smov [#allocation2]  }
   0xb   :  { %37 = dma.vmem_to_smem %s35_s29, 16, %s2546_s9, [#allocation3]  }
   0xc   :  { %2544 = dma.done.wait [#allocation3], 16  }
   0xd   :  { %2545 = vsyncadd [#allocation3], 4294967280 }
   0xe   :  { %41 = sfence }
   0xf   :  { %v2602_v0 = vld [vmem:[%s5212_s0] sm:$0xff]  ;;  %vm114_vm0 = vcmask 261120   ;;  %v2612_v2 = vld [vmem:[%s5212_s0 + $0x10] sm:$0xff]  ;;  %v2621_v5 = vld [vmem:[%s5212_s0 + $0x8] sm:$0xff]  ;;  %v5221_v7 = vmov 0.0   ;;  %vm2548_vm1 = vmmov 0  }
  0x10   :  { %v2607_v1 = vld [vmem:[%s5216_s4] ss:$0 sm:$0xff]  ;;  %v2626_v6 = vld [vmem:[%s5212_s0 + $0x18] sm:$0xff]  ;;  %2309 = vmatprep.subr.bf16.mxu0 %v5221_v7  ;;  %2381 = vmatprep.subr.bf16.mxu1 %v5221_v7  ;;  %v2642_v11 = vld [vmem:[%s5212_s0 + $0x28] sm:$0xff]  ;;  %v553_v34 = vpack.c.bf16 %v2621_v5, %v2602_v0  ;;  %s247_s11 = sld [smem:[#allocation2]] }
  0x11   :  { %v81_v3 = vmul.f32 %v2607_v1, %v2602_v0  ;;  %v83_v4 = vmul.f32 %v2607_v1, %v2612_v2  ;;  %v82_v8 = vmul.f32 %v2607_v1, %v2621_v5  ;;  %v84_v9 = vmul.f32 %v2607_v1, %v2626_v6  ;;  %v2637_v10 = vld [vmem:[%s5212_s0 + $0x20] sm:$0xff]  ;;  %2313 = vmatprep.mubr.msk.bf16.mxu0 %vm2548_vm1, %v5221_v7  ;;  %v2659_v18 = vld [vmem:[%s5212_s0 + $0x30] sm:$0xff]  ;;  %v2664_v19 = vld [vmem:[%s5212_s0 + $0x38] sm:$0xff]  ;;  %s2230_s25 = sld [smem:[#allocation2 + $0x1]] }
  0x12   :  { %2385 = vmatprep.mubr.msk.bf16.mxu1 %vm2548_vm1, %v5221_v7  ;;  %v85_v16 = vmul.f32 %v2607_v1, %v2637_v10  ;;  %v86_v17 = vmul.f32 %v2607_v1, %v2642_v11  ;;  %v87_v22 = vmul.f32 %v2607_v1, %v2659_v18  ;;  %v88_v23 = vmul.f32 %v2607_v1, %v2664_v19  ;;  %v2675_v24 = vld [vmem:[%s5212_s0 + $0x40] sm:$0xff]  ;;  %v2680_v25 = vld [vmem:[%s5212_s0 + $0x48] sm:$0xff]  ;;  %v2694_v31 = vld [vmem:[%s5212_s0 + $0x50] sm:$0xff] }
  0x13   :  { %v115_v12 = vsel %vm114_vm0, %v81_v3, 0.0  ;;  %v121_v13 = vsel %vm114_vm0, %v83_v4, 0.0  ;;  %v118_v14 = vsel %vm114_vm0, %v82_v8, 0.0  ;;  %v124_v15 = vsel %vm114_vm0, %v84_v9, 0.0  ;;  %v2462_v26 = vld [vmem:[%s5217_s5 + $0x8] sm:$0xff]   ;;  %v2463_v32 = vld [vmem:[%s5217_s5] sm:$0xff]  }
  0x14   :  { %116 = vadd.xlane.f32.xlu0 %v115_v12  ;;  %122 = vadd.xlane.f32.xlu1 %v121_v13  ;;  %v127_v20 = vsel %vm114_vm0, %v85_v16, 0.0  ;;  %v130_v21 = vsel %vm114_vm0, %v86_v17, 0.0  ;;  %v133_v27 = vsel %vm114_vm0, %v87_v22, 0.0  ;;  %v136_v28 = vsel %vm114_vm0, %v88_v23, 0.0  ;;  %v2702_v33 = vld [vmem:[%s5212_s0 + $0x58] sm:$0xff]  ;;  %v2716_v39 = vld [vmem:[%s5212_s0 + $0x60] sm:$0xff] }
  0x15   :  { %v89_v29 = vmul.f32 %v2607_v1, %v2675_v24  ;;  %v90_v30 = vmul.f32 %v2607_v1, %v2680_v25  ;;  %2310 = vmatpush3.bf16.msra.mxu0 %v2462_v26  ;;  %v91_v37 = vmul.f32 %v2607_v1, %v2694_v31  ;;  %v92_v38 = vmul.f32 %v2607_v1, %v2702_v33  ;;  %v2721_v40 = vld [vmem:[%s5212_s0 + $0x68] sm:$0xff]  ;;  %v2732_v45 = vld [vmem:[%s5212_s0 + $0x70] sm:$0xff]  ;;  %v2738_v46 = vld [vmem:[%s5212_s0 + $0x78] sm:$0xff] }
  0x16   :  { %2311 = vmatprep.subr.bf16.mxu0 %v5221_v7  ;;  %v93_v43 = vmul.f32 %v2607_v1, %v2716_v39  ;;  %v94_v44 = vmul.f32 %v2607_v1, %v2721_v40  ;;  %v95_v47 = vmul.f32 %v2607_v1, %v2732_v45  ;;  %v96_v50 = vmul.f32 %v2607_v1, %v2738_v46  ;;  %v2753_v52 = vld [vmem:[%s5212_s0 + $0x80] sm:$0xff]  ;;  %v2758_v53 = vld [vmem:[%s5212_s0 + $0x88] sm:$0xff]  ;;  %v2769_v58 = vld [vmem:[%s5212_s0 + $0x90] sm:$0xff] }
  0x17   :  { %v139_v35 = vsel %vm114_vm0, %v89_v29, 0.0  ;;  %v142_v36 = vsel %vm114_vm0, %v90_v30, 0.0  ;;  %v145_v41 = vsel %vm114_vm0, %v91_v37, 0.0  ;;  %v148_v42 = vsel %vm114_vm0, %v92_v38, 0.0  ;;  %v2775_v59 = vld [vmem:[%s5212_s0 + $0x98] sm:$0xff]  ;;  %v2790_v4 = vld [vmem:[%s5212_s0 + $0xa0] sm:$0xff] }
  0x18   :  { %119 = vadd.xlane.f32.xlu0 %v118_v14  ;;  %125 = vadd.xlane.f32.xlu1 %v124_v15  ;;  %v151_v48 = vsel %vm114_vm0, %v93_v43, 0.0  ;;  %v154_v49 = vsel %vm114_vm0, %v94_v44, 0.0  ;;  %v554_v51 = vpack.c.bf16 %v2626_v6, %v2612_v2  ;;  %v157_v54 = vsel %vm114_vm0, %v95_v47, 0.0  ;;  %v2795_v8 = vld [vmem:[%s5212_s0 + $0xa8] sm:$0xff]  ;;  %v2806_v15 = vld [vmem:[%s5212_s0 + $0xb0] sm:$0xff]  ;;  %v2812_v16 = vld [vmem:[%s5212_s0 + $0xb8] sm:$0xff] }
  0x19   :  { %2312 = vmatpush3.bf16.msra.mxu0 %v2463_v32  ;;  %v160_v55 = vsel %vm114_vm0, %v96_v50, 0.0  ;;  %v97_v56 = vmul.f32 %v2607_v1, %v2753_v52  ;;  %v98_v57 = vmul.f32 %v2607_v1, %v2758_v53  ;;  %v99_v60 = vmul.f32 %v2607_v1, %v2769_v58  ;;  %v2827_v26 = vld [vmem:[%s5212_s0 + $0xc0] sm:$0xff]  ;;  %v2869_v44 = vld [vmem:[%s5212_s0 + $0xe8] sm:$0xff] }
  0x1a   :  { %v100_v63 = vmul.f32 %v2607_v1, %v2775_v59  ;;  %v555_v3 = vpack.c.bf16 %v2642_v11, %v2637_v10  ;;  %v101_v13 = vmul.f32 %v2607_v1, %v2790_v4  ;;  %v102_v14 = vmul.f32 %v2607_v1, %v2795_v8  ;;  %v2864_v43 = vld [vmem:[%s5212_s0 + $0xe0] sm:$0xff] }
  0x1b   :  { %v163_v61 = vsel %vm114_vm0, %v97_v56, 0.0  ;;  %v166_v62 = vsel %vm114_vm0, %v98_v57, 0.0  ;;  %v169_v9 = vsel %vm114_vm0, %v99_v60, 0.0  ;;  %v103_v17 = vmul.f32 %v2607_v1, %v2806_v15 }
  0x1c   :  { %128 = vadd.xlane.f32.xlu0 %v127_v20  ;;  %131 = vadd.xlane.f32.xlu1 %v130_v21  ;;  %v172_v12 = vsel %vm114_vm0, %v100_v63, 0.0  ;;  %v175_v20 = vsel %vm114_vm0, %v101_v13, 0.0  ;;  %v178_v21 = vsel %vm114_vm0, %v102_v14, 0.0  ;;  %v104_v22 = vmul.f32 %v2607_v1, %v2812_v16 }
  0x1d   :  { %2314 = vmatmul.mubr.msk.bf16.vlgmr.msra.gmra.mxu0 %vm114_vm0, %v553_v34  ;;  %v556_v23 = vpack.c.bf16 %v2664_v19, %v2659_v18  ;;  %v105_v30 = vmul.f32 %v2607_v1, %v2827_v26  ;;  %v2843_v34 = vld [vmem:[%s5212_s0 + $0xd0] sm:$0xff]  ;;  %v110_v50 = vmul.f32 %v2607_v1, %v2869_v44  ;;  %v2549_v13 = vmov 0  }
  0x1e   :  { %2317 = vmatprep.mubr.msk.bf16.mxu0 %vm2548_vm1, %v5221_v7  ;;  %v184_v29 = vsel %vm114_vm0, %v104_v22, 0.0  ;;  %2459 = vset.pattern.permute.xlu1 %v2549_v13  ;;  %v559_v14 = vpack.c.bf16 %v2721_v40, %v2716_v39 }
  0x1f   :  { %v187_v37 = vsel %vm114_vm0, %v105_v30, 0.0  ;;  %v202_v56 = vsel %vm114_vm0, %v110_v50, 0.0  ;;  %2458 = vset.pattern.permute.xlu0 %v2549_v13 }
  0x20   :  { %134 = vadd.xlane.f32.xlu0 %v133_v27  ;;  %137 = vadd.xlane.f32.xlu1 %v136_v28  ;;  %v2832_v27 = vld [vmem:[%s5212_s0 + $0xc8] sm:$0xff]  ;;  %v181_v28 = vsel %vm114_vm0, %v103_v17, 0.0  ;;  %v2465_v17 = vld [vmem:[%s5218_s6] sm:$0xff]  }
  0x21   :  { %v106_v32 = vmul.f32 %v2607_v1, %v2832_v27 }
  0x23   :  { %v190_v38 = vsel %vm114_vm0, %v106_v32, 0.0 }
  0x24   :  { %140 = vadd.xlane.f32.xlu0 %v139_v35  ;;  %143 = vadd.xlane.f32.xlu1 %v142_v36  ;;  %v2849_v35 = vld [vmem:[%s5212_s0 + $0xd8] sm:$0xff]  ;;  %v107_v36 = vmul.f32 %v2607_v1, %v2843_v34 }
  0x25   :  { %2318 = vmatmul.mubr.msk.bf16.gmra.mxu0 %vm114_vm0, %v554_v51  ;;  %v2881_v51 = vld [vmem:[%s5212_s0 + $0xf0] sm:$0xff] }
  0x26   :  { %2321 = vmatprep.mubr.msk.bf16.mxu0 %vm2548_vm1, %v5221_v7  ;;  %v193_v47 = vsel %vm114_vm0, %v107_v36, 0.0  ;;  %v111_v57 = vmul.f32 %v2607_v1, %v2881_v51 }
  0x28   :  { %146 = vadd.xlane.f32.xlu0 %v145_v41  ;;  %149 = vadd.xlane.f32.xlu1 %v148_v42  ;;  %v108_v41 = vmul.f32 %v2607_v1, %v2849_v35  ;;  %v557_v42 = vpack.c.bf16 %v2680_v25, %v2675_v24 }
  0x2c   :  { %152 = vadd.xlane.f32.xlu0 %v151_v48  ;;  %155 = vadd.xlane.f32.xlu1 %v154_v49  ;;  %v196_v48 = vsel %vm114_vm0, %v108_v41, 0.0  ;;  %v109_v49 = vmul.f32 %v2607_v1, %v2864_v43 }
  0x2d   :  { %2322 = vmatmul.mubr.msk.bf16.gmra.mxu0 %vm114_vm0, %v555_v3 }
  0x2e   :  { %2325 = vmatprep.mubr.msk.bf16.mxu0 %vm2548_vm1, %v5221_v7 }
  0x30   :  { %158 = vadd.xlane.f32.xlu0 %v157_v54  ;;  %161 = vadd.xlane.f32.xlu1 %v160_v55  ;;  %v2886_v54 = vld [vmem:[%s5212_s0 + $0xf8] sm:$0xff]  ;;  %v199_v55 = vsel %vm114_vm0, %v109_v49, 0.0 }
  0x31   :  { %v112_v60 = vmul.f32 %v2607_v1, %v2886_v54 }
  0x33   :  { %v208_v63 = vsel %vm114_vm0, %v112_v60, 0.0 }
  0x34   :  { %164 = vadd.xlane.f32.xlu0 %v163_v61  ;;  %167 = vadd.xlane.f32.xlu1 %v166_v62  ;;  %v2899_v61 = vld [vmem:[%s5212_s0 + $0x100] sm:$0xff]  ;;  %v205_v62 = vsel %vm114_vm0, %v111_v57, 0.0 }
  0x35   :  { %2326 = vmatmul.mubr.msk.bf16.gmra.mxu0 %vm114_vm0, %v556_v23  ;;  %v113_v3 = vmul.f32 %v2607_v1, %v2899_v61  ;;  %v2464_v1 = vld [vmem:[%s5218_s6 + $0x8] sm:$0xff]  }
  0x36   :  { %2329 = vmatprep.mubr.msk.bf16.mxu0 %vm2548_vm1, %v5221_v7  ;;  %2382 = vmatpush3.bf16.msra.mxu1 %v2464_v1 }
  0x37   :  { %2383 = vmatprep.subr.bf16.mxu1 %v5221_v7 }
  0x38   :  { %170 = vadd.xlane.f32.xlu0 %v169_v9  ;;  %173 = vadd.xlane.f32.xlu1 %v172_v12  ;;  %v211_v9 = vsel %vm114_vm0, %v113_v3, 0.0  ;;  %v558_v12 = vpack.c.bf16 %v2702_v33, %v2694_v31 }
  0x3a   :  { %2384 = vmatpush3.bf16.msra.mxu1 %v2465_v17 }
  0x3c   :  { %176 = vadd.xlane.f32.xlu0 %v175_v20  ;;  %179 = vadd.xlane.f32.xlu1 %v178_v21  ;;  %v2923_v20 = vstv %s247_s11 }
  0x3d   :  { %2330 = vmatmul.mubr.msk.bf16.gmra.mxu0 %vm114_vm0, %v557_v42 }
  0x3e   :  { %2333 = vmatprep.mubr.msk.bf16.mxu0 %vm2548_vm1, %v5221_v7 }
  0x40   :  { %182 = vadd.xlane.f32.xlu0 %v181_v28  ;;  %185 = vadd.xlane.f32.xlu1 %v184_v29 }
  0x44   :  { %188 = vadd.xlane.f32.xlu0 %v187_v37  ;;  %191 = vadd.xlane.f32.xlu1 %v190_v38  ;;  %v2932_v37 = vld [vmem:[%s5216_s4 + $0x1] ss:$0 sm:$0xff]  ;;  %s2231_s4 = sld [smem:[#allocation2 + $0x2]] }
  0x45   :  { %2334 = vmatmul.mubr.msk.bf16.gmra.mxu0 %vm114_vm0, %v558_v12 }
  0x46   :  { %2337 = vmatprep.mubr.msk.bf16.mxu0 %vm2548_vm1, %v5221_v7 }
  0x48   :  { %194 = vadd.xlane.f32.xlu0 %v193_v47  ;;  %197 = vadd.xlane.f32.xlu1 %v196_v48 }
  0x4c   :  { %200 = vadd.xlane.f32.xlu0 %v199_v55  ;;  %203 = vadd.xlane.f32.xlu1 %v202_v56 }
  0x4d   :  { %2338 = vmatmul.mubr.msk.bf16.gmra.mxu0 %vm114_vm0, %v559_v14 }
  0x4e   :  { %2341 = vmatprep.mubr.msk.bf16.mxu0 %vm2548_vm1, %v5221_v7 }
  0x50   :  { %206 = vadd.xlane.f32.xlu0 %v205_v62  ;;  %209 = vadd.xlane.f32.xlu1 %v208_v63 }
  0x54   :  { %212 = vadd.xlane.f32.xlu0 %v211_v9 }
  0x9d   :  { %v117_v21 = vpop.xlane.xlu0 %116  ;;  %v123_v22 = vpop.xlane.xlu1 %122 }
  0x9e   :  { %v214_v23 = vmul.f32 %v117_v21, %v2602_v0  ;;  %v216_v28 = vmul.f32 %v123_v22, %v2612_v2 }
  0xa0   :  { %v249_v29 = vadd.f32 %v2923_v20, %v214_v23  ;;  %v251_v30 = vadd.f32 %v2923_v20, %v216_v28 }
  0xa1   :  { %v120_v32 = vpop.xlane.xlu0 %119  ;;  %v126_v36 = vpop.xlane.xlu1 %125 }
  0xa2   :  { %v215_v38 = vmul.f32 %v120_v32, %v2621_v5  ;;  %v217_v41 = vmul.f32 %v126_v36, %v2626_v6  ;;  %v2937_v42 = vadd.f32 %v249_v29, %v2602_v0  ;;  %v2940_v47 = vadd.f32 %v251_v30, %v2612_v2 }
  0xa4   :  { %v250_v48 = vadd.f32 %v2923_v20, %v215_v38  ;;  %v252_v49 = vadd.f32 %v2923_v20, %v217_v41  ;;  %v320_v50 = vmul.f32 %v2932_v37, %v2937_v42  ;;  %v322_v55 = vmul.f32 %v2932_v37, %v2940_v47 }
  0xa5   :  { %v129_v56 = vpop.xlane.xlu0 %128  ;;  %v132_v57 = vpop.xlane.xlu1 %131 }
  0xa6   :  { %v218_v60 = vmul.f32 %v129_v56, %v2637_v10  ;;  %v353_v0 = vsel %vm114_vm0, %v320_v50, 0.0  ;;  %v219_v62 = vmul.f32 %v132_v57, %v2642_v11  ;;  %v2952_v2 = vadd.f32 %v250_v48, %v2621_v5 }
  0xa7   :  { %354 = vadd.xlane.f32.xlu1 %v353_v0  ;;  %v2955_v63 = vadd.f32 %v252_v49, %v2626_v6  ;;  %v359_v12 = vsel %vm114_vm0, %v322_v55, 0.0 }
  0xa8   :  { %v253_v3 = vadd.f32 %v2923_v20, %v218_v60  ;;  %v254_v9 = vadd.f32 %v2923_v20, %v219_v62  ;;  %v321_v14 = vmul.f32 %v2932_v37, %v2952_v2 }
  0xa9   :  { %v135_v13 = vpop.xlane.xlu0 %134  ;;  %v138_v1 = vpop.xlane.xlu1 %137  ;;  %v323_v17 = vmul.f32 %v2932_v37, %v2955_v63 }
  0xaa   :  { %v220_v5 = vmul.f32 %v135_v13, %v2659_v18  ;;  %v221_v21 = vmul.f32 %v138_v1, %v2664_v19  ;;  %v2967_v6 = vadd.f32 %v253_v3, %v2637_v10  ;;  %v2970_v22 = vadd.f32 %v254_v9, %v2642_v11 }
  0xab   :  { %360 = vadd.xlane.f32.xlu1 %v359_v12  ;;  %v356_v23 = vsel %vm114_vm0, %v321_v14, 0.0  ;;  %v362_v36 = vsel %vm114_vm0, %v323_v17, 0.0 }
  0xac   :  { %v255_v28 = vadd.f32 %v2923_v20, %v220_v5  ;;  %357 = vadd.xlane.f32.xlu0 %v356_v23  ;;  %v256_v29 = vadd.f32 %v2923_v20, %v221_v21  ;;  %v324_v30 = vmul.f32 %v2932_v37, %v2967_v6  ;;  %v325_v10 = vmul.f32 %v2932_v37, %v2970_v22 }
  0xad   :  { %v141_v32 = vpop.xlane.xlu0 %140  ;;  %v144_v38 = vpop.xlane.xlu1 %143 }
  0xae   :  { %v222_v11 = vmul.f32 %v141_v32, %v2675_v24  ;;  %v365_v41 = vsel %vm114_vm0, %v324_v30, 0.0  ;;  %v223_v48 = vmul.f32 %v144_v38, %v2680_v25  ;;  %v2984_v49 = vadd.f32 %v255_v28, %v2659_v18 }
  0xaf   :  { %366 = vadd.xlane.f32.xlu1 %v365_v41  ;;  %v2987_v50 = vadd.f32 %v256_v29, %v2664_v19  ;;  %v368_v60 = vsel %vm114_vm0, %v325_v10, 0.0 }
  0xb0   :  { %v257_v55 = vadd.f32 %v2923_v20, %v222_v11  ;;  %363 = vadd.xlane.f32.xlu0 %v362_v36  ;;  %v258_v56 = vadd.f32 %v2923_v20, %v223_v48  ;;  %v326_v0 = vmul.f32 %v2932_v37, %v2984_v49 }
  0xb1   :  { %v147_v57 = vpop.xlane.xlu0 %146  ;;  %v150_v62 = vpop.xlane.xlu1 %149  ;;  %v327_v3 = vmul.f32 %v2932_v37, %v2987_v50 }
  0xb2   :  { %v224_v18 = vmul.f32 %v147_v57, %v2694_v31  ;;  %v225_v19 = vmul.f32 %v150_v62, %v2702_v33  ;;  %v2999_v9 = vadd.f32 %v257_v55, %v2675_v24  ;;  %v3002_v12 = vadd.f32 %v258_v56, %v2680_v25 }
  0xb3   :  { %v371_v13 = vsel %vm114_vm0, %v326_v0, 0.0  ;;  %v374_v21 = vsel %vm114_vm0, %v327_v3, 0.0 }
  0xb4   :  { %v259_v14 = vadd.f32 %v2923_v20, %v224_v18  ;;  %369 = vadd.xlane.f32.xlu0 %v368_v60  ;;  %372 = vadd.xlane.f32.xlu1 %v371_v13  ;;  %v260_v1 = vadd.f32 %v2923_v20, %v225_v19  ;;  %v328_v17 = vmul.f32 %v2932_v37, %v2999_v9 }
  0xb5   :  { %v153_v5 = vpop.xlane.xlu0 %152  ;;  %v156_v23 = vpop.xlane.xlu1 %155  ;;  %v329_v24 = vmul.f32 %v2932_v37, %v3002_v12 }
  0xb6   :  { %v226_v25 = vmul.f32 %v153_v5, %v2716_v39  ;;  %v377_v28 = vsel %vm114_vm0, %v328_v17, 0.0  ;;  %v227_v29 = vmul.f32 %v156_v23, %v2721_v40  ;;  %v3016_v30 = vadd.f32 %v259_v14, %v2694_v31 }
  0xb7   :  { %v3019_v32 = vadd.f32 %v260_v1, %v2702_v33  ;;  %v380_v41 = vsel %vm114_vm0, %v329_v24, 0.0 }
  0xb8   :  { %v261_v36 = vadd.f32 %v2923_v20, %v226_v25  ;;  %375 = vadd.xlane.f32.xlu0 %v374_v21  ;;  %378 = vadd.xlane.f32.xlu1 %v377_v28  ;;  %v262_v38 = vadd.f32 %v2923_v20, %v227_v29  ;;  %v330_v10 = vmul.f32 %v2932_v37, %v3016_v30 }
  0xb9   :  { %v159_v11 = vpop.xlane.xlu0 %158  ;;  %v162_v48 = vpop.xlane.xlu1 %161  ;;  %v331_v31 = vmul.f32 %v2932_v37, %v3019_v32  ;;  %v560_v21 = vpack.c.bf16 %v2738_v46, %v2732_v45 }
  0xba   :  { %v228_v55 = vmul.f32 %v159_v11, %v2732_v45  ;;  %v383_v33 = vsel %vm114_vm0, %v330_v10, 0.0  ;;  %v229_v56 = vmul.f32 %v162_v48, %v2738_v46  ;;  %v3032_v57 = vadd.f32 %v261_v36, %v2716_v39 }
  0xbb   :  { %v3035_v60 = vadd.f32 %v262_v38, %v2721_v40  ;;  %v386_v19 = vsel %vm114_vm0, %v331_v31, 0.0  ;;  %2342 = vmatmul.mubr.msk.bf16.gmra.mxu0 %vm114_vm0, %v560_v21 }
  0xbc   :  { %v263_v0 = vadd.f32 %v2923_v20, %v228_v55  ;;  %381 = vadd.xlane.f32.xlu0 %v380_v41  ;;  %384 = vadd.xlane.f32.xlu1 %v383_v33  ;;  %v264_v62 = vadd.f32 %v2923_v20, %v229_v56  ;;  %v332_v3 = vmul.f32 %v2932_v37, %v3032_v57 }
  0xbd   :  { %v165_v18 = vpop.xlane.xlu0 %164  ;;  %v168_v13 = vpop.xlane.xlu1 %167  ;;  %v333_v39 = vmul.f32 %v2932_v37, %v3035_v60  ;;  %2345 = vmatprep.mubr.msk.bf16.mxu0 %vm2548_vm1, %v5221_v7 }
  0xbe   :  { %v230_v14 = vmul.f32 %v165_v18, %v2753_v52  ;;  %v389_v40 = vsel %vm114_vm0, %v332_v3, 0.0  ;;  %v231_v1 = vmul.f32 %v168_v13, %v2758_v53  ;;  %v3048_v17 = vadd.f32 %v263_v0, %v2732_v45 }
  0xbf   :  { %v3051_v5 = vadd.f32 %v264_v62, %v2738_v46  ;;  %v392_v29 = vsel %vm114_vm0, %v333_v39, 0.0 }
  0xc0   :  { %v265_v23 = vadd.f32 %v2923_v20, %v230_v14  ;;  %387 = vadd.xlane.f32.xlu0 %v386_v19  ;;  %390 = vadd.xlane.f32.xlu1 %v389_v40  ;;  %v266_v24 = vadd.f32 %v2923_v20, %v231_v1  ;;  %v334_v25 = vmul.f32 %v2932_v37, %v3048_v17 }
  0xc1   :  { %v171_v28 = vpop.xlane.xlu0 %170  ;;  %v174_v36 = vpop.xlane.xlu1 %173  ;;  %v335_v38 = vmul.f32 %v2932_v37, %v3051_v5 }
  0xc2   :  { %v232_v45 = vmul.f32 %v171_v28, %v2769_v58  ;;  %v395_v46 = vsel %vm114_vm0, %v334_v25, 0.0  ;;  %v233_v10 = vmul.f32 %v174_v36, %v2775_v59  ;;  %v3067_v11 = vadd.f32 %v265_v23, %v2753_v52 }
  0xc3   :  { %v3072_v41 = vadd.f32 %v266_v24, %v2758_v53  ;;  %v398_v56 = vsel %vm114_vm0, %v335_v38, 0.0 }
  0xc4   :  { %v267_v48 = vadd.f32 %v2923_v20, %v232_v45  ;;  %393 = vadd.xlane.f32.xlu0 %v392_v29  ;;  %396 = vadd.xlane.f32.xlu1 %v395_v46  ;;  %v268_v31 = vadd.f32 %v2923_v20, %v233_v10  ;;  %v336_v55 = vmul.f32 %v2932_v37, %v3067_v11 }
  0xc5   :  { %v177_v33 = vpop.xlane.xlu0 %176  ;;  %v180_v0 = vpop.xlane.xlu1 %179  ;;  %v337_v62 = vmul.f32 %v2932_v37, %v3072_v41 }
  0xc6   :  { %v234_v3 = vmul.f32 %v177_v33, %v2790_v4  ;;  %v401_v18 = vsel %vm114_vm0, %v336_v55, 0.0  ;;  %v235_v19 = vmul.f32 %v180_v0, %v2795_v8  ;;  %v3085_v13 = vadd.f32 %v267_v48, %v2769_v58 }
  0xc7   :  { %v3088_v39 = vadd.f32 %v268_v31, %v2775_v59  ;;  %v404_v23 = vsel %vm114_vm0, %v337_v62, 0.0 }
  0xc8   :  { %v269_v14 = vadd.f32 %v2923_v20, %v234_v3  ;;  %399 = vadd.xlane.f32.xlu0 %v398_v56  ;;  %402 = vadd.xlane.f32.xlu1 %v401_v18  ;;  %v270_v40 = vadd.f32 %v2923_v20, %v235_v19  ;;  %v338_v1 = vmul.f32 %v2932_v37, %v3085_v13 }
  0xc9   :  { %v183_v21 = vpop.xlane.xlu0 %182  ;;  %v186_v24 = vpop.xlane.xlu1 %185  ;;  %v339_v25 = vmul.f32 %v2932_v37, %v3088_v39 }
  0xca   :  { %v236_v28 = vmul.f32 %v183_v21, %v2806_v15  ;;  %v407_v29 = vsel %vm114_vm0, %v338_v1, 0.0  ;;  %v237_v36 = vmul.f32 %v186_v24, %v2812_v16  ;;  %v3101_v38 = vadd.f32 %v269_v14, %v2790_v4 }
  0xcb   :  { %v3104_v45 = vadd.f32 %v270_v40, %v2795_v8  ;;  %v410_v55 = vsel %vm114_vm0, %v339_v25, 0.0 }
  0xcc   :  { %v271_v46 = vadd.f32 %v2923_v20, %v236_v28  ;;  %405 = vadd.xlane.f32.xlu0 %v404_v23  ;;  %408 = vadd.xlane.f32.xlu1 %v407_v29  ;;  %v272_v10 = vadd.f32 %v2923_v20, %v237_v36  ;;  %v340_v48 = vmul.f32 %v2932_v37, %v3101_v38 }
  0xcd   :  { %v189_v31 = vpop.xlane.xlu0 %188  ;;  %v192_v33 = vpop.xlane.xlu1 %191  ;;  %v341_v4 = vmul.f32 %v2932_v37, %v3104_v45 }
  0xce   :  { %v238_v56 = vmul.f32 %v189_v31, %v2827_v26  ;;  %v413_v8 = vsel %vm114_vm0, %v340_v48, 0.0  ;;  %v239_v0 = vmul.f32 %v192_v33, %v2832_v27  ;;  %v3117_v62 = vadd.f32 %v271_v46, %v2806_v15 }
  0xcf   :  { %v3120_v3 = vadd.f32 %v272_v10, %v2812_v16  ;;  %v416_v1 = vsel %vm114_vm0, %v341_v4, 0.0 }
  0xd0   :  { %v273_v18 = vadd.f32 %v2923_v20, %v238_v56  ;;  %411 = vadd.xlane.f32.xlu0 %v410_v55  ;;  %414 = vadd.xlane.f32.xlu1 %v413_v8  ;;  %v274_v19 = vadd.f32 %v2923_v20, %v239_v0  ;;  %v342_v14 = vmul.f32 %v2932_v37, %v3117_v62 }
  0xd1   :  { %v195_v40 = vpop.xlane.xlu0 %194  ;;  %v198_v21 = vpop.xlane.xlu1 %197  ;;  %v343_v15 = vmul.f32 %v2932_v37, %v3120_v3 }
  0xd2   :  { %v240_v23 = vmul.f32 %v195_v40, %v2843_v34  ;;  %v419_v16 = vsel %vm114_vm0, %v342_v14, 0.0  ;;  %v241_v24 = vmul.f32 %v198_v21, %v2849_v35  ;;  %v3133_v25 = vadd.f32 %v273_v18, %v2827_v26 }
  0xd3   :  { %v3136_v28 = vadd.f32 %v274_v19, %v2832_v27  ;;  %v422_v48 = vsel %vm114_vm0, %v343_v15, 0.0 }
  0xd4   :  { %v275_v29 = vadd.f32 %v2923_v20, %v240_v23  ;;  %417 = vadd.xlane.f32.xlu0 %v416_v1  ;;  %420 = vadd.xlane.f32.xlu1 %v419_v16  ;;  %v276_v36 = vadd.f32 %v2923_v20, %v241_v24  ;;  %v344_v46 = vmul.f32 %v2932_v37, %v3133_v25 }
  0xd5   :  { %v201_v10 = vpop.xlane.xlu0 %200  ;;  %v204_v31 = vpop.xlane.xlu1 %203  ;;  %v345_v26 = vmul.f32 %v2932_v37, %v3136_v28 }
  0xd6   :  { %v242_v55 = vmul.f32 %v201_v10, %v2864_v43  ;;  %v425_v27 = vsel %vm114_vm0, %v344_v46, 0.0  ;;  %v243_v33 = vmul.f32 %v204_v31, %v2869_v44  ;;  %v3149_v4 = vadd.f32 %v275_v29, %v2843_v34 }
  0xd7   :  { %v3152_v56 = vadd.f32 %v276_v36, %v2849_v35  ;;  %v428_v14 = vsel %vm114_vm0, %v345_v26, 0.0 }
  0xd8   :  { %v277_v8 = vadd.f32 %v2923_v20, %v242_v55  ;;  %423 = vadd.xlane.f32.xlu0 %v422_v48  ;;  %426 = vadd.xlane.f32.xlu1 %v425_v27  ;;  %v278_v0 = vadd.f32 %v2923_v20, %v243_v33  ;;  %v346_v18 = vmul.f32 %v2932_v37, %v3149_v4  ;;  %v3190_v27 = vstv %s2231_s4 }
  0xd9   :  { %v207_v19 = vpop.xlane.xlu0 %206  ;;  %v210_v40 = vpop.xlane.xlu1 %209  ;;  %v347_v34 = vmul.f32 %v2932_v37, %v3152_v56 }
  0xda   :  { %v244_v1 = vmul.f32 %v207_v19, %v2881_v51  ;;  %v431_v35 = vsel %vm114_vm0, %v346_v18, 0.0  ;;  %v245_v21 = vmul.f32 %v210_v40, %v2886_v54  ;;  %v3165_v15 = vadd.f32 %v277_v8, %v2864_v43 }
  0xdb   :  { %v3168_v23 = vadd.f32 %v278_v0, %v2869_v44  ;;  %v434_v36 = vsel %vm114_vm0, %v347_v34, 0.0 }
  0xdc   :  { %v279_v16 = vadd.f32 %v2923_v20, %v244_v1  ;;  %429 = vadd.xlane.f32.xlu0 %v428_v14  ;;  %432 = vadd.xlane.f32.xlu1 %v431_v35  ;;  %v280_v24 = vadd.f32 %v2923_v20, %v245_v21  ;;  %v348_v29 = vmul.f32 %v2932_v37, %v3165_v15 }
  0xdd   :  { %v349_v46 = vmul.f32 %v2932_v37, %v3168_v23 }
  0xde   :  { %v437_v43 = vsel %vm114_vm0, %v348_v29, 0.0  ;;  %v3179_v44 = vadd.f32 %v279_v16, %v2881_v51  ;;  %v3182_v10 = vadd.f32 %v280_v24, %v2886_v54  ;;  %v673_v54 = vpop.f32.mrf.mxu0  ;;  %v1128_v24 = vld [vmem:[%s5215_s3 + $0x8] sm:$0xff] }
  0xdf   :  { %v440_v31 = vsel %vm114_vm0, %v349_v46, 0.0  ;;  %v674_v33 = vadd.f32 %v673_v54, %v3190_v27 }
  0xe0   :  { %435 = vadd.xlane.f32.xlu0 %v434_v36  ;;  %438 = vadd.xlane.f32.xlu1 %v437_v43  ;;  %v350_v48 = vmul.f32 %v2932_v37, %v3179_v44  ;;  %v351_v26 = vmul.f32 %v2932_v37, %v3182_v10  ;;  %v2315_v8 = vpop.f32.mrf.mxu0 }
  0xe1   :  { %v807_v18 = vmax.f32 %v674_v33, 0.0  ;;  %v1127_v8 = vld [vmem:[%s5215_s3] sm:$0xff] }
  0xe2   :  { %v443_v55 = vsel %vm114_vm0, %v350_v48, 0.0  ;;  %v446_v51 = vsel %vm114_vm0, %v351_v26, 0.0  ;;  %v676_v0 = vpop.f32.mrf.mxu0  ;;  %v561_v48 = vpack.c.bf16 %v2758_v53, %v2753_v52  ;;  %v1129_v26 = vld [vmem:[%s5215_s3 + $0x10] sm:$0xff] }
  0xe3   :  { %v677_v19 = vadd.f32 %v676_v0, %v3190_v27 }
  0xe4   :  { %441 = vadd.xlane.f32.xlu0 %v440_v31  ;;  %444 = vadd.xlane.f32.xlu1 %v443_v55  ;;  %v2316_v14 = vpop.f32.mrf.mxu0 }
  0xe5   :  { %v808_v40 = vmax.f32 %v677_v19, 0.0  ;;  %2346 = vmatmul.mubr.msk.bf16.gmra.mxu0 %vm114_vm0, %v561_v48 }
  0xe6   :  { %v681_v34 = vpop.f32.mrf.mxu0  ;;  %2349 = vmatprep.mubr.msk.bf16.mxu0 %vm2548_vm1, %v5221_v7 }
  0xe7   :  { %v840_v1 = vpack.c.bf16 %v808_v40, %v807_v18  ;;  %v682_v35 = vadd.f32 %v681_v34, %v3190_v27  ;;  %v1136_v34 = vld [vmem:[%s5215_s3 + $0x48] sm:$0xff] }
  0xe8   :  { %447 = vadd.xlane.f32.xlu0 %v446_v51  ;;  %v2319_v21 = vpop.f32.mrf.mxu0 }
  0xe9   :  { %2386 = vmatmul.mubr.msk.bf16.vlgmr.msra.gmra.mxu1 %vm114_vm0, %v840_v1  ;;  %v809_v29 = vmax.f32 %v682_v35, 0.0 }
  0xea   :  { %v684_v16 = vpop.f32.mrf.mxu0  ;;  %2389 = vmatprep.mubr.msk.bf16.mxu1 %vm2548_vm1, %v5221_v7 }
  0xeb   :  { %v685_v36 = vadd.f32 %v684_v16, %v3190_v27 }
  0xec   :  { %v2320_v46 = vpop.f32.mrf.mxu0 }
  0xed   :  { %v810_v43 = vmax.f32 %v685_v36, 0.0 }
  0xee   :  { %v689_v31 = vpop.f32.mrf.mxu0 }
  0xef   :  { %v841_v55 = vpack.c.bf16 %v810_v43, %v809_v29  ;;  %v690_v51 = vadd.f32 %v689_v31, %v3190_v27  ;;  %v1140_v31 = vld [vmem:[%s5215_s3 + $0x68] sm:$0xff] }
  0xf0   :  { %v2323_v54 = vpop.f32.mrf.mxu0 }
  0xf1   :  { %2390 = vmatmul.mubr.msk.bf16.gmra.mxu1 %vm114_vm0, %v841_v55  ;;  %v811_v52 = vmax.f32 %v690_v51, 0.0 }
  0xf2   :  { %v692_v33 = vpop.f32.mrf.mxu0  ;;  %2393 = vmatprep.mubr.msk.bf16.mxu1 %vm2548_vm1, %v5221_v7 }
  0xf3   :  { %v693_v53 = vadd.f32 %v692_v33, %v3190_v27 }
  0xf4   :  { %v2324_v0 = vpop.f32.mrf.mxu0 }
  0xf5   :  { %1497 = vperm.xlu1 %2459, %v1128_v24   ;;  %v812_v18 = vmax.f32 %v693_v53, 0.0  ;;  %v1138_v24 = vld [vmem:[%s5215_s3 + $0x58] sm:$0xff] }
  0xf6   :  { %v697_v19 = vpop.f32.mrf.mxu0  ;;  %v1142_v53 = vld [vmem:[%s5215_s3 + $0x78] sm:$0xff] }
  0xf7   :  { %v842_v14 = vpack.c.bf16 %v812_v18, %v811_v52  ;;  %v698_v40 = vadd.f32 %v697_v19, %v3190_v27 }
  0xf8   :  { %v2327_v1 = vpop.f32.mrf.mxu0 }
  0xf9   :  { %1500 = vperm.xlu1 %2459, %v1129_v26   ;;  %2394 = vmatmul.mubr.msk.bf16.gmra.mxu1 %vm114_vm0, %v842_v14  ;;  %v813_v21 = vmax.f32 %v698_v40, 0.0  ;;  %v213_v26 = vpop.xlane.xlu0 %212  ;;  %v1144_v14 = vld [vmem:[%s5215_s3 + $0x88] sm:$0xff] }
  0xfa   :  { %v700_v35 = vpop.f32.mrf.mxu0  ;;  %2397 = vmatprep.mubr.msk.bf16.mxu1 %vm2548_vm1, %v5221_v7  ;;  %v246_v54 = vmul.f32 %v213_v26, %v2899_v61  ;;  %v1148_v1 = vld [vmem:[%s5215_s3 + $0xa8] sm:$0xff]  ;;  %v1154_v26 = vld [vmem:[%s5215_s3 + $0xd8] sm:$0xff] }
  0xfb   :  { %v701_v16 = vadd.f32 %v700_v35, %v3190_v27 }
  0xfc   :  { %v2328_v29 = vpop.f32.mrf.mxu0  ;;  %v281_v18 = vadd.f32 %v2923_v20, %v246_v54  ;;  %v1158_v54 = vld [vmem:[%s5215_s3 + $0xf8] sm:$0xff] }
  0xfd   :  { %v814_v36 = vmax.f32 %v701_v16, 0.0 }
  0xfe   :  { %1494 = vperm.xlu0 %2458, %v1127_v8   ;;  %v705_v46 = vpop.f32.mrf.mxu0  ;;  %v3250_v40 = vadd.f32 %v281_v18, %v2899_v61  ;;  %v1134_v18 = vld [vmem:[%s5215_s3 + $0x38] sm:$0xff] }
  0xff   :  { %v843_v43 = vpack.c.bf16 %v814_v36, %v813_v21  ;;  %v706_v48 = vadd.f32 %v705_v46, %v3190_v27 }
 0x100   :  { %v2331_v55 = vpop.f32.mrf.mxu0  ;;  %v352_v20 = vmul.f32 %v2932_v37, %v3250_v40 }
 0x101   :  { %2398 = vmatmul.mubr.msk.bf16.gmra.mxu1 %vm114_vm0, %v843_v43  ;;  %v815_v33 = vmax.f32 %v706_v48, 0.0  ;;  %v1152_v48 = vld [vmem:[%s5215_s3 + $0xc8] sm:$0xff] }
 0x102   :  { %1521 = vperm.xlu0 %2458, %v1136_v34   ;;  %v708_v51 = vpop.f32.mrf.mxu0  ;;  %2401 = vmatprep.mubr.msk.bf16.mxu1 %vm2548_vm1, %v5221_v7  ;;  %v1146_v34 = vld [vmem:[%s5215_s3 + $0x98] sm:$0xff]  ;;  %v449_v61 = vsel %vm114_vm0, %v352_v20, 0.0  ;;  %v1156_v55 = vld [vmem:[%s5215_s3 + $0xe8] sm:$0xff] }
 0x103   :  { %v709_v52 = vadd.f32 %v708_v51, %v3190_v27  ;;  %v562_v51 = vpack.c.bf16 %v2775_v59, %v2769_v58  ;;  %v1132_v59 = vld [vmem:[%s5215_s3 + $0x28] sm:$0xff] }
 0x104   :  { %v2332_v8 = vpop.f32.mrf.mxu0 }
 0x105   :  { %v816_v0 = vmax.f32 %v709_v52, 0.0  ;;  %2350 = vmatmul.mubr.msk.bf16.gmra.mxu0 %vm114_vm0, %v562_v51  ;;  %v1131_v52 = vld [vmem:[%s5215_s3 + $0x20] sm:$0xff]  ;;  %v1133_v8 = vld [vmem:[%s5215_s3 + $0x30] sm:$0xff] }
 0x106   :  { %1527 = vperm.xlu0 %2458, %v1138_v24   ;;  %v713_v35 = vpop.f32.mrf.mxu0  ;;  %v1150_v24 = vld [vmem:[%s5215_s3 + $0xb8] sm:$0xff]  ;;  %2353 = vmatprep.mubr.msk.bf16.mxu0 %vm2548_vm1, %v5221_v7 }
 0x107   :  { %v844_v19 = vpack.c.bf16 %v816_v0, %v815_v33  ;;  %v714_v21 = vadd.f32 %v713_v35, %v3190_v27  ;;  %v1130_v33 = vld [vmem:[%s5215_s3 + $0x18] sm:$0xff] }
 0x108   :  { %v2335_v16 = vpop.f32.mrf.mxu0 }
 0x109   :  { %2402 = vmatmul.mubr.msk.bf16.gmra.mxu1 %vm114_vm0, %v844_v19  ;;  %v817_v36 = vmax.f32 %v714_v21, 0.0  ;;  %v2466_v19 = vld [vmem:[%s5212_s0] sm:$0xff] }
 0x10a   :  { %1533 = vperm.xlu0 %2458, %v1140_v31   ;;  %2405 = vmatprep.mubr.msk.bf16.mxu1 %vm2548_vm1, %v5221_v7  ;;  %v716_v29 = vpop.f32.mrf.mxu0  ;;  %v1135_v21 = vld [vmem:[%s5215_s3 + $0x40] sm:$0xff] }
 0x10b   :  { %v717_v46 = vadd.f32 %v716_v29, %v3190_v27 }
 0x10c   :  { %v2336_v37 = vpop.f32.mrf.mxu0 }
 0x10d   :  { %v818_v43 = vmax.f32 %v717_v46, 0.0  ;;  %v2468_v46 = vld [vmem:[%s5212_s0 + $0x20] sm:$0xff] }
 0x10e   :  { %1539 = vperm.xlu0 %2458, %v1142_v53  }
 0x10f   :  { %v845_v31 = vpack.c.bf16 %v818_v43, %v817_v36  ;;  %v1137_v36 = vld [vmem:[%s5215_s3 + $0x50] sm:$0xff] }
 0x111   :  { %2406 = vmatmul.mubr.msk.bf16.gmra.mxu1 %vm114_vm0, %v845_v31  ;;  %v1160_v31 = vld [vmem:[%s5213_s1] sm:$0xff] }
 0x112   :  { %1545 = vperm.xlu0 %2458, %v1144_v14   ;;  %2409 = vmatprep.mubr.msk.bf16.mxu1 %vm2548_vm1, %v5221_v7 }
 0x116   :  { %1551 = vperm.xlu0 %2458, %v1146_v34   ;;  %v3304_v34 = vstv %s2230_s25 }
 0x11a   :  { %1557 = vperm.xlu0 %2458, %v1148_v1   ;;  %v2467_v1 = vld [vmem:[%s5212_s0 + $0x10] sm:$0xff] }
 0x11d   :  { %450 = vadd.xlane.f32.xlu1 %v449_v61 }
 0x11e   :  { %1563 = vperm.xlu0 %2458, %v1150_v24  }
 0x122   :  { %1569 = vperm.xlu0 %2458, %v1152_v48  }
 0x126   :  { %1575 = vperm.xlu0 %2458, %v1154_v26   ;;  %v1139_v26 = vld [vmem:[%s5215_s3 + $0x60] sm:$0xff] }
 0x12a   :  { %1581 = vperm.xlu0 %2458, %v1156_v55  }
 0x12e   :  { %1587 = vperm.xlu0 %2458, %v1158_v54   ;;  %1503 = vperm.xlu1 %2459, %v1130_v33   ;;  %v2469_v54 = vld [vmem:[%s5212_s0 + $0x30] sm:$0xff] }
 0x130   :  { %v355_v58 = vpop.xlane.xlu1 %354 }
 0x131   :  { %v452_v14 = vmul.f32 %v2466_v19, %v355_v58 }
 0x132   :  { %1506 = vperm.xlu1 %2459, %v1131_v52   ;;  %v1162_v52 = vld [vmem:[%s5213_s1 + $0x10] sm:$0xff] }
 0x133   :  { %v487_v16 = vadd.f32 %v3304_v34, %v452_v14 }
 0x134   :  { %v361_v53 = vpop.xlane.xlu1 %360 }
 0x135   :  { %v454_v35 = vmul.f32 %v2467_v1, %v361_v53  ;;  %v3314_v29 = vpop.xlane.xlu0 %357  ;;  %v520_v43 = vadd.f32 %v487_v16, %v2937_v42 }
 0x136   :  { %1509 = vperm.xlu1 %2459, %v1132_v59  }
 0x137   :  { %v489_v24 = vadd.f32 %v3304_v34, %v454_v35  ;;  %v3334_v42 = vmul.f32 %v1160_v31, %v520_v43  ;;  %v1164_v35 = vld [vmem:[%s5213_s1 + $0x20] sm:$0xff] }
 0x138   :  { %v367_v0 = vpop.xlane.xlu1 %366 }
 0x139   :  { %v456_v37 = vmul.f32 %v2468_v46, %v367_v0  ;;  %v522_v55 = vadd.f32 %v489_v24, %v2940_v47  ;;  %v3339_v58 = vpop.xlane.xlu0 %363  ;;  %v1141_v47 = vld [vmem:[%s5215_s3 + $0x70] sm:$0xff]  ;;  %v2470_v0 = vld [vmem:[%s5212_s0 + $0x40] sm:$0xff]  ;;  %v1294_v19 = vsel %vm114_vm0, %v3334_v42, 0.0 }
 0x13a   :  { %1512 = vperm.xlu1 %2459, %v1133_v8   ;;  %v2471_v46 = vld [vmem:[%s5212_s0 + $0x50] sm:$0xff] }
 0x13b   :  { %v491_v51 = vadd.f32 %v3304_v34, %v456_v37  ;;  %v3344_v53 = vmul.f32 %v1162_v52, %v522_v55 }
 0x13d   :  { %v373_v20 = vpop.xlane.xlu1 %372  ;;  %v524_v14 = vadd.f32 %v491_v51, %v2967_v6  ;;  %v3357_v24 = vpop.xlane.xlu0 %369  ;;  %v1143_v6 = vld [vmem:[%s5215_s3 + $0x80] sm:$0xff]  ;;  %v1166_v51 = vld [vmem:[%s5213_s1 + $0x30] sm:$0xff] }
 0x13e   :  { %1515 = vperm.xlu1 %2459, %v1134_v18   ;;  %v458_v33 = vmul.f32 %v2469_v54, %v373_v20  ;;  %v721_v20 = vpop.f32.mrf.mxu0 }
 0x13f   :  { %v3368_v43 = vmul.f32 %v1164_v35, %v524_v14 }
 0x140   :  { %v493_v8 = vadd.f32 %v3304_v34, %v458_v33  ;;  %v2339_v16 = vpop.f32.mrf.mxu0 }
 0x141   :  { %v379_v61 = vpop.xlane.xlu1 %378 }
 0x142   :  { %1518 = vperm.xlu1 %2459, %v1135_v21   ;;  %v460_v18 = vmul.f32 %v2470_v0, %v379_v61  ;;  %v722_v21 = vadd.f32 %v721_v20, %v3190_v27  ;;  %v1300_v61 = vsel %vm114_vm0, %v3344_v53, 0.0  ;;  %v526_v31 = vadd.f32 %v493_v8, %v2984_v49  ;;  %v1145_v49 = vld [vmem:[%s5215_s3 + $0x90] sm:$0xff]  ;;  %v3387_v20 = vpop.xlane.xlu0 %375 }
 0x144   :  { %v819_v54 = vmax.f32 %v722_v21, 0.0 }
 0x145   :  { %v385_v48 = vpop.xlane.xlu1 %384 }
 0x146   :  { %1524 = vperm.xlu1 %2459, %v1137_v36   ;;  %v495_v36 = vadd.f32 %v3304_v34, %v460_v18  ;;  %v462_v37 = vmul.f32 %v2471_v46, %v385_v48  ;;  %v2472_v48 = vld [vmem:[%s5212_s0 + $0x60] sm:$0xff]  ;;  %v1306_v18 = vsel %vm114_vm0, %v3368_v43, 0.0 }
 0x148   :  { %v497_v0 = vadd.f32 %v3304_v34, %v462_v37  ;;  %v528_v14 = vadd.f32 %v495_v36, %v2999_v9  ;;  %v2473_v9 = vld [vmem:[%s5212_s0 + $0x70] sm:$0xff] }
 0x149   :  { %v391_v59 = vpop.xlane.xlu1 %390 }
 0x14a   :  { %1530 = vperm.xlu1 %2459, %v1139_v26   ;;  %v724_v26 = vpop.f32.mrf.mxu0  ;;  %v530_v37 = vadd.f32 %v497_v0, %v3016_v30 }
 0x14b   :  { %v725_v33 = vadd.f32 %v724_v26, %v3190_v27  ;;  %v1170_v26 = vld [vmem:[%s5213_s1 + $0x50] sm:$0xff] }
 0x14c   :  { %v2340_v52 = vpop.f32.mrf.mxu0 }
 0x14d   :  { %1295 = vadd.xlane.f32.xlu0 %v1294_v19  ;;  %v397_v1 = vpop.xlane.xlu1 %396  ;;  %v820_v8 = vmax.f32 %v725_v33, 0.0  ;;  %v3384_v19 = vmul.f32 %v1166_v51, %v526_v31  ;;  %v3410_v51 = vpop.xlane.xlu0 %381  ;;  %v2474_v33 = vld [vmem:[%s5212_s0 + $0x80] sm:$0xff] }
 0x14e   :  { %1536 = vperm.xlu1 %2459, %v1141_v47   ;;  %v464_v47 = vmul.f32 %v2472_v48, %v391_v59  ;;  %v1168_v59 = vld [vmem:[%s5213_s1 + $0x40] sm:$0xff] }
 0x14f   :  { %v846_v21 = vpack.c.bf16 %v820_v8, %v819_v54  ;;  %v1312_v36 = vsel %vm114_vm0, %v3384_v19, 0.0  ;;  %v3402_v46 = vmul.f32 %v1168_v59, %v528_v14 }
 0x150   :  { %v499_v16 = vadd.f32 %v3304_v34, %v464_v47  ;;  %v3422_v47 = vmul.f32 %v1170_v26, %v530_v37 }
 0x151   :  { %1301 = vadd.xlane.f32.xlu0 %v1300_v61  ;;  %v403_v55 = vpop.xlane.xlu1 %402  ;;  %v1147_v61 = vld [vmem:[%s5215_s3 + $0xa0] sm:$0xff]  ;;  %2410 = vmatmul.mubr.msk.bf16.gmra.mxu1 %vm114_vm0, %v846_v21  ;;  %v1318_v48 = vsel %vm114_vm0, %v3402_v46, 0.0  ;;  %v2477_v21 = vld [vmem:[%s5212_s0 + $0x90] sm:$0xff] }
 0x152   :  { %1542 = vperm.xlu1 %2459, %v1143_v6   ;;  %v466_v6 = vmul.f32 %v2473_v9, %v397_v1  ;;  %2413 = vmatprep.mubr.msk.bf16.mxu1 %vm2548_vm1, %v5221_v7  ;;  %v1149_v1 = vld [vmem:[%s5215_s3 + $0xb0] sm:$0xff]  ;;  %v532_v54 = vadd.f32 %v499_v16, %v3032_v57  ;;  %v468_v52 = vmul.f32 %v2474_v33, %v403_v55  ;;  %v1151_v57 = vld [vmem:[%s5215_s3 + $0xc0] sm:$0xff] }
 0x153   :  { %v2475_v55 = vld [vmem:[%s5212_s0 + $0xa0] sm:$0xff] }
 0x154   :  { %v501_v30 = vadd.f32 %v3304_v34, %v466_v6  ;;  %v503_v59 = vadd.f32 %v3304_v34, %v468_v52  ;;  %v3448_v6 = vpop.xlane.xlu0 %387  ;;  %v1176_v33 = vld [vmem:[%s5213_s1 + $0x80] sm:$0xff] }
 0x155   :  { %1307 = vadd.xlane.f32.xlu0 %v1306_v18  ;;  %v409_v35 = vpop.xlane.xlu1 %408  ;;  %v3438_v18 = vld [vmem:[%s5212_s0 + $0xa8] sm:$0xff] }
 0x156   :  { %1548 = vperm.xlu1 %2459, %v1145_v49   ;;  %v1172_v49 = vld [vmem:[%s5213_s1 + $0x60] sm:$0xff]  ;;  %v563_v14 = vpack.c.bf16 %v3438_v18, %v2475_v55  ;;  %v470_v16 = vmul.f32 %v2477_v21, %v409_v35  ;;  %v534_v9 = vadd.f32 %v501_v30, %v3048_v17  ;;  %v1153_v17 = vld [vmem:[%s5215_s3 + $0xd0] sm:$0xff]  ;;  %v536_v30 = vadd.f32 %v503_v59, %v3067_v11 }
 0x157   :  { %v3430_v0 = vmul.f32 %v1172_v49, %v532_v54  ;;  %v1178_v21 = vld [vmem:[%s5213_s1 + $0x90] sm:$0xff] }
 0x158   :  { %2354 = vmatmul.mubr.msk.bf16.gmra.mxu0 %vm114_vm0, %v563_v14  ;;  %v505_v26 = vadd.f32 %v3304_v34, %v470_v16  ;;  %v3468_v52 = vpop.xlane.xlu0 %393  ;;  %v1157_v16 = vld [vmem:[%s5215_s3 + $0xf0] sm:$0xff] }
 0x159   :  { %1313 = vadd.xlane.f32.xlu0 %v1312_v36  ;;  %v415_v31 = vpop.xlane.xlu1 %414  ;;  %v1174_v36 = vld [vmem:[%s5213_s1 + $0x70] sm:$0xff]  ;;  %2357 = vmatprep.mubr.msk.bf16.mxu0 %vm2548_vm1, %v5221_v7  ;;  %v1330_v35 = vsel %vm114_vm0, %v3430_v0, 0.0 }
 0x15a   :  { %1554 = vperm.xlu1 %2459, %v1147_v61   ;;  %v1324_v61 = vsel %vm114_vm0, %v3422_v47, 0.0  ;;  %v3462_v54 = vmul.f32 %v1174_v36, %v534_v9  ;;  %v538_v14 = vadd.f32 %v505_v26, %v3085_v13  ;;  %v1180_v26 = vld [vmem:[%s5213_s1 + $0xa0] sm:$0xff] }
 0x15c   :  { %v3500_v36 = vmul.f32 %v1178_v21, %v538_v14 }
 0x15d   :  { %1319 = vadd.xlane.f32.xlu0 %v1318_v48  ;;  %v421_v8 = vpop.xlane.xlu1 %420  ;;  %v3473_v48 = vld [vmem:[%s5212_s0 + $0xb0] sm:$0xff] }
 0x15e   :  { %1560 = vperm.xlu1 %2459, %v1149_v1   ;;  %v472_v1 = vmul.f32 %v2475_v55, %v415_v31  ;;  %v474_v49 = vmul.f32 %v3473_v48, %v421_v8  ;;  %v1155_v31 = vld [vmem:[%s5215_s3 + $0xe0] sm:$0xff]  ;;  %v3482_v55 = vmul.f32 %v1176_v33, %v536_v30 }
 0x160   :  { %v507_v11 = vadd.f32 %v3304_v34, %v472_v1  ;;  %v509_v8 = vadd.f32 %v3304_v34, %v474_v49  ;;  %v1342_v9 = vsel %vm114_vm0, %v3482_v55, 0.0 }
 0x161   :  { %1325 = vadd.xlane.f32.xlu0 %v1324_v61  ;;  %v427_v37 = vpop.xlane.xlu1 %426  ;;  %v3495_v61 = vld [vmem:[%s5212_s0 + $0xc0] sm:$0xff] }
 0x162   :  { %1566 = vperm.xlu1 %2459, %v1151_v57   ;;  %v1336_v57 = vsel %vm114_vm0, %v3462_v54, 0.0  ;;  %v476_v13 = vmul.f32 %v3495_v61, %v427_v37  ;;  %v1159_v37 = vld [vmem:[%s5215_s3 + $0x100] sm:$0xff]  ;;  %v542_v30 = vadd.f32 %v509_v8, %v3117_v62 }
 0x164   :  { %v511_v33 = vadd.f32 %v3304_v34, %v476_v13 }
 0x165   :  { %1331 = vadd.xlane.f32.xlu0 %v1330_v35  ;;  %v433_v59 = vpop.xlane.xlu1 %432  ;;  %v540_v35 = vadd.f32 %v507_v11, %v3101_v38  ;;  %v3516_v38 = vld [vmem:[%s5212_s0 + $0xd0] sm:$0xff] }
 0x166   :  { %1572 = vperm.xlu1 %2459, %v1153_v17   ;;  %v3503_v17 = vpop.xlane.xlu0 %399  ;;  %v478_v49 = vmul.f32 %v3516_v38, %v433_v59  ;;  %v3534_v59 = vld [vmem:[%s5212_s0 + $0xe0] sm:$0xff]  ;;  %v544_v13 = vadd.f32 %v511_v33, %v3133_v25 }
 0x167   :  { %v3521_v11 = vmul.f32 %v1180_v26, %v540_v35  ;;  %5260 = vst [vmem:[#allocation5_spill] sm:$0xff] %v3534_v59  ;;  %v1184_v35 = vld [vmem:[%s5213_s1 + $0xc0] sm:$0xff] }
 0x168   :  { %v513_v21 = vadd.f32 %v3304_v34, %v478_v49  ;;  %v3552_v49 = vmul.f32 %v1184_v35, %v544_v13 }
 0x169   :  { %1337 = vadd.xlane.f32.xlu0 %v1336_v57  ;;  %v439_v1 = vpop.xlane.xlu1 %438  ;;  %v1182_v57 = vld [vmem:[%s5213_s1 + $0xb0] sm:$0xff] }
 0x16a   :  { %1578 = vperm.xlu1 %2459, %v1155_v31   ;;  %v1348_v31 = vsel %vm114_vm0, %v3500_v36, 0.0  ;;  %v3526_v62 = vpop.xlane.xlu0 %405  ;;  %v3528_v14 = vmul.f32 %v1182_v57, %v542_v30  ;;  %v480_v8 = vmul.f32 %v3534_v59, %v439_v1  ;;  %v3549_v1 = vld [vmem:[%s5212_s0 + $0xf0] sm:$0xff]  ;;  %v546_v25 = vadd.f32 %v513_v21, %v3149_v4  ;;  %v1188_v4 = vld [vmem:[%s5213_s1 + $0xe0] sm:$0xff] }
 0x16b   :  { %5261 = vst [vmem:[#allocation6_spill] sm:$0xff] %v3549_v1 }
 0x16c   :  { %v1360_v26 = vsel %vm114_vm0, %v3528_v14, 0.0 }
 0x16d   :  { %1343 = vadd.xlane.f32.xlu0 %v1342_v9  ;;  %v445_v9 = vpop.xlane.xlu1 %444 }
 0x16e   :  { %1584 = vperm.xlu1 %2459, %v1157_v16   ;;  %v1354_v16 = vsel %vm114_vm0, %v3521_v11, 0.0  ;;  %v482_v30 = vmul.f32 %v3549_v1, %v445_v9  ;;  %v3555_v33 = vpop.xlane.xlu0 %411 }
 0x170   :  { %v517_v57 = vadd.f32 %v3304_v34, %v482_v30  ;;  %v1190_v30 = vld [vmem:[%s5213_s1 + $0xf0] sm:$0xff] }
 0x171   :  { %1349 = vadd.xlane.f32.xlu0 %v1348_v31  ;;  %v1186_v31 = vld [vmem:[%s5213_s1 + $0xd0] sm:$0xff] }
 0x172   :  { %1590 = vperm.xlu1 %2459, %v1159_v37   ;;  %v515_v37 = vadd.f32 %v3304_v34, %v480_v8  ;;  %v1366_v8 = vsel %vm114_vm0, %v3552_v49, 0.0  ;;  %v3569_v21 = vpop.xlane.xlu0 %417 }
 0x174   :  { %v548_v9 = vadd.f32 %v515_v37, %v3165_v15 }
 0x175   :  { %1355 = vadd.xlane.f32.xlu0 %v1354_v16  ;;  %v3563_v16 = vmul.f32 %v1186_v31, %v546_v25 }
 0x176   :  { %v3573_v35 = vmul.f32 %v1188_v4, %v548_v9  ;;  %v2483_v9 = vld [vmem:[%s5212_s0 + $0x8] sm:$0xff] }
 0x177   :  { %v1372_v13 = vsel %vm114_vm0, %v3563_v16, 0.0 }
 0x178   :  { %v1378_v31 = vsel %vm114_vm0, %v3573_v35, 0.0 }
 0x179   :  { %1361 = vadd.xlane.f32.xlu0 %v1360_v26  ;;  %v550_v26 = vadd.f32 %v517_v57, %v3179_v44  ;;  %v453_v44 = vmul.f32 %v2483_v9, %v3314_v29  ;;  %v3588_v57 = vpop.xlane.xlu0 %423 }
 0x17b   :  { %v729_v15 = vpop.f32.mrf.mxu0  ;;  %v488_v29 = vadd.f32 %v3304_v34, %v453_v44 }
 0x17c   :  { %v730_v37 = vadd.f32 %v729_v15, %v3190_v27 }
 0x17d   :  { %1367 = vadd.xlane.f32.xlu0 %v1366_v8  ;;  %v2343_v25 = vpop.f32.mrf.mxu0  ;;  %v3582_v8 = vmul.f32 %v1190_v30, %v550_v26 }
 0x17e   :  { %v2484_v25 = vld [vmem:[%s5212_s0 + $0x18] sm:$0xff] }
 0x17f   :  { %5262 = vst [vmem:[#allocation7_spill] sm:$0xff] %v3582_v8  ;;  %v732_v4 = vpop.f32.mrf.mxu0  ;;  %v455_v26 = vmul.f32 %v2484_v25, %v3339_v58  ;;  %v1384_v30 = vsel %vm114_vm0, %v3582_v8, 0.0  ;;  %v5263_v25 = vmov 0.0  }
 0x180   :  { %v733_v7 = vadd.f32 %v732_v4, %v3190_v27  ;;  %v2485_v4 = vld [vmem:[%s5212_s0 + $0x28] sm:$0xff] }
 0x181   :  { %1373 = vadd.xlane.f32.xlu0 %v1372_v13  ;;  %v821_v13 = vmax.f32 %v730_v37, 0.0  ;;  %v2344_v15 = vpop.f32.mrf.mxu0  ;;  %v490_v37 = vadd.f32 %v3304_v34, %v455_v26  ;;  %v457_v58 = vmul.f32 %v2485_v4, %v3357_v24 }
 0x182   :  { %v822_v1 = vmax.f32 %v733_v7, 0.0  ;;  %v521_v15 = vadd.f32 %v488_v29, %v2952_v2  ;;  %v1161_v7 = vld [vmem:[%s5213_s1 + $0x8] sm:$0xff] }
 0x183   :  { %v492_v44 = vadd.f32 %v3304_v34, %v457_v58 }
 0x184   :  { %v847_v9 = vpack.c.bf16 %v822_v1, %v821_v13  ;;  %v523_v1 = vadd.f32 %v490_v37, %v2955_v63  ;;  %v2486_v13 = vld [vmem:[%s5212_s0 + $0x38] sm:$0xff]  ;;  %v3620_v2 = vmul.f32 %v1161_v7, %v521_v15  ;;  %v2488_v37 = vld [vmem:[%s5212_s0 + $0x48] sm:$0xff] }
 0x185   :  { %1379 = vadd.xlane.f32.xlu0 %v1378_v31  ;;  %v3598_v31 = vpop.xlane.xlu0 %429  ;;  %v459_v26 = vmul.f32 %v2486_v13, %v3387_v20  ;;  %v3628_v63 = vld [vmem:[%s5212_s0 + $0xb8] sm:$0xff]  ;;  %v461_v4 = vmul.f32 %v2488_v37, %v3410_v51  ;;  %v525_v15 = vadd.f32 %v492_v44, %v2970_v22  ;;  %v2490_v37 = vld [vmem:[%s5212_s0 + $0x68] sm:$0xff] }
 0x186   :  { %2414 = vmatmul.mubr.msk.bf16.gmra.mxu1 %vm114_vm0, %v847_v9  ;;  %v564_v29 = vpack.c.bf16 %v3628_v63, %v3473_v48  ;;  %v1297_v58 = vsel %vm114_vm0, %v3620_v2, 0.0  ;;  %v1165_v48 = vld [vmem:[%s5213_s1 + $0x28] sm:$0xff]  ;;  %v2489_v22 = vld [vmem:[%s5212_s0 + $0x58] sm:$0xff] }
 0x187   :  { %2417 = vmatprep.mubr.msk.bf16.mxu1 %vm2548_vm1, %v5263_v25  ;;  %v494_v20 = vadd.f32 %v3304_v34, %v459_v26  ;;  %v496_v13 = vadd.f32 %v3304_v34, %v461_v4  ;;  %v463_v44 = vmul.f32 %v2489_v22, %v3448_v6  ;;  %v3657_v26 = vmul.f32 %v1165_v48, %v525_v15  ;;  %v1169_v48 = vld [vmem:[%s5213_s1 + $0x48] sm:$0xff] }
 0x188   :  { %2358 = vmatmul.mubr.msk.bf16.gmra.mxu0 %vm114_vm0, %v564_v29  ;;  %v1167_v29 = vld [vmem:[%s5213_s1 + $0x38] sm:$0xff]  ;;  %v465_v4 = vmul.f32 %v2490_v37, %v3468_v52 }
 0x189   :  { %1385 = vadd.xlane.f32.xlu0 %v1384_v30  ;;  %v3618_v24 = vpop.xlane.xlu0 %435  ;;  %v1163_v30 = vld [vmem:[%s5213_s1 + $0x18] sm:$0xff]  ;;  %2361 = vmatprep.mubr.msk.bf16.mxu0 %vm2548_vm1, %v5263_v25  ;;  %v529_v15 = vadd.f32 %v496_v13, %v3002_v12 }
 0x18a   :  { %v3632_v9 = vmul.f32 %v1163_v30, %v523_v1  ;;  %v2550_v1 = vmov 1   ;;  %v527_v30 = vadd.f32 %v494_v20, %v2987_v50  ;;  %v1309_v50 = vsel %vm114_vm0, %v3657_v26, 0.0  ;;  %v1171_v37 = vld [vmem:[%s5213_s1 + $0x58] sm:$0xff] }
 0x18b   :  { %2460 = vset.pattern.permute.xlu0 %v2550_v1  ;;  %2461 = vset.pattern.permute.xlu1 %v2550_v1  ;;  %v498_v1 = vadd.f32 %v3304_v34, %v463_v44  ;;  %v500_v52 = vadd.f32 %v3304_v34, %v465_v4 }
 0x18c   :  { %v1303_v51 = vsel %vm114_vm0, %v3632_v9, 0.0  ;;  %v3674_v20 = vmul.f32 %v1167_v29, %v527_v30  ;;  %v3687_v29 = vmul.f32 %v1169_v48, %v529_v15 }
 0x18d   :  { %v3648_v7 = vpop.xlane.xlu0 %441  ;;  %v531_v12 = vadd.f32 %v498_v1, %v3019_v32  ;;  %v1173_v1 = vld [vmem:[%s5213_s1 + $0x68] sm:$0xff] }
 0x18e   :  { %v1315_v30 = vsel %vm114_vm0, %v3674_v20, 0.0  ;;  %v1321_v15 = vsel %vm114_vm0, %v3687_v29, 0.0 }
 0x18f   :  { %v3701_v32 = vmul.f32 %v1171_v37, %v531_v12 }
 0x191   :  { %v3670_v6 = vpop.xlane.xlu0 %447  ;;  %v1327_v8 = vsel %vm114_vm0, %v3701_v32, 0.0 }
 0x195   :  { %v1495_v44 = vpop.permute.xlu0 %1494 }
 0x196   :  { %1298 = vadd.xlane.f32.xlu1 %v1297_v58  ;;  %v3667_v58 = vpop.permute.xlu1 %1497 }
 0x19a   :  { %1304 = vadd.xlane.f32.xlu1 %v1303_v51  ;;  %v2491_v51 = vld [vmem:[%s5212_s0 + $0x78] sm:$0xff]  ;;  %v1501_v13 = vpop.permute.xlu1 %1500 }
 0x19b   :  { %v467_v22 = vmul.f32 %v2491_v51, %v3503_v17  ;;  %v2492_v17 = vld [vmem:[%s5212_s0 + $0x88] sm:$0xff]  ;;  %v533_v51 = vadd.f32 %v500_v52, %v3035_v60 }
 0x19d   :  { %v502_v4 = vadd.f32 %v3304_v34, %v467_v22  ;;  %v1292_v22 = vlaneseq  ;;  %v3715_v12 = vmul.f32 %v1173_v1, %v533_v51 }
 0x19e   :  { %1310 = vadd.xlane.f32.xlu1 %v1309_v50  ;;  %v469_v50 = vmul.f32 %v2492_v17, %v3526_v62  ;;  %v3711_v62 = vld [vmem:[%s5212_s0 + $0x100] sm:$0xff]  ;;  %v2494_v17 = vld [vmem:[%s5212_s0 + $0x98] sm:$0xff] }
 0x19f   :  { %5264 = vst [vmem:[#allocation8_spill] sm:$0xff] %v3711_v62  ;;  %v535_v37 = vadd.f32 %v502_v4, %v3051_v5  ;;  %v1192_v5 = vld [vmem:[%s5213_s1 + $0x100] sm:$0xff]  ;;  %v3731_v4 = vand.u32 127, %v1292_v22 }
 0x1a0   :  { %v504_v52 = vadd.f32 %v3304_v34, %v469_v50 }
 0x1a1   :  { %vm1592_vm2 = vcmp.lt.s32.totalorder %v3731_v4, %v1495_v44  ;;  %vm1594_vm3 = vcmp.lt.s32.totalorder %v3731_v4, %v1501_v13  ;;  %vm1593_vm11 = vcmp.lt.s32.totalorder %v3731_v4, %v3667_v58 }
 0x1a2   :  { %1316 = vadd.xlane.f32.xlu1 %v1315_v30  ;;  %v3706_v30 = vpop.permute.xlu0 %1521 }
 0x1a3   :  { %vm1601_vm7 = vcmp.lt.s32.totalorder %v3731_v4, %v3706_v30 }
 0x1a6   :  { %v451_v48 = vpop.xlane.xlu1 %450  ;;  %1322 = vadd.xlane.f32.xlu1 %v1321_v15  ;;  %v471_v15 = vmul.f32 %v2494_v17, %v3555_v33  ;;  %v1333_v33 = vsel %vm114_vm0, %v3715_v12, 0.0 }
 0x1a7   :  { %v484_v60 = vmul.f32 %v3711_v62, %v451_v48  ;;  %v1175_v48 = vld [vmem:[%s5213_s1 + $0x78] sm:$0xff]  ;;  %v3743_v62 = vpop.permute.xlu0 %1527 }
 0x1a8   :  { %v3736_v1 = vmul.f32 %v1175_v48, %v535_v37  ;;  %v506_v17 = vadd.f32 %v3304_v34, %v471_v15  ;;  %vm1603_vm8 = vcmp.lt.s32.totalorder %v3731_v4, %v3743_v62 }
 0x1a9   :  { %v519_v59 = vadd.f32 %v3304_v34, %v484_v60  ;;  %v537_v60 = vadd.f32 %v504_v52, %v3072_v41  ;;  %v475_v41 = vmul.f32 %v3628_v63, %v3588_v57  ;;  %v3759_v44 = vpop.f32.mrf.mxu1  ;;  %v1179_v63 = vld [vmem:[%s5213_s1 + $0x98] sm:$0xff]  ;;  %v1636_v62 = vsel %vm1603_vm8, %v3701_v32, 0.0 }
 0x1aa   :  { %v1504_v50 = vpop.permute.xlu1 %1503  ;;  %1328 = vadd.xlane.f32.xlu1 %v1327_v8  ;;  %v473_v8 = vmul.f32 %v3438_v18, %v3569_v21  ;;  %v1625_v18 = vsel %vm1592_vm2, %v3334_v42, 0.0  ;;  %5266 = vst [vmem:[#allocation10_spill] sm:$0xff] %v3759_v44  ;;  %v1339_v15 = vsel %vm114_vm0, %v3736_v1, 0.0  ;;  %v539_v48 = vadd.f32 %v506_v17, %v3088_v39  ;;  %v3781_v17 = vld [vmem:[%s5212_s0 + $0xc8] sm:$0xff] }
 0x1ab   :  { %v552_v51 = vadd.f32 %v519_v59, %v3250_v40  ;;  %v1177_v40 = vld [vmem:[%s5213_s1 + $0x88] sm:$0xff]  ;;  %v2387_v42 = vpop.f32.mrf.mxu1  ;;  %vm1595_vm4 = vcmp.lt.s32.totalorder %v3731_v4, %v1504_v50  ;;  %v1691_v32 = vsel %vm114_vm0, %v1636_v62, 0.0 }
 0x1ac   :  { %v3757_v21 = vmul.f32 %v1177_v40, %v537_v60  ;;  %v508_v37 = vadd.f32 %v3304_v34, %v473_v8  ;;  %v1627_v60 = vsel %vm1594_vm3, %v3344_v53, 0.0  ;;  %v477_v8 = vmul.f32 %v3781_v17, %v3598_v31  ;;  %v1181_v53 = vld [vmem:[%s5213_s1 + $0xa8] sm:$0xff]  ;;  %v3799_v31 = vld [vmem:[%s5212_s0 + $0xd8] sm:$0xff] }
 0x1ad   :  { %v3745_v22 = vmul.f32 %v1192_v5, %v552_v51  ;;  %v510_v5 = vadd.f32 %v3304_v34, %v475_v41  ;;  %v3770_v51 = vpop.permute.xlu0 %1533  ;;  %v3776_v39 = vpop.f32.mrf.mxu1  ;;  %v3786_v40 = vmul.f32 %v1179_v63, %v539_v48  ;;  %v1628_v50 = vsel %vm1595_vm4, %v3632_v9, 0.0 }
 0x1ae   :  { %v3750_v59 = vpop.permute.xlu1 %1506  ;;  %1334 = vadd.xlane.f32.xlu1 %v1333_v33  ;;  %v1658_v33 = vsel %vm114_vm0, %v1625_v18, 0.0  ;;  %v1345_v13 = vsel %vm114_vm0, %v3757_v21, 0.0  ;;  %v541_v41 = vadd.f32 %v508_v37, %v3104_v45  ;;  %v479_v45 = vmul.f32 %v3799_v31, %v3618_v24  ;;  %v1183_v37 = vld [vmem:[%s5213_s1 + $0xb8] sm:$0xff] }
 0x1af   :  { %5265 = vst [vmem:[#allocation9_spill] sm:$0xff] %v3745_v22  ;;  %v1390_v52 = vsel %vm114_vm0, %v3745_v22, 0.0  ;;  %v2388_v18 = vpop.f32.mrf.mxu1  ;;  %v543_v42 = vadd.f32 %v510_v5, %v3120_v3  ;;  %v512_v63 = vadd.f32 %v3304_v34, %v477_v8  ;;  %v1351_v24 = vsel %vm114_vm0, %v3786_v40, 0.0 }
 0x1b0   :  { %1391 = vadd.xlane.f32.xlu0 %v1390_v52  ;;  %v514_v8 = vadd.f32 %v3304_v34, %v479_v45  ;;  %vm1605_vm9 = vcmp.lt.s32.totalorder %v3731_v4, %v3770_v51  ;;  %vm1596_vm13 = vcmp.lt.s32.totalorder %v3731_v4, %v3750_v59 }
 0x1b1   :  { %v3807_v48 = vpop.f32.mrf.mxu1  ;;  %v3811_v5 = vpop.permute.xlu0 %1539  ;;  %v3819_v22 = vmul.f32 %v1183_v37, %v543_v42  ;;  %v1185_v37 = vld [vmem:[%s5213_s1 + $0xc8] sm:$0xff]  ;;  %v1638_v51 = vsel %vm1605_vm9, %v3715_v12, 0.0 }
 0x1b2   :  { %v1510_v57 = vpop.permute.xlu1 %1509  ;;  %1340 = vadd.xlane.f32.xlu1 %v1339_v15  ;;  %v1664_v15 = vsel %vm114_vm0, %v1627_v60, 0.0  ;;  %5267 = vst [vmem:[#allocation11_spill] sm:$0xff] %v3807_v48  ;;  %vm1607_vm10 = vcmp.lt.s32.totalorder %v3731_v4, %v3811_v5  ;;  %v1697_v12 = vsel %vm114_vm0, %v1638_v51, 0.0 }
 0x1b3   :  { %vm1597_vm5 = vcmp.lt.s32.totalorder %v3731_v4, %v1510_v57  ;;  %v2391_v18 = vpop.f32.mrf.mxu1 }
 0x1b4   :  { %1659 = vadd.xlane.f32.xlu0 %v1658_v33  ;;  %v737_v33 = vpop.f32.mrf.mxu0  ;;  %v1630_v48 = vsel %vm1597_vm5, %v3657_v26, 0.0  ;;  %v545_v26 = vadd.f32 %v512_v63, %v3136_v28  ;;  %v547_v63 = vadd.f32 %v514_v8, %v3152_v56  ;;  %v1187_v56 = vld [vmem:[%s5213_s1 + $0xd8] sm:$0xff] }
 0x1b5   :  { %v738_v3 = vadd.f32 %v737_v33, %v3190_v27  ;;  %v3823_v57 = vpop.f32.mrf.mxu1  ;;  %v1673_v18 = vsel %vm114_vm0, %v1630_v48, 0.0 }
 0x1b6   :  { %v3789_v52 = vpop.permute.xlu1 %1512  ;;  %1346 = vadd.xlane.f32.xlu1 %v1345_v13  ;;  %v3816_v13 = vmul.f32 %v1181_v53, %v541_v41  ;;  %v2347_v9 = vpop.f32.mrf.mxu0  ;;  %v3829_v53 = vld [vmem:[%s5212_s0 + $0xe8] sm:$0xff]  ;;  %v3871_v8 = vmul.f32 %v1187_v56, %v547_v63 }
 0x1b7   :  { %v823_v44 = vmax.f32 %v738_v3, 0.0  ;;  %v481_v42 = vmul.f32 %v3829_v53, %v3648_v7  ;;  %v2392_v3 = vpop.f32.mrf.mxu1  ;;  %v3840_v9 = vpop.permute.xlu0 %1545  ;;  %vm1598_vm15 = vcmp.lt.s32.totalorder %v3731_v4, %v3789_v52 }
 0x1b8   :  { %1665 = vadd.xlane.f32.xlu0 %v1664_v15  ;;  %v1667_v15 = vsel %vm114_vm0, %v1628_v50, 0.0  ;;  %v740_v33 = vpop.f32.mrf.mxu0  ;;  %v1357_v45 = vsel %vm114_vm0, %v3816_v13, 0.0  ;;  %vm1609_vm12 = vcmp.lt.s32.totalorder %v3731_v4, %v3840_v9 }
 0x1b9   :  { %v741_v41 = vadd.f32 %v740_v33, %v3190_v27 }
 0x1ba   :  { %v1516_v60 = vpop.permute.xlu1 %1515  ;;  %1352 = vadd.xlane.f32.xlu1 %v1351_v24  ;;  %v2348_v50 = vpop.f32.mrf.mxu0 }
 0x1bb   :  { %vm1599_vm6 = vcmp.lt.s32.totalorder %v3731_v4, %v1516_v60  ;;  %v824_v24 = vmax.f32 %v741_v41, 0.0  ;;  %v1363_v60 = vsel %vm114_vm0, %v3819_v22, 0.0  ;;  %v3855_v41 = vld [vmem:[%s5212_s0 + $0xf8] sm:$0xff]  ;;  %v3861_v50 = vmul.f32 %v1185_v37, %v545_v26  ;;  %v1552_v26 = vpop.permute.xlu0 %1551 }
 0x1bc   :  { %1668 = vadd.xlane.f32.xlu0 %v1667_v15  ;;  %v1632_v28 = vsel %vm1599_vm6, %v3674_v20, 0.0  ;;  %v3849_v15 = vpop.f32.mrf.mxu1  ;;  %v483_v48 = vmul.f32 %v3855_v41, %v3670_v6  ;;  %v1634_v6 = vsel %vm1601_vm7, %v3687_v29, 0.0  ;;  %v1189_v29 = vld [vmem:[%s5213_s1 + $0xe8] sm:$0xff]  ;;  %vm1611_vm14 = vcmp.lt.s32.totalorder %v3731_v4, %v1552_v26 }
 0x1bd   :  { %v848_v33 = vpack.c.bf16 %v824_v24, %v823_v44  ;;  %v1679_v44 = vsel %vm114_vm0, %v1632_v28, 0.0  ;;  %v1369_v37 = vsel %vm114_vm0, %v3861_v50, 0.0 }
 0x1be   :  { %1358 = vadd.xlane.f32.xlu1 %v1357_v45  ;;  %v3843_v7 = vpop.permute.xlu1 %1518  ;;  %v516_v45 = vadd.f32 %v3304_v34, %v481_v42  ;;  %v2395_v20 = vpop.f32.mrf.mxu1  ;;  %v518_v42 = vadd.f32 %v3304_v34, %v483_v48  ;;  %v1375_v34 = vsel %vm114_vm0, %v3871_v8, 0.0 }
 0x1bf   :  { %2418 = vmatmul.mubr.msk.bf16.gmra.mxu1 %vm114_vm0, %v848_v33  ;;  %v565_v33 = vpack.c.bf16 %v3781_v17, %v3495_v61  ;;  %v1558_v56 = vpop.permute.xlu0 %1557  ;;  %vm1600_vm3 = vcmp.lt.s32.totalorder %v3731_v4, %v3843_v7 }
 0x1c0   :  { %1674 = vadd.xlane.f32.xlu0 %v1673_v18  ;;  %2421 = vmatprep.mubr.msk.bf16.mxu1 %vm2548_vm1, %v5263_v25  ;;  %v3873_v30 = vpop.f32.mrf.mxu1  ;;  %v549_v3 = vadd.f32 %v516_v45, %v3168_v23  ;;  %v551_v63 = vadd.f32 %v518_v42, %v3182_v10  ;;  %v1191_v45 = vld [vmem:[%s5213_s1 + $0xf8] sm:$0xff]  ;;  %vm1613_vm2 = vcmp.lt.s32.totalorder %v3731_v4, %v1558_v56  ;;  %s2251_s1 = sld [smem:[#allocation2 + $0x3]]  ;;  %v1633_v56 = vsel %vm1600_vm3, %v3402_v46, 0.0 }
 0x1c1   :  { %2362 = vmatmul.mubr.msk.bf16.gmra.mxu0 %vm114_vm0, %v565_v33  ;;  %v1631_v33 = vsel %vm1598_vm15, %v3384_v19, 0.0  ;;  %v1646_v52 = vsel %vm1613_vm2, %v3816_v13, 0.0  ;;  %v1682_v13 = vsel %vm114_vm0, %v1633_v56, 0.0 }
 0x1c2   :  { %1364 = vadd.xlane.f32.xlu1 %v1363_v60  ;;  %v3881_v24 = vpop.permute.xlu1 %1524  ;;  %v2396_v18 = vpop.f32.mrf.mxu1  ;;  %v1685_v60 = vsel %vm114_vm0, %v1634_v6, 0.0  ;;  %v3894_v23 = vmul.f32 %v1189_v29, %v549_v3  ;;  %2365 = vmatprep.mubr.msk.bf16.mxu0 %vm2548_vm1, %v5263_v25  ;;  %v3915_v17 = vmul.f32 %v1191_v45, %v551_v63  ;;  %v1640_v6 = vsel %vm1607_vm10, %v3736_v1, 0.0 }
 0x1c3   :  { %v1564_v5 = vpop.permute.xlu0 %1563  ;;  %v1626_v29 = vsel %vm1593_vm11, %v3620_v2, 0.0  ;;  %v1703_v1 = vsel %vm114_vm0, %v1640_v6, 0.0  ;;  %v1642_v18 = vsel %vm1609_vm12, %v3757_v21, 0.0  ;;  %v1644_v21 = vsel %vm1611_vm14, %v3786_v40, 0.0 }
 0x1c4   :  { %1680 = vadd.xlane.f32.xlu0 %v1679_v44  ;;  %v3890_v28 = vpop.f32.mrf.mxu1  ;;  %v1381_v61 = vsel %vm114_vm0, %v3894_v23, 0.0  ;;  %v1661_v9 = vsel %vm114_vm0, %v1626_v29, 0.0  ;;  %v1709_v2 = vsel %vm114_vm0, %v1642_v18, 0.0  ;;  %vm1615_vm4 = vcmp.lt.s32.totalorder %v3731_v4, %v1564_v5 }
 0x1c5   :  { %v1676_v45 = vsel %vm114_vm0, %v1631_v33, 0.0  ;;  %vm1602_vm5 = vcmp.lt.s32.totalorder %v3731_v4, %v3881_v24  ;;  %v1721_v19 = vsel %vm114_vm0, %v1646_v52, 0.0  ;;  %v1648_v7 = vsel %vm1615_vm4, %v3819_v22, 0.0 }
 0x1c6   :  { %1370 = vadd.xlane.f32.xlu1 %v1369_v37  ;;  %v2399_v48 = vpop.f32.mrf.mxu1  ;;  %v3904_v20 = vpop.permute.xlu1 %1530  ;;  %v1387_v37 = vsel %vm114_vm0, %v3915_v17, 0.0  ;;  %v1727_v46 = vsel %vm114_vm0, %v1648_v7, 0.0  ;;  %vm1393_vm14 = vcmask 130048  }
 0x1c7   :  { %v1570_v62 = vpop.permute.xlu0 %1569  ;;  %vm1604_vm7 = vcmp.lt.s32.totalorder %v3731_v4, %v3904_v20 }
 0x1c8   :  { %1686 = vadd.xlane.f32.xlu0 %v1685_v60  ;;  %v3907_v10 = vpop.f32.mrf.mxu1  ;;  %vm1617_vm6 = vcmp.lt.s32.totalorder %v3731_v4, %v1570_v62  ;;  %v1637_v20 = vsel %vm1604_vm7, %v3430_v0, 0.0 }
 0x1c9   :  { %v1650_v22 = vsel %vm1617_vm6, %v3861_v50, 0.0  ;;  %v1694_v29 = vsel %vm114_vm0, %v1637_v20, 0.0 }
 0x1ca   :  { %1376 = vadd.xlane.f32.xlu1 %v1375_v34  ;;  %v2400_v44 = vpop.f32.mrf.mxu1  ;;  %v3927_v3 = vpop.permute.xlu1 %1536  ;;  %v1629_v34 = vsel %vm1596_vm13, %v3368_v43, 0.0  ;;  %v1715_v43 = vsel %vm114_vm0, %v1644_v21, 0.0  ;;  %v1733_v6 = vsel %vm114_vm0, %v1650_v22, 0.0 }
 0x1cb   :  { %v1670_v26 = vsel %vm114_vm0, %v1629_v34, 0.0  ;;  %v1576_v40 = vpop.permute.xlu0 %1575  ;;  %v3973_v44 = vstv %s2251_s1  ;;  %vm1606_vm9 = vcmp.lt.s32.totalorder %v3731_v4, %v3927_v3  ;;  %v1227_v34 = vld [vmem:[%s5214_s2 + $0x8] sm:$0xff] }
 0x1cc   :  { %1692 = vadd.xlane.f32.xlu0 %v1691_v32  ;;  %v3921_v42 = vpop.f32.mrf.mxu1  ;;  %v1635_v32 = vsel %vm1602_vm5, %v3422_v47, 0.0  ;;  %vm1619_vm8 = vcmp.lt.s32.totalorder %v3731_v4, %v1576_v40  ;;  %v964_v50 = vadd.f32 %v3776_v39, %v3973_v44  ;;  %v1639_v3 = vsel %vm1606_vm9, %v3462_v54, 0.0 }
 0x1cd   :  { %v1700_v54 = vsel %vm114_vm0, %v1639_v3, 0.0  ;;  %v566_v3 = vpack.c.bf16 %v3799_v31, %v3516_v38 }
 0x1ce   :  { %1382 = vadd.xlane.f32.xlu1 %v1381_v61  ;;  %v2403_v58 = vpop.f32.mrf.mxu1  ;;  %v3942_v63 = vpop.permute.xlu1 %1542 }
 0x1cf   :  { %v1582_v24 = vpop.permute.xlu0 %1581  ;;  %vm1608_vm11 = vcmp.lt.s32.totalorder %v3731_v4, %v3942_v63  ;;  %2366 = vmatmul.mubr.msk.bf16.gmra.mxu0 %vm114_vm0, %v566_v3 }
 0x1d0   :  { %1698 = vadd.xlane.f32.xlu0 %v1697_v12  ;;  %v3936_v60 = vpop.f32.mrf.mxu1  ;;  %v1688_v12 = vsel %vm114_vm0, %v1635_v32, 0.0  ;;  %vm1621_vm10 = vcmp.lt.s32.totalorder %v3731_v4, %v1582_v24  ;;  %2369 = vmatprep.mubr.msk.bf16.mxu0 %vm2548_vm1, %v5263_v25 }
 0x1d1   :  { %v1654_v39 = vsel %vm1621_vm10, %v3894_v23, 0.0  ;;  %v996_v3 = vadd.f32 %v3936_v60, %v3973_v44 }
 0x1d2   :  { %1388 = vadd.xlane.f32.xlu1 %v1387_v37  ;;  %v2404_v59 = vpop.f32.mrf.mxu1  ;;  %v3954_v48 = vpop.permute.xlu1 %1548  ;;  %v1652_v37 = vsel %vm1619_vm8, %v3871_v8, 0.0  ;;  %v1745_v23 = vsel %vm114_vm0, %v1654_v39, 0.0 }
 0x1d3   :  { %v1739_v18 = vsel %vm114_vm0, %v1652_v37, 0.0  ;;  %v745_v8 = vpop.f32.mrf.mxu0  ;;  %v1641_v59 = vsel %vm1608_vm11, %v3482_v55, 0.0  ;;  %vm1610_vm13 = vcmp.lt.s32.totalorder %v3731_v4, %v3954_v48  ;;  %v980_v55 = vadd.f32 %v3873_v30, %v3973_v44 }
 0x1d4   :  { %1704 = vadd.xlane.f32.xlu0 %v1703_v1  ;;  %v3967_v51 = vpop.f32.mrf.mxu1  ;;  %v1588_v1 = vpop.permute.xlu0 %1587  ;;  %v746_v62 = vadd.f32 %v745_v8, %v3190_v27  ;;  %v1643_v40 = vsel %vm1610_vm13, %v3500_v36, 0.0  ;;  %v988_v36 = vadd.f32 %v3907_v10, %v3973_v44  ;;  %v5268_v8 = vld [vmem:[#allocation10_spill] sm:$0xff] }
 0x1d5   :  { %vm1623_vm12 = vcmp.lt.s32.totalorder %v3731_v4, %v1588_v1  ;;  %v2351_v63 = vpop.f32.mrf.mxu0  ;;  %v1099_v32 = vmax.f32 %v980_v55, 0.0  ;;  %v977_v55 = vadd.f32 %v3849_v15, %v3973_v44  ;;  %v1230_v15 = vld [vmem:[%s5214_s2 + $0x20] sm:$0xff] }
 0x1d6   :  { %1662 = vadd.xlane.f32.xlu1 %v1661_v9  ;;  %v3969_v61 = vpop.permute.xlu1 %1554  ;;  %v2407_v47 = vpop.f32.mrf.mxu1  ;;  %v1095_v9 = vmax.f32 %v964_v50, 0.0  ;;  %v1656_v33 = vsel %vm1623_vm12, %v3915_v17, 0.0  ;;  %v825_v48 = vmax.f32 %v746_v62, 0.0  ;;  %v5270_v62 = vld [vmem:[#allocation11_spill] sm:$0xff] }
 0x1d7   :  { %v748_v52 = vpop.f32.mrf.mxu0  ;;  %vm1612_vm15 = vcmp.lt.s32.totalorder %v3731_v4, %v3969_v61  ;;  %v1751_v17 = vsel %vm114_vm0, %v1656_v33, 0.0  ;;  %v1231_v61 = vld [vmem:[%s5214_s2 + $0x28] sm:$0xff] }
 0x1d8   :  { %1710 = vadd.xlane.f32.xlu0 %v1709_v2  ;;  %v3980_v5 = vpop.f32.mrf.mxu1  ;;  %v972_v2 = vadd.f32 %v3823_v57, %v3973_v44  ;;  %v749_v56 = vadd.f32 %v748_v52, %v3190_v27  ;;  %v1645_v22 = vsel %vm1612_vm15, %v3521_v11, 0.0  ;;  %v4031_v47 = vmul.f32 %v1231_v61, %v1099_v32  ;;  %v1233_v11 = vld [vmem:[%s5214_s2 + $0x38] sm:$0xff] }
 0x1d9   :  { %v1718_v20 = vsel %vm114_vm0, %v1645_v22, 0.0 }
 0x1da   :  { %1671 = vadd.xlane.f32.xlu1 %v1670_v26  ;;  %v2408_v58 = vpop.f32.mrf.mxu1  ;;  %v1561_v0 = vpop.permute.xlu1 %1560  ;;  %v4004_v26 = vmul.f32 %v1227_v34, %v1095_v9  ;;  %v1097_v57 = vmax.f32 %v972_v2, 0.0  ;;  %v826_v7 = vmax.f32 %v749_v56, 0.0  ;;  %v1409_v1 = vsel %vm1393_vm14, %v4031_v47, 0.0 }
 0x1db   :  { %vm1614_vm2 = vcmp.lt.s32.totalorder %v3731_v4, %v1561_v0  ;;  %v961_v34 = vadd.f32 %v5268_v8, %v3973_v44  ;;  %v985_v56 = vadd.f32 %v3890_v28, %v3973_v44  ;;  %v1232_v28 = vld [vmem:[%s5214_s2 + $0x30] sm:$0xff] }
 0x1dc   :  { %1716 = vadd.xlane.f32.xlu0 %v1715_v43  ;;  %v1706_v43 = vsel %vm114_vm0, %v1641_v59, 0.0  ;;  %v1397_v30 = vsel %vm1393_vm14, %v4004_v26, 0.0  ;;  %v1647_v50 = vsel %vm1614_vm2, %v3528_v14, 0.0  ;;  %v2501_v8 = vld [vmem:[%s5215_s3 + $0x10] sm:$0xff] }
 0x1dd   :  { %v1724_v58 = vsel %vm114_vm0, %v1647_v50, 0.0 }
 0x1de   :  { %1677 = vadd.xlane.f32.xlu1 %v1676_v45  ;;  %v1567_v21 = vpop.permute.xlu1 %1566  ;;  %v1229_v45 = vld [vmem:[%s5214_s2 + $0x18] sm:$0xff] }
 0x1df   :  { %vm1616_vm3 = vcmp.lt.s32.totalorder %v3731_v4, %v1567_v21  ;;  %v5271_v21 = vld [vmem:[#allocation9_spill] sm:$0xff] }
 0x1e0   :  { %1722 = vadd.xlane.f32.xlu0 %v1721_v19  ;;  %v2352_v19 = vpop.f32.mrf.mxu0  ;;  %v1649_v0 = vsel %vm1616_vm3, %v3552_v49, 0.0 }
 0x1e1   :  { %v1730_v14 = vsel %vm114_vm0, %v1649_v0, 0.0 }
 0x1e2   :  { %1683 = vadd.xlane.f32.xlu1 %v1682_v13  ;;  %v4020_v13 = vmul.f32 %v1229_v45, %v1097_v57  ;;  %v1573_v24 = vpop.permute.xlu1 %1572  ;;  %v1228_v45 = vld [vmem:[%s5214_s2 + $0x10] sm:$0xff] }
 0x1e3   :  { %vm1618_vm4 = vcmp.lt.s32.totalorder %v3731_v4, %v1573_v24 }
 0x1e4   :  { %1728 = vadd.xlane.f32.xlu0 %v1727_v46  ;;  %v1712_v46 = vsel %vm114_vm0, %v1643_v40, 0.0  ;;  %v1403_v10 = vsel %vm1393_vm14, %v4020_v13, 0.0  ;;  %v1651_v49 = vsel %vm1618_vm4, %v3563_v16, 0.0  ;;  %v1094_v16 = vmax.f32 %v961_v34, 0.0  ;;  %v2502_v34 = vld [vmem:[%s5215_s3 + $0x18] sm:$0xff] }
 0x1e5   :  { %v1736_v38 = vsel %vm114_vm0, %v1651_v49, 0.0 }
 0x1e6   :  { %1689 = vadd.xlane.f32.xlu1 %v1688_v12  ;;  %v849_v12 = vpack.c.bf16 %v826_v7, %v825_v48  ;;  %v1579_v37 = vpop.permute.xlu1 %1578  ;;  %v1098_v48 = vmax.f32 %v977_v55, 0.0  ;;  %v1100_v7 = vmax.f32 %v985_v56, 0.0 }
 0x1e7   :  { %vm1620_vm5 = vcmp.lt.s32.totalorder %v3731_v4, %v1579_v37 }
 0x1e8   :  { %1734 = vadd.xlane.f32.xlu0 %v1733_v6  ;;  %2422 = vmatmul.mubr.msk.bf16.gmra.mxu1 %vm114_vm0, %v849_v12  ;;  %v1101_v6 = vmax.f32 %v988_v36, 0.0  ;;  %v1653_v31 = vsel %vm1620_vm5, %v3573_v35, 0.0  ;;  %v1226_v35 = vld [vmem:[%s5214_s2] sm:$0xff]  ;;  %v4106_v61 = vmul.f32 %v1232_v28, %v1100_v7  ;;  %v1237_v28 = vld [vmem:[%s5214_s2 + $0x58] sm:$0xff] }
 0x1e9   :  { %2425 = vmatprep.mubr.msk.bf16.mxu1 %vm2548_vm1, %v5263_v25  ;;  %v1742_v2 = vsel %vm114_vm0, %v1653_v31, 0.0  ;;  %v4075_v57 = vmul.f32 %v1226_v35, %v1094_v16  ;;  %v2499_v36 = vld [vmem:[%s5215_s3] sm:$0xff] }
 0x1ea   :  { %1695 = vadd.xlane.f32.xlu1 %v1694_v29  ;;  %v4043_v29 = vmul.f32 %v1233_v11, %v1101_v6  ;;  %v1585_v9 = vpop.permute.xlu1 %1584  ;;  %v5272_v31 = vld [vmem:[#allocation5_spill] sm:$0xff] }
 0x1eb   :  { %vm1622_vm6 = vcmp.lt.s32.totalorder %v3731_v4, %v1585_v9  ;;  %v1235_v9 = vld [vmem:[%s5214_s2 + $0x48] sm:$0xff]  ;;  %v567_v60 = vpack.c.bf16 %v3829_v53, %v5272_v31  ;;  %v2503_v53 = vld [vmem:[%s5215_s3 + $0x20] sm:$0xff] }
 0x1ec   :  { %1740 = vadd.xlane.f32.xlu0 %v1739_v18  ;;  %v1415_v18 = vsel %vm1393_vm14, %v4043_v29, 0.0 }
 0x1ed   :  { %2370 = vmatmul.mubr.msk.bf16.gmra.mxu0 %vm114_vm0, %v567_v60 }
 0x1ee   :  { %1701 = vadd.xlane.f32.xlu1 %v1700_v54  ;;  %v1591_v39 = vpop.permute.xlu1 %1590  ;;  %v5269_v54 = vld [vmem:[#allocation7_spill] sm:$0xff]  ;;  %2373 = vmatprep.mubr.msk.bf16.mxu0 %vm2548_vm1, %v5263_v25 }
 0x1ef   :  { %v1655_v59 = vsel %vm1622_vm6, %v5269_v54, 0.0  ;;  %vm1624_vm7 = vcmp.lt.s32.totalorder %v3731_v4, %v1591_v39  ;;  %v2505_v54 = vld [vmem:[%s5215_s3 + $0x30] sm:$0xff] }
 0x1f0   :  { %1746 = vadd.xlane.f32.xlu0 %v1745_v23  ;;  %v969_v23 = vadd.f32 %v5270_v62, %v3973_v44  ;;  %v1748_v63 = vsel %vm114_vm0, %v1655_v59, 0.0  ;;  %v1657_v33 = vsel %vm1624_vm7, %v5271_v21, 0.0  ;;  %v2506_v59 = vld [vmem:[%s5215_s3 + $0x38] sm:$0xff] }
 0x1f1   :  { %v1754_v52 = vsel %vm114_vm0, %v1657_v33, 0.0 }
 0x1f2   :  { %1707 = vadd.xlane.f32.xlu1 %v1706_v43  ;;  %v1096_v43 = vmax.f32 %v969_v23, 0.0  ;;  %v2507_v23 = vld [vmem:[%s5215_s3 + $0x48] sm:$0xff] }
 0x1f4   :  { %1752 = vadd.xlane.f32.xlu0 %v1751_v17  ;;  %v4083_v40 = vmul.f32 %v1228_v45, %v1096_v43  ;;  %v1394_v17 = vsel %vm1393_vm14, %v4075_v57, 0.0 }
 0x1f6   :  { %1713 = vadd.xlane.f32.xlu1 %v1712_v46  ;;  %v1400_v32 = vsel %vm1393_vm14, %v4083_v40, 0.0 }
 0x1f8   :  { %1398 = vadd.xlane.f32.xlu0 %v1397_v30  ;;  %v4094_v30 = vmul.f32 %v1230_v15, %v1098_v48  ;;  %v5273_v48 = vld [vmem:[#allocation6_spill] sm:$0xff] }
 0x1f9   :  { %v568_v56 = vpack.c.bf16 %v3855_v41, %v5273_v48 }
 0x1fa   :  { %1719 = vadd.xlane.f32.xlu1 %v1718_v20  ;;  %v1406_v22 = vsel %vm1393_vm14, %v4094_v30, 0.0  ;;  %v1412_v20 = vsel %vm1393_vm14, %v4106_v61, 0.0 }
 0x1fb   :  { %2374 = vmatmul.mubr.msk.bf16.gmra.mxu0 %vm114_vm0, %v568_v56 }
 0x1fc   :  { %1404 = vadd.xlane.f32.xlu0 %v1403_v10  ;;  %2377 = vmatprep.mubr.msk.bf16.mxu0 %vm2548_vm1, %v5263_v25 }
 0x1fe   :  { %1725 = vadd.xlane.f32.xlu1 %v1724_v58 }
 0x200   :  { %1410 = vadd.xlane.f32.xlu0 %v1409_v1 }
 0x202   :  { %1731 = vadd.xlane.f32.xlu1 %v1730_v14 }
 0x204   :  { %1416 = vadd.xlane.f32.xlu0 %v1415_v18  ;;  %v1103_v18 = vmax.f32 %v996_v3, 0.0 }
 0x206   :  { %1737 = vadd.xlane.f32.xlu1 %v1736_v38  ;;  %v4122_v49 = vmul.f32 %v1235_v9, %v1103_v18  ;;  %v2500_v38 = vld [vmem:[%s5215_s3 + $0x8] sm:$0xff] }
 0x208   :  { %v1421_v39 = vsel %vm1393_vm14, %v4122_v49, 0.0 }
 0x20a   :  { %1743 = vadd.xlane.f32.xlu1 %v1742_v2  ;;  %v2504_v2 = vld [vmem:[%s5215_s3 + $0x28] sm:$0xff] }
 0x20e   :  { %1749 = vadd.xlane.f32.xlu1 %v1748_v63 }
 0x211   :  { %v4092_v19 = vpop.f32.mrf.mxu1 }
 0x212   :  { %1755 = vadd.xlane.f32.xlu1 %v1754_v52 }
 0x213   :  { %v2411_v46 = vpop.f32.mrf.mxu1 }
 0x214   :  { %v993_v46 = vadd.f32 %v3921_v42, %v3973_v44 }
 0x215   :  { %v4104_v24 = vpop.f32.mrf.mxu1 }
 0x216   :  { %1395 = vadd.xlane.f32.xlu1 %v1394_v17  ;;  %v1012_v60 = vadd.f32 %v4104_v24, %v3973_v44 }
 0x217   :  { %v2412_v12 = vpop.f32.mrf.mxu1 }
 0x218   :  { %v753_v6 = vpop.f32.mrf.mxu0 }
 0x219   :  { %v754_v10 = vadd.f32 %v753_v6, %v3190_v27  ;;  %v2508_v6 = vld [vmem:[%s5215_s3 + $0x40] sm:$0xff] }
 0x21a   :  { %1401 = vadd.xlane.f32.xlu1 %v1400_v32  ;;  %1758 = vperm.xlu0 %2460, %v2499_v36   ;;  %v2355_v11 = vpop.f32.mrf.mxu0  ;;  %v1004_v32 = vadd.f32 %v3980_v5, %v3973_v44  ;;  %v1102_v36 = vmax.f32 %v993_v46, 0.0 }
 0x21b   :  { %v827_v37 = vmax.f32 %v754_v10, 0.0  ;;  %v2509_v11 = vld [vmem:[%s5215_s3 + $0x58] sm:$0xff] }
 0x21c   :  { %v756_v50 = vpop.f32.mrf.mxu0  ;;  %v1105_v41 = vmax.f32 %v1004_v32, 0.0 }
 0x21d   :  { %v757_v58 = vadd.f32 %v756_v50, %v3190_v27 }
 0x21e   :  { %1407 = vadd.xlane.f32.xlu1 %v1406_v22  ;;  %v2356_v1 = vpop.f32.mrf.mxu0  ;;  %v1234_v22 = vld [vmem:[%s5214_s2 + $0x40] sm:$0xff]  ;;  %v4179_v12 = vmul.f32 %v1237_v28, %v1105_v41  ;;  %v1009_v28 = vadd.f32 %v4092_v19, %v3973_v44 }
 0x21f   :  { %v828_v0 = vmax.f32 %v757_v58, 0.0  ;;  %v4181_v5 = vmul.f32 %v1234_v22, %v1102_v36  ;;  %v1241_v22 = vld [vmem:[%s5214_s2 + $0x78] sm:$0xff] }
 0x221   :  { %v850_v14 = vpack.c.bf16 %v828_v0, %v827_v37  ;;  %v1418_v42 = vsel %vm1393_vm14, %v4181_v5, 0.0 }
 0x222   :  { %1413 = vadd.xlane.f32.xlu1 %v1412_v20  ;;  %v1427_v20 = vsel %vm1393_vm14, %v4179_v12, 0.0 }
 0x223   :  { %2426 = vmatmul.mubr.msk.bf16.gmra.mxu1 %vm114_vm0, %v850_v14 }
 0x224   :  { %2429 = vmatprep.mubr.msk.bf16.mxu1 %vm2548_vm1, %v5263_v25 }
 0x233   :  { %1761 = vperm.xlu1 %2461, %v2500_v38  }
 0x237   :  { %1764 = vperm.xlu1 %2461, %v2501_v8   ;;  %v1001_v8 = vadd.f32 %v3967_v51, %v3973_v44 }
 0x239   :  { %1422 = vadd.xlane.f32.xlu0 %v1421_v39 }
 0x23b   :  { %1767 = vperm.xlu1 %2461, %v2502_v34   ;;  %v1107_v34 = vmax.f32 %v1012_v60, 0.0 }
 0x23f   :  { %1770 = vperm.xlu1 %2461, %v2503_v53   ;;  %v1239_v53 = vld [vmem:[%s5214_s2 + $0x68] sm:$0xff] }
 0x240   :  { %v4212_v24 = vmul.f32 %v1239_v53, %v1107_v34 }
 0x242   :  { %v1433_v51 = vsel %vm1393_vm14, %v4212_v24, 0.0 }
 0x243   :  { %1773 = vperm.xlu1 %2461, %v2504_v2   ;;  %v1104_v2 = vmax.f32 %v1001_v8, 0.0 }
 0x246   :  { %v4152_v16 = vpop.f32.mrf.mxu1 }
 0x247   :  { %1776 = vperm.xlu1 %2461, %v2505_v54   ;;  %v1236_v54 = vld [vmem:[%s5214_s2 + $0x50] sm:$0xff] }
 0x248   :  { %v2415_v62 = vpop.f32.mrf.mxu1  ;;  %v761_v21 = vpop.f32.mrf.mxu0 }
 0x249   :  { %v762_v33 = vadd.f32 %v761_v21, %v3190_v27  ;;  %v2511_v21 = vld [vmem:[%s5215_s3 + $0x68] sm:$0xff] }
 0x24a   :  { %v4157_v63 = vpop.f32.mrf.mxu1  ;;  %v2359_v43 = vpop.f32.mrf.mxu0 }
 0x24b   :  { %1779 = vperm.xlu1 %2461, %v2506_v59   ;;  %v829_v52 = vmax.f32 %v762_v33, 0.0  ;;  %v4214_v59 = vmul.f32 %v1236_v54, %v1104_v2  ;;  %v1020_v46 = vadd.f32 %v4157_v63, %v3973_v44 }
 0x24c   :  { %v2416_v35 = vpop.f32.mrf.mxu1  ;;  %v764_v55 = vpop.f32.mrf.mxu0 }
 0x24d   :  { %v765_v45 = vadd.f32 %v764_v55, %v3190_v27  ;;  %v1424_v62 = vsel %vm1393_vm14, %v4214_v59, 0.0  ;;  %v1109_v36 = vmax.f32 %v1020_v46, 0.0 }
 0x24e   :  { %v2360_v17 = vpop.f32.mrf.mxu0 }
 0x24f   :  { %1785 = vperm.xlu0 %2460, %v2507_v23   ;;  %v830_v15 = vmax.f32 %v765_v45, 0.0  ;;  %v2510_v23 = vld [vmem:[%s5215_s3 + $0x50] sm:$0xff]  ;;  %v4245_v63 = vmul.f32 %v1241_v22, %v1109_v36 }
 0x251   :  { %v851_v7 = vpack.c.bf16 %v830_v15, %v829_v52 }
 0x253   :  { %2430 = vmatmul.mubr.msk.bf16.gmra.mxu1 %vm114_vm0, %v851_v7 }
 0x254   :  { %2433 = vmatprep.mubr.msk.bf16.mxu1 %vm2548_vm1, %v5263_v25 }
 0x26e   :  { %1428 = vadd.xlane.f32.xlu0 %v1427_v20  ;;  %v1106_v20 = vmax.f32 %v1009_v28, 0.0 }
 0x26f   :  { %1419 = vadd.xlane.f32.xlu1 %v1418_v42  ;;  %v1238_v42 = vld [vmem:[%s5214_s2 + $0x60] sm:$0xff] }
 0x27f   :  { %v4190_v10 = vpop.f32.mrf.mxu1 }
 0x280   :  { %1782 = vperm.xlu1 %2461, %v2508_v6   ;;  %v4247_v6 = vmul.f32 %v1238_v42, %v1106_v20 }
 0x281   :  { %v2419_v50 = vpop.f32.mrf.mxu1  ;;  %v769_v1 = vpop.f32.mrf.mxu0 }
 0x282   :  { %v770_v0 = vadd.f32 %v769_v1, %v3190_v27  ;;  %v1439_v50 = vsel %vm1393_vm14, %v4245_v63, 0.0  ;;  %v2512_v1 = vld [vmem:[%s5215_s3 + $0x60] sm:$0xff] }
 0x283   :  { %v4195_v37 = vpop.f32.mrf.mxu1  ;;  %v2363_v3 = vpop.f32.mrf.mxu0 }
 0x284   :  { %1791 = vperm.xlu0 %2460, %v2509_v11   ;;  %v831_v18 = vmax.f32 %v770_v0, 0.0  ;;  %v5274_v11 = vld [vmem:[#allocation8_spill] sm:$0xff]  ;;  %v1028_v54 = vadd.f32 %v4195_v37, %v3973_v44 }
 0x285   :  { %v2420_v58 = vpop.f32.mrf.mxu1  ;;  %v772_v14 = vpop.f32.mrf.mxu0  ;;  %v569_v19 = vpack.c.bf16 %v5274_v11, %v5274_v11  ;;  %v2513_v3 = vld [vmem:[%s5215_s3 + $0x78] sm:$0xff] }
 0x286   :  { %v773_v9 = vadd.f32 %v772_v14, %v3190_v27  ;;  %v1430_v58 = vsel %vm1393_vm14, %v4247_v6, 0.0 }
 0x287   :  { %v2364_v38 = vpop.f32.mrf.mxu0  ;;  %2378 = vmatmul.mubr.msk.bf16.gmra.mxu0 %vm114_vm0, %v569_v19 }
 0x288   :  { %v832_v31 = vmax.f32 %v773_v9, 0.0 }
 0x28a   :  { %v852_v39 = vpack.c.bf16 %v832_v31, %v831_v18 }
 0x28c   :  { %2434 = vmatmul.mubr.msk.bf16.gmra.mxu1 %vm114_vm0, %v852_v39 }
 0x28d   :  { %2437 = vmatprep.mubr.msk.bf16.mxu1 %vm2548_vm1, %v5263_v25 }
 0x28f   :  { %v777_v52 = vpop.f32.mrf.mxu0 }
 0x290   :  { %v778_v45 = vadd.f32 %v777_v52, %v3190_v27 }
 0x291   :  { %v2367_v48 = vpop.f32.mrf.mxu0 }
 0x292   :  { %v833_v17 = vmax.f32 %v778_v45, 0.0  ;;  %v4289_v48 = vpop.xlane.xlu1 %1298 }
 0x293   :  { %v780_v56 = vpop.f32.mrf.mxu0  ;;  %5275 = vst [vmem:[#allocation10_spill] sm:$0xff] %v4289_v48 }
 0x294   :  { %v781_v15 = vadd.f32 %v780_v56, %v3190_v27 }
 0x295   :  { %v2368_v7 = vpop.f32.mrf.mxu0 }
 0x296   :  { %v834_v32 = vmax.f32 %v781_v15, 0.0  ;;  %v4291_v56 = vpop.xlane.xlu1 %1304 }
 0x298   :  { %v853_v41 = vpack.c.bf16 %v834_v32, %v833_v17  ;;  %v2514_v17 = vld [vmem:[%s5215_s3 + $0x70] sm:$0xff] }
 0x29a   :  { %2438 = vmatmul.mubr.msk.bf16.gmra.mxu1 %vm114_vm0, %v853_v41  ;;  %v2515_v41 = vld [vmem:[%s5215_s3 + $0x88] sm:$0xff] }
 0x29b   :  { %2441 = vmatprep.mubr.msk.bf16.mxu1 %vm2548_vm1, %v5263_v25 }
 0x2a3   :  { %1434 = vadd.xlane.f32.xlu0 %v1433_v51 }
 0x2a4   :  { %1425 = vadd.xlane.f32.xlu1 %v1424_v62  ;;  %v1017_v62 = vadd.f32 %v4152_v16, %v3973_v44 }
 0x2a8   :  { %v4223_v35 = vpop.f32.mrf.mxu1 }
 0x2aa   :  { %v2423_v33 = vpop.f32.mrf.mxu1 }
 0x2ab   :  { %v1108_v33 = vmax.f32 %v1017_v62, 0.0 }
 0x2ac   :  { %v4228_v43 = vpop.f32.mrf.mxu1 }
 0x2ad   :  { %v785_v38 = vpop.f32.mrf.mxu0 }
 0x2ae   :  { %v2424_v55 = vpop.f32.mrf.mxu1  ;;  %v786_v31 = vadd.f32 %v785_v38, %v3190_v27 }
 0x2af   :  { %v2371_v60 = vpop.f32.mrf.mxu0  ;;  %v1240_v55 = vld [vmem:[%s5214_s2 + $0x70] sm:$0xff] }
 0x2b0   :  { %v835_v8 = vmax.f32 %v786_v31, 0.0  ;;  %v4283_v52 = vmul.f32 %v1240_v55, %v1108_v33  ;;  %v1242_v31 = vld [vmem:[%s5214_s2 + $0x80] sm:$0xff]  ;;  %v1033_v55 = vadd.f32 %v4223_v35, %v3973_v44 }
 0x2b1   :  { %v788_v39 = vpop.f32.mrf.mxu0 }
 0x2b2   :  { %v789_v34 = vadd.f32 %v788_v39, %v3190_v27  ;;  %v1436_v45 = vsel %vm1393_vm14, %v4283_v52, 0.0  ;;  %v4324_v39 = vpop.xlane.xlu0 %1295 }
 0x2b3   :  { %v2372_v53 = vpop.f32.mrf.mxu0 }
 0x2b4   :  { %v836_v2 = vmax.f32 %v789_v34, 0.0  ;;  %v2516_v53 = vld [vmem:[%s5215_s3 + $0x80] sm:$0xff] }
 0x2b5   :  { %1788 = vperm.xlu1 %2461, %v2510_v23   ;;  %v1111_v23 = vmax.f32 %v1028_v54, 0.0 }
 0x2b6   :  { %v854_v51 = vpack.c.bf16 %v836_v2, %v835_v8  ;;  %v4328_v8 = vpop.xlane.xlu1 %1310  ;;  %v4337_v54 = vpop.xlane.xlu0 %1301 }
 0x2b7   :  { %5276 = vst [vmem:[#allocation7_spill] sm:$0xff] %v4328_v8 }
 0x2b8   :  { %2442 = vmatmul.mubr.msk.bf16.gmra.mxu1 %vm114_vm0, %v854_v51  ;;  %v2517_v51 = vld [vmem:[%s5215_s3 + $0x98] sm:$0xff] }
 0x2b9   :  { %1797 = vperm.xlu0 %2460, %v2511_v21   ;;  %2445 = vmatprep.mubr.msk.bf16.mxu1 %vm2548_vm1, %v5263_v25  ;;  %v1243_v21 = vld [vmem:[%s5214_s2 + $0x88] sm:$0xff] }
 0x2ba   :  { %v4281_v37 = vmul.f32 %v1243_v21, %v1111_v23  ;;  %v4330_v34 = vpop.xlane.xlu1 %1316 }
 0x2bb   :  { %v793_v7 = vpop.f32.mrf.mxu0  ;;  %5277 = vst [vmem:[#allocation11_spill] sm:$0xff] %v4330_v34 }
 0x2bc   :  { %v1445_v16 = vsel %vm1393_vm14, %v4281_v37, 0.0  ;;  %v794_v22 = vadd.f32 %v793_v7, %v3190_v27  ;;  %v1244_v7 = vld [vmem:[%s5214_s2 + $0x90] sm:$0xff] }
 0x2bd   :  { %v2375_v46 = vpop.f32.mrf.mxu0 }
 0x2be   :  { %v837_v42 = vmax.f32 %v794_v22, 0.0 }
 0x2bf   :  { %v796_v20 = vpop.f32.mrf.mxu0 }
 0x2c0   :  { %v797_v11 = vadd.f32 %v796_v20, %v3190_v27  ;;  %v2518_v20 = vld [vmem:[%s5215_s3 + $0x90] sm:$0xff] }
 0x2c1   :  { %v2376_v19 = vpop.f32.mrf.mxu0 }
 0x2c2   :  { %v2519_v19 = vld [vmem:[%s5215_s3 + $0xa8] sm:$0xff] }
 0x2d8   :  { %1440 = vadd.xlane.f32.xlu0 %v1439_v50  ;;  %v838_v50 = vmax.f32 %v797_v11, 0.0 }
 0x2d9   :  { %1431 = vadd.xlane.f32.xlu1 %v1430_v58 }
 0x2da   :  { %v855_v58 = vpack.c.bf16 %v838_v50, %v837_v42 }
 0x2dc   :  { %2446 = vmatmul.mubr.msk.bf16.gmra.mxu1 %vm114_vm0, %v855_v58 }
 0x2dd   :  { %2449 = vmatprep.mubr.msk.bf16.mxu1 %vm2548_vm1, %v5263_v25 }
 0x2e3   :  { %v4259_v0 = vpop.f32.mrf.mxu1 }
 0x2e5   :  { %v2427_v14 = vpop.f32.mrf.mxu1 }
 0x2e7   :  { %v4264_v18 = vpop.f32.mrf.mxu1 }
 0x2e8   :  { %v1044_v33 = vadd.f32 %v4264_v18, %v3973_v44 }
 0x2e9   :  { %v2428_v9 = vpop.f32.mrf.mxu1 }
 0x2ea   :  { %1794 = vperm.xlu1 %2461, %v2512_v1   ;;  %v1036_v1 = vadd.f32 %v4228_v43, %v3973_v44  ;;  %v1245_v9 = vld [vmem:[%s5214_s2 + $0x98] sm:$0xff] }
 0x2ec   :  { %v1113_v14 = vmax.f32 %v1036_v1, 0.0 }
 0x2ee   :  { %1803 = vperm.xlu0 %2460, %v2513_v3   ;;  %v1025_v3 = vadd.f32 %v4190_v10, %v3973_v44  ;;  %v4318_v60 = vmul.f32 %v1245_v9, %v1113_v14 }
 0x2f0   :  { %v1110_v38 = vmax.f32 %v1025_v3, 0.0  ;;  %v1451_v25 = vsel %vm1393_vm14, %v4318_v60, 0.0 }
 0x2f2   :  { %v4320_v43 = vmul.f32 %v1242_v31, %v1110_v38 }
 0x2f4   :  { %v1442_v10 = vsel %vm1393_vm14, %v4320_v43, 0.0 }
 0x30d   :  { %1446 = vadd.xlane.f32.xlu0 %v1445_v16  ;;  %v1115_v16 = vmax.f32 %v1044_v33, 0.0 }
 0x30e   :  { %1437 = vadd.xlane.f32.xlu1 %v1436_v45  ;;  %v1247_v45 = vld [vmem:[%s5214_s2 + $0xa8] sm:$0xff] }
 0x313   :  { %v4296_v15 = vpop.f32.mrf.mxu1 }
 0x315   :  { %v2431_v32 = vpop.f32.mrf.mxu1 }
 0x316   :  { %v4354_v32 = vmul.f32 %v1247_v45, %v1115_v16 }
 0x317   :  { %v4301_v28 = vpop.f32.mrf.mxu1 }
 0x318   :  { %v1457_v18 = vsel %vm1393_vm14, %v4354_v32, 0.0 }
 0x319   :  { %v2432_v36 = vpop.f32.mrf.mxu1 }
 0x31a   :  { %v4364_v36 = vpop.xlane.xlu1 %1322 }
 0x31b   :  { %5278 = vst [vmem:[#allocation9_spill] sm:$0xff] %v4364_v36  ;;  %v1250_v36 = vld [vmem:[%s5214_s2 + $0xc0] sm:$0xff] }
 0x31e   :  { %v4366_v22 = vpop.xlane.xlu1 %1328 }
 0x31f   :  { %1800 = vperm.xlu1 %2461, %v2514_v17   ;;  %v1112_v17 = vmax.f32 %v1033_v55, 0.0  ;;  %5279 = vst [vmem:[#allocation5_spill] sm:$0xff] %v4366_v22 }
 0x321   :  { %v4356_v46 = vmul.f32 %v1244_v7, %v1112_v17 }
 0x322   :  { %v4394_v16 = vpop.xlane.xlu1 %1334 }
 0x323   :  { %1809 = vperm.xlu0 %2460, %v2515_v41   ;;  %v4360_v41 = vpop.xlane.xlu0 %1307  ;;  %v1448_v35 = vsel %vm1393_vm14, %v4356_v46, 0.0  ;;  %5281 = vst [vmem:[#allocation8_spill] sm:$0xff] %v4394_v16 }
 0x326   :  { %v4404_v7 = vpop.xlane.xlu1 %1340 }
 0x327   :  { %v4373_v11 = vpop.xlane.xlu0 %1313  ;;  %5283 = vst [vmem:[#allocation13_spill] sm:$0xff] %v4404_v7 }
 0x328   :  { %5280 = vst [vmem:[#allocation6_spill] sm:$0xff] %v4373_v11 }
 0x342   :  { %1452 = vadd.xlane.f32.xlu0 %v1451_v25 }
 0x343   :  { %1443 = vadd.xlane.f32.xlu1 %v1442_v10 }
 0x347   :  { %v801_v3 = vpop.f32.mrf.mxu0 }
 0x348   :  { %v802_v14 = vadd.f32 %v801_v3, %v3190_v27  ;;  %v1246_v27 = vld [vmem:[%s5214_s2 + $0xa0] sm:$0xff]  ;;  %v2521_v3 = vld [vmem:[%s5215_s3 + $0xb8] sm:$0xff] }
 0x349   :  { %v2379_v9 = vpop.f32.mrf.mxu0 }
 0x34a   :  { %v839_v38 = vmax.f32 %v802_v14, 0.0 }
 0x34b   :  { %v804_v31 = vpop.f32.mrf.mxu0 }
 0x34c   :  { %v4335_v2 = vpop.f32.mrf.mxu1  ;;  %v856_v25 = vpack.c.bf16 %v839_v38, %v839_v38 }
 0x34d   :  { %v2380_v10 = vpop.f32.mrf.mxu0 }
 0x34e   :  { %v2435_v62 = vpop.f32.mrf.mxu1  ;;  %2450 = vmatmul.mubr.msk.bf16.gmra.mxu1 %vm114_vm0, %v856_v25 }
 0x350   :  { %v4342_v23 = vpop.f32.mrf.mxu1 }
 0x352   :  { %v2436_v21 = vpop.f32.mrf.mxu1 }
 0x353   :  { %v1249_v21 = vld [vmem:[%s5214_s2 + $0xb8] sm:$0xff] }
 0x354   :  { %1806 = vperm.xlu1 %2461, %v2516_v53   ;;  %v1052_v53 = vadd.f32 %v4301_v28, %v3973_v44 }
 0x356   :  { %v1117_v62 = vmax.f32 %v1052_v53, 0.0  ;;  %v1060_v53 = vadd.f32 %v4342_v23, %v3973_v44 }
 0x358   :  { %1815 = vperm.xlu0 %2460, %v2517_v51   ;;  %v1041_v51 = vadd.f32 %v4259_v0, %v3973_v44  ;;  %v4392_v55 = vmul.f32 %v1249_v21, %v1117_v62  ;;  %v4400_v0 = vpop.xlane.xlu0 %1319  ;;  %v1119_v62 = vmax.f32 %v1060_v53, 0.0 }
 0x359   :  { %5282 = vst [vmem:[#allocation12_spill] sm:$0xff] %v4400_v0 }
 0x35a   :  { %v4371_v42 = vpop.f32.mrf.mxu1  ;;  %v1114_v33 = vmax.f32 %v1041_v51, 0.0  ;;  %v1463_v45 = vsel %vm1393_vm14, %v4392_v55, 0.0  ;;  %v1049_v51 = vadd.f32 %v4296_v15, %v3973_v44 }
 0x35c   :  { %v2439_v50 = vpop.f32.mrf.mxu1  ;;  %v4396_v28 = vmul.f32 %v1246_v27, %v1114_v33  ;;  %v1251_v33 = vld [vmem:[%s5214_s2 + $0xc8] sm:$0xff]  ;;  %v1116_v27 = vmax.f32 %v1049_v51, 0.0 }
 0x35e   :  { %v4378_v58 = vpop.f32.mrf.mxu1  ;;  %v1454_v17 = vsel %vm1393_vm14, %v4396_v28, 0.0 }
 0x360   :  { %v2440_v1 = vpop.f32.mrf.mxu1 }
 0x361   :  { %v4417_v1 = vpop.xlane.xlu0 %1325 }
 0x362   :  { %5287 = vst [vmem:[#allocation17_spill] sm:$0xff] %v4417_v1 }
 0x377   :  { %1458 = vadd.xlane.f32.xlu0 %v1457_v18  ;;  %v4406_v18 = vpop.xlane.xlu1 %1346 }
 0x378   :  { %1449 = vadd.xlane.f32.xlu1 %v1448_v35  ;;  %5284 = vst [vmem:[#allocation14_spill] sm:$0xff] %v4406_v18  ;;  %v4415_v50 = vpop.f32.mrf.mxu1 }
 0x37a   :  { %v2443_v14 = vpop.f32.mrf.mxu1 }
 0x37b   :  { %v4408_v35 = vpop.xlane.xlu1 %1352 }
 0x37c   :  { %5285 = vst [vmem:[#allocation15_spill] sm:$0xff] %v4408_v35  ;;  %v4422_v9 = vpop.f32.mrf.mxu1 }
 0x37e   :  { %v2444_v31 = vpop.f32.mrf.mxu1 }
 0x389   :  { %1812 = vperm.xlu1 %2461, %v2518_v20   ;;  %v2520_v20 = vld [vmem:[%s5215_s3 + $0xa0] sm:$0xff] }
 0x38d   :  { %1821 = vperm.xlu0 %2460, %v2519_v19   ;;  %v4413_v19 = vpop.xlane.xlu1 %1358 }
 0x38e   :  { %5286 = vst [vmem:[#allocation16_spill] sm:$0xff] %v4413_v19 }
 0x391   :  { %v4424_v38 = vpop.xlane.xlu1 %1364 }
 0x392   :  { %5288 = vst [vmem:[#allocation18_spill] sm:$0xff] %v4424_v38 }
 0x395   :  { %v4426_v25 = vpop.xlane.xlu1 %1370 }
 0x396   :  { %5289 = vst [vmem:[#allocation19_spill] sm:$0xff] %v4426_v25 }
 0x399   :  { %v4428_v10 = vpop.xlane.xlu1 %1376 }
 0x39a   :  { %5290 = vst [vmem:[#allocation20_spill] sm:$0xff] %v4428_v10 }
 0x39d   :  { %v4434_v21 = vpop.xlane.xlu1 %1382 }
 0x39e   :  { %5291 = vst [vmem:[#allocation21_spill] sm:$0xff] %v4434_v21 }
 0x3ac   :  { %1464 = vadd.xlane.f32.xlu0 %v1463_v45  ;;  %v1248_v45 = vld [vmem:[%s5214_s2 + $0xb0] sm:$0xff] }
 0x3ad   :  { %1455 = vadd.xlane.f32.xlu1 %v1454_v17  ;;  %v4442_v17 = vmul.f32 %v1251_v33, %v1119_v62  ;;  %v4446_v23 = vmul.f32 %v1248_v45, %v1116_v27  ;;  %v2522_v62 = vld [vmem:[%s5215_s3 + $0xb0] sm:$0xff]  ;;  %v4463_v33 = vpop.f32.mrf.mxu1 }
 0x3af   :  { %v1469_v15 = vsel %vm1393_vm14, %v4442_v17, 0.0  ;;  %v1460_v14 = vsel %vm1393_vm14, %v4446_v23, 0.0 }
 0x3be   :  { %1818 = vperm.xlu1 %2461, %v2520_v20   ;;  %v4444_v20 = vpop.xlane.xlu1 %1388 }
 0x3bf   :  { %5292 = vst [vmem:[#allocation22_spill] sm:$0xff] %v4444_v20 }
 0x3c2   :  { %1827 = vperm.xlu0 %2460, %v2521_v3   ;;  %v4450_v3 = vpop.xlane.xlu0 %1331  ;;  %v4454_v31 = vpop.xlane.xlu1 %1662 }
 0x3c3   :  { %5293 = vst [vmem:[#allocation23_spill] sm:$0xff] %v4450_v3  ;;  %5294 = vst [vmem:[#allocation24_spill] sm:$0xff] %v4454_v31 }
 0x3c6   :  { %v4456_v53 = vpop.xlane.xlu1 %1671  ;;  %v4465_v27 = vpop.xlane.xlu0 %1337 }
 0x3c7   :  { %5296 = vst [vmem:[#allocation26_spill] sm:$0xff] %v4465_v27 }
 0x3ca   :  { %v4458_v51 = vpop.xlane.xlu1 %1677  ;;  %v4474_v10 = vpop.xlane.xlu0 %1343 }
 0x3cb   :  { %5295 = vst [vmem:[#allocation25_spill] sm:$0xff] %v4458_v51  ;;  %5298 = vst [vmem:[#allocation28_spill] sm:$0xff] %v4474_v10 }
 0x3ce   :  { %v4467_v45 = vpop.xlane.xlu1 %1683 }
 0x3cf   :  { %5297 = vst [vmem:[#allocation27_spill] sm:$0xff] %v4467_v45 }
 0x3d2   :  { %v4476_v25 = vpop.xlane.xlu1 %1689 }
 0x3d3   :  { %5299 = vst [vmem:[#allocation29_spill] sm:$0xff] %v4476_v25  ;;  %v1073_v25 = vadd.f32 %v4415_v50, %v3973_v44 }
 0x3d6   :  { %v4480_v38 = vpop.xlane.xlu1 %1695 }
 0x3d7   :  { %5301 = vst [vmem:[#allocation31_spill] sm:$0xff] %v4480_v38 }
 0x3da   :  { %v4484_v35 = vpop.xlane.xlu1 %1701 }
 0x3db   :  { %5303 = vst [vmem:[#allocation33_spill] sm:$0xff] %v4484_v35 }
 0x3de   :  { %v4495_v16 = vpop.xlane.xlu1 %1707 }
 0x3df   :  { %5305 = vst [vmem:[#allocation35_spill] sm:$0xff] %v4495_v16 }
 0x3e1   :  { %1470 = vadd.xlane.f32.xlu0 %v1469_v15  ;;  %v2447_v15 = vpop.f32.mrf.mxu1 }
 0x3e2   :  { %1461 = vadd.xlane.f32.xlu1 %v1460_v14  ;;  %v2523_v14 = vld [vmem:[%s5215_s3 + $0xc8] sm:$0xff]  ;;  %v1068_v15 = vadd.f32 %v4378_v58, %v3973_v44 }
 0x3e3   :  { %v4472_v20 = vpop.f32.mrf.mxu1 }
 0x3e4   :  { %v1121_v18 = vmax.f32 %v1068_v15, 0.0 }
 0x3e5   :  { %v2448_v21 = vpop.f32.mrf.mxu1 }
 0x3e6   :  { %v1253_v21 = vld [vmem:[%s5214_s2 + $0xd8] sm:$0xff] }
 0x3e7   :  { %v4500_v34 = vmul.f32 %v1253_v21, %v1121_v18 }
 0x3e9   :  { %5306 = vst [vmem:[#allocation36_spill] sm:$0xff] %v4500_v34  ;;  %v1475_v15 = vsel %vm1393_vm14, %v4500_v34, 0.0 }
 0x3f3   :  { %1824 = vperm.xlu1 %2461, %v2522_v62   ;;  %v4478_v62 = vpop.xlane.xlu0 %1349 }
 0x3f4   :  { %5300 = vst [vmem:[#allocation30_spill] sm:$0xff] %v4478_v62  ;;  %v1252_v62 = vld [vmem:[%s5214_s2 + $0xd0] sm:$0xff] }
 0x3f7   :  { %1833 = vperm.xlu0 %2460, %v2523_v14   ;;  %v4482_v19 = vpop.xlane.xlu0 %1355  ;;  %v1057_v14 = vadd.f32 %v4335_v2, %v3973_v44  ;;  %v4506_v2 = vpop.xlane.xlu1 %1713 }
 0x3f8   :  { %5302 = vst [vmem:[#allocation32_spill] sm:$0xff] %v4482_v19  ;;  %5308 = vst [vmem:[#allocation38_spill] sm:$0xff] %v4506_v2 }
 0x3f9   :  { %v1118_v22 = vmax.f32 %v1057_v14, 0.0 }
 0x3fb   :  { %v4493_v7 = vpop.xlane.xlu0 %1361  ;;  %v4502_v58 = vmul.f32 %v1250_v36, %v1118_v22  ;;  %v4514_v31 = vpop.xlane.xlu1 %1719 }
 0x3fc   :  { %5304 = vst [vmem:[#allocation34_spill] sm:$0xff] %v4493_v7  ;;  %5310 = vst [vmem:[#allocation40_spill] sm:$0xff] %v4514_v31 }
 0x3fd   :  { %v1466_v48 = vsel %vm1393_vm14, %v4502_v58, 0.0 }
 0x3ff   :  { %v4504_v8 = vpop.xlane.xlu0 %1367  ;;  %v4518_v36 = vpop.xlane.xlu1 %1725 }
 0x400   :  { %5307 = vst [vmem:[#allocation37_spill] sm:$0xff] %v4504_v8  ;;  %5312 = vst [vmem:[#allocation42_spill] sm:$0xff] %v4518_v36 }
 0x403   :  { %v4512_v14 = vpop.xlane.xlu0 %1373  ;;  %v4522_v21 = vpop.xlane.xlu1 %1731 }
 0x404   :  { %5309 = vst [vmem:[#allocation39_spill] sm:$0xff] %v4512_v14  ;;  %5314 = vst [vmem:[#allocation44_spill] sm:$0xff] %v4522_v21  ;;  %v2525_v14 = vld [vmem:[%s5215_s3 + $0xd8] sm:$0xff] }
 0x407   :  { %v4516_v18 = vpop.xlane.xlu0 %1379 }
 0x408   :  { %5311 = vst [vmem:[#allocation41_spill] sm:$0xff] %v4516_v18 }
 0x40b   :  { %v4520_v22 = vpop.xlane.xlu0 %1385 }
 0x40c   :  { %5313 = vst [vmem:[#allocation43_spill] sm:$0xff] %v4520_v22 }
 0x40f   :  { %v4527_v8 = vpop.xlane.xlu0 %1391 }
 0x410   :  { %5315 = vst [vmem:[#allocation45_spill] sm:$0xff] %v4527_v8 }
 0x413   :  { %v4534_v18 = vpop.xlane.xlu0 %1659 }
 0x416   :  { %1476 = vadd.xlane.f32.xlu0 %v1475_v15  ;;  %v2524_v15 = vld [vmem:[%s5215_s3 + $0xc0] sm:$0xff] }
 0x417   :  { %1467 = vadd.xlane.f32.xlu1 %v1466_v48  ;;  %v4529_v48 = vpop.xlane.xlu1 %1737  ;;  %v4538_v22 = vpop.xlane.xlu0 %1665 }
 0x418   :  { %5316 = vst [vmem:[#allocation46_spill] sm:$0xff] %v4529_v48  ;;  %v1065_v48 = vadd.f32 %v4371_v42, %v3973_v44 }
 0x41b   :  { %v4536_v7 = vpop.xlane.xlu1 %1743  ;;  %v4542_v36 = vpop.xlane.xlu0 %1668 }
 0x41c   :  { %5317 = vst [vmem:[#allocation47_spill] sm:$0xff] %v4536_v7  ;;  %v1255_v7 = vld [vmem:[%s5214_s2 + $0xe8] sm:$0xff] }
 0x41f   :  { %v4540_v21 = vpop.xlane.xlu1 %1749 }
 0x420   :  { %5318 = vst [vmem:[#allocation48_spill] sm:$0xff] %v4540_v21  ;;  %v1120_v21 = vmax.f32 %v1065_v48, 0.0 }
 0x422   :  { %v4564_v2 = vmul.f32 %v1252_v62, %v1120_v21 }
 0x423   :  { %v4546_v8 = vpop.xlane.xlu1 %1755 }
 0x424   :  { %5319 = vst [vmem:[#allocation49_spill] sm:$0xff] %v4546_v8 }
 0x427   :  { %v4555_v31 = vpop.xlane.xlu1 %1395 }
 0x428   :  { %1830 = vperm.xlu1 %2461, %v2524_v15   ;;  %v1076_v15 = vadd.f32 %v4422_v9, %v3973_v44 }
 0x42a   :  { %v1123_v19 = vmax.f32 %v1076_v15, 0.0 }
 0x42b   :  { %v4568_v15 = vpop.xlane.xlu1 %1401 }
 0x42c   :  { %1839 = vperm.xlu0 %2460, %v2525_v14   ;;  %v4550_v14 = vpop.xlane.xlu0 %1674  ;;  %v4560_v9 = vmul.f32 %v1255_v7, %v1123_v19 }
 0x42d   :  { %5320 = vst [vmem:[#allocation50_spill] sm:$0xff] %v4550_v14  ;;  %v1472_v14 = vsel %vm1393_vm14, %v4564_v2, 0.0 }
 0x42e   :  { %5321 = vst [vmem:[#allocation51_spill] sm:$0xff] %v4560_v9  ;;  %v1481_v42 = vsel %vm1393_vm14, %v4560_v9, 0.0 }
 0x42f   :  { %v4574_v10 = vpop.xlane.xlu1 %1407 }
 0x430   :  { %v4562_v8 = vpop.xlane.xlu0 %1680  ;;  %5324 = vst [vmem:[#allocation54_spill] sm:$0xff] %v4574_v10 }
 0x431   :  { %5322 = vst [vmem:[#allocation52_spill] sm:$0xff] %v4562_v8  ;;  %v4587_v8 = vpop.f32.mrf.mxu1 }
 0x433   :  { %v4578_v19 = vpop.xlane.xlu1 %1413 }
 0x434   :  { %v4572_v48 = vpop.xlane.xlu0 %1686  ;;  %5326 = vst [vmem:[#allocation56_spill] sm:$0xff] %v4578_v19 }
 0x435   :  { %5323 = vst [vmem:[#allocation53_spill] sm:$0xff] %v4572_v48  ;;  %v2451_v48 = vpop.f32.mrf.mxu1 }
 0x437   :  { %v4582_v21 = vpop.permute.xlu1 %1761  ;;  %v1091_v27 = vpop.f32.mrf.mxu1 }
 0x438   :  { %v4576_v7 = vpop.xlane.xlu0 %1692  ;;  %v1257_v27 = vld [vmem:[%s5214_s2 + $0xf8] sm:$0xff] }
 0x439   :  { %5325 = vst [vmem:[#allocation55_spill] sm:$0xff] %v4576_v7  ;;  %v2527_v7 = vld [vmem:[%s5215_s3 + $0xe8] sm:$0xff] }
 0x43b   :  { %v1765_v16 = vpop.permute.xlu1 %1764 }
 0x43c   :  { %v4580_v62 = vpop.xlane.xlu0 %1698  ;;  %vm1858_vm1 = vcmp.lt.s32.totalorder %v3731_v4, %v1765_v16 }
 0x43d   :  { %5327 = vst [vmem:[#allocation57_spill] sm:$0xff] %v4580_v62  ;;  %v2452_v62 = vpop.f32.mrf.mxu1 }
 0x43e   :  { %v1122_v62 = vmax.f32 %v1073_v25, 0.0 }
 0x43f   :  { %v1768_v3 = vpop.permute.xlu1 %1767 }
 0x440   :  { %vm1859_vm8 = vcmp.lt.s32.totalorder %v3731_v4, %v1768_v3 }
 0x443   :  { %v1771_v1 = vpop.permute.xlu1 %1770 }
 0x444   :  { %vm1860_vm9 = vcmp.lt.s32.totalorder %v3731_v4, %v1771_v1 }
 0x447   :  { %v4602_v48 = vpop.permute.xlu1 %1773 }
 0x44b   :  { %1482 = vadd.xlane.f32.xlu0 %v1481_v42  ;;  %v2526_v42 = vld [vmem:[%s5215_s3 + $0xd0] sm:$0xff] }
 0x44c   :  { %1473 = vadd.xlane.f32.xlu1 %v1472_v14  ;;  %v4589_v14 = vpop.xlane.xlu0 %1704 }
 0x44d   :  { %5328 = vst [vmem:[#allocation58_spill] sm:$0xff] %v4589_v14  ;;  %v1084_v14 = vadd.f32 %v4472_v20, %v3973_v44 }
 0x44f   :  { %v1125_v9 = vmax.f32 %v1084_v14, 0.0 }
 0x450   :  { %v4594_v35 = vpop.xlane.xlu0 %1710 }
 0x451   :  { %5329 = vst [vmem:[#allocation59_spill] sm:$0xff] %v4594_v35  ;;  %v4614_v35 = vmul.f32 %v1257_v27, %v1125_v9 }
 0x453   :  { %5333 = vst [vmem:[#allocation63_spill] sm:$0xff] %v4614_v35  ;;  %v1487_v50 = vsel %vm1393_vm14, %v4614_v35, 0.0 }
 0x454   :  { %v4596_v38 = vpop.xlane.xlu0 %1716 }
 0x455   :  { %5330 = vst [vmem:[#allocation60_spill] sm:$0xff] %v4596_v38  ;;  %v1777_v38 = vpop.permute.xlu1 %1776 }
 0x456   :  { %vm1862_vm10 = vcmp.lt.s32.totalorder %v3731_v4, %v1777_v38 }
 0x459   :  { %v4622_v14 = vpop.permute.xlu1 %1779 }
 0x45d   :  { %1836 = vperm.xlu1 %2461, %v2526_v42   ;;  %v4598_v42 = vpop.xlane.xlu0 %1722  ;;  %v4628_v0 = vpop.xlane.xlu1 %1419 }
 0x45e   :  { %5331 = vst [vmem:[#allocation61_spill] sm:$0xff] %v4598_v42  ;;  %v1254_v42 = vld [vmem:[%s5214_s2 + $0xe0] sm:$0xff]  ;;  %5336 = vst [vmem:[#allocation66_spill] sm:$0xff] %v4628_v0 }
 0x45f   :  { %v4616_v20 = vmul.f32 %v1254_v42, %v1122_v62 }
 0x461   :  { %1845 = vperm.xlu0 %2460, %v2527_v7   ;;  %v4609_v7 = vpop.xlane.xlu0 %1728  ;;  %v1478_v25 = vsel %vm1393_vm14, %v4616_v20, 0.0  ;;  %v1783_v42 = vpop.permute.xlu1 %1782 }
 0x462   :  { %5332 = vst [vmem:[#allocation62_spill] sm:$0xff] %v4609_v7  ;;  %vm1864_vm11 = vcmp.lt.s32.totalorder %v3731_v4, %v1783_v42 }
 0x463   :  { %v1897_v1 = vsel %vm1864_vm11, %v4181_v5, 0.0 }
 0x465   :  { %v4618_v19 = vpop.xlane.xlu0 %1734  ;;  %v4632_v27 = vpop.xlane.xlu1 %1425 }
 0x466   :  { %5334 = vst [vmem:[#allocation64_spill] sm:$0xff] %v4618_v19  ;;  %5338 = vst [vmem:[#allocation68_spill] sm:$0xff] %v4632_v27  ;;  %v2528_v19 = vld [vmem:[%s5215_s3 + $0xe0] sm:$0xff] }
 0x469   :  { %v4626_v7 = vpop.xlane.xlu0 %1740  ;;  %v1789_v35 = vpop.permute.xlu1 %1788 }
 0x46a   :  { %5335 = vst [vmem:[#allocation65_spill] sm:$0xff] %v4626_v7  ;;  %vm1866_vm12 = vcmp.lt.s32.totalorder %v3731_v4, %v1789_v35 }
 0x46b   :  { %v1899_v38 = vsel %vm1866_vm12, %v4214_v59, 0.0 }
 0x46d   :  { %v4630_v9 = vpop.xlane.xlu0 %1746  ;;  %v4644_v7 = vpop.xlane.xlu1 %1431 }
 0x46e   :  { %5337 = vst [vmem:[#allocation67_spill] sm:$0xff] %v4630_v9  ;;  %5341 = vst [vmem:[#allocation71_spill] sm:$0xff] %v4644_v7 }
 0x471   :  { %v4634_v62 = vpop.xlane.xlu0 %1752  ;;  %v1795_v27 = vpop.permute.xlu1 %1794 }
 0x472   :  { %5339 = vst [vmem:[#allocation69_spill] sm:$0xff] %v4634_v62  ;;  %vm1868_vm13 = vcmp.lt.s32.totalorder %v3731_v4, %v1795_v27 }
 0x473   :  { %v1901_v35 = vsel %vm1868_vm13, %v4247_v6, 0.0 }
 0x475   :  { %v4650_v62 = vpop.xlane.xlu1 %1437 }
 0x476   :  { %5343 = vst [vmem:[#allocation73_spill] sm:$0xff] %v4650_v62 }
 0x480   :  { %1488 = vadd.xlane.f32.xlu0 %v1487_v50  ;;  %v4639_v50 = vpop.xlane.xlu0 %1398 }
 0x481   :  { %1479 = vadd.xlane.f32.xlu1 %v1478_v25  ;;  %5340 = vst [vmem:[#allocation70_spill] sm:$0xff] %v4639_v50  ;;  %v2529_v25 = vld [vmem:[%s5215_s3 + $0xf8] sm:$0xff]  ;;  %v1081_v50 = vadd.f32 %v4463_v33, %v3973_v44  ;;  %v1891_v33 = vsel %vm1858_vm1, %v4083_v40, 0.0  ;;  %v1893_v40 = vsel %vm1860_vm9, %v4094_v30, 0.0  ;;  %v2530_v30 = vld [vmem:[%s5215_s3 + $0xf0] sm:$0xff]  ;;  %vm1857_vm1 = vcmp.lt.s32.totalorder %v3731_v4, %v4582_v21 }
 0x482   :  { %v1934_v3 = vsel %vm1393_vm14, %v1893_v40, 0.0  ;;  %vm1863_vm9 = vcmp.lt.s32.totalorder %v3731_v4, %v4622_v14 }
 0x483   :  { %v1124_v11 = vmax.f32 %v1081_v50, 0.0  ;;  %v1895_v50 = vsel %vm1862_vm10, %v4106_v61, 0.0  ;;  %v1946_v61 = vsel %vm1393_vm14, %v1897_v1, 0.0  ;;  %v1896_v21 = vsel %vm1863_vm9, %v4043_v29, 0.0 }
 0x484   :  { %v4646_v9 = vpop.xlane.xlu0 %1404 }
 0x488   :  { %v4648_v0 = vpop.xlane.xlu0 %1410 }
 0x489   :  { %5342 = vst [vmem:[#allocation72_spill] sm:$0xff] %v4648_v0 }
 0x48c   :  { %v4652_v45 = vpop.xlane.xlu0 %1416 }
 0x48d   :  { %5344 = vst [vmem:[#allocation74_spill] sm:$0xff] %v4652_v45 }
 0x490   :  { %v1759_v34 = vpop.permute.xlu0 %1758 }
 0x491   :  { %vm1856_vm0 = vcmp.lt.s32.totalorder %v3731_v4, %v1759_v34 }
 0x492   :  { %1842 = vperm.xlu1 %2461, %v2528_v19   ;;  %v1801_v19 = vpop.permute.xlu1 %1800  ;;  %v1889_v0 = vsel %vm1856_vm0, %v4075_v57, 0.0  ;;  %v1928_v57 = vsel %vm1393_vm14, %v1891_v33, 0.0 }
 0x493   :  { %v1922_v45 = vsel %vm1393_vm14, %v1889_v0, 0.0  ;;  %vm1870_vm15 = vcmp.lt.s32.totalorder %v3731_v4, %v1801_v19 }
 0x494   :  { %v4686_v33 = vpop.xlane.xlu0 %1422  ;;  %v1903_v59 = vsel %vm1870_vm15, %v4283_v52, 0.0 }
 0x495   :  { %v1964_v40 = vsel %vm1393_vm14, %v1903_v59, 0.0 }
 0x496   :  { %1851 = vperm.xlu0 %2460, %v2529_v25   ;;  %v4656_v10 = vpop.xlane.xlu1 %1443  ;;  %v1256_v25 = vld [vmem:[%s5214_s2 + $0xf0] sm:$0xff] }
 0x497   :  { %v4663_v62 = vmul.f32 %v1256_v25, %v1124_v11  ;;  %v1892_v11 = vsel %vm1859_vm8, %v4020_v13, 0.0  ;;  %v1940_v13 = vsel %vm1393_vm14, %v1895_v50, 0.0  ;;  %vm1861_vm8 = vcmp.lt.s32.totalorder %v3731_v4, %v4602_v48 }
 0x498   :  { %v1931_v0 = vsel %vm1393_vm14, %v1892_v11, 0.0  ;;  %v4697_v5 = vpop.permute.xlu0 %1785  ;;  %v1943_v48 = vsel %vm1393_vm14, %v1896_v21, 0.0 }
 0x499   :  { %v1484_v34 = vsel %vm1393_vm14, %v4663_v62, 0.0  ;;  %vm1865_vm10 = vcmp.lt.s32.totalorder %v3731_v4, %v4697_v5 }
 0x49a   :  { %v1807_v7 = vpop.permute.xlu1 %1806 }
 0x49b   :  { %vm1872_vm2 = vcmp.lt.s32.totalorder %v3731_v4, %v1807_v7  ;;  %v1089_v7 = vadd.f32 %v4587_v8, %v3973_v44  ;;  %v1258_v44 = vld [vmem:[%s5214_s2 + $0x100] sm:$0xff] }
 0x49c   :  { %v4702_v11 = vpop.xlane.xlu0 %1428 }
 0x49e   :  { %v4668_v51 = vpop.xlane.xlu1 %1449 }
 0x4a0   :  { %v4711_v6 = vpop.permute.xlu0 %1791 }
 0x4a1   :  { %vm1867_vm11 = vcmp.lt.s32.totalorder %v3731_v4, %v4711_v6 }
 0x4a2   :  { %v1813_v16 = vpop.permute.xlu1 %1812  ;;  %v1900_v29 = vsel %vm1867_vm11, %v4179_v12, 0.0 }
 0x4a3   :  { %vm1874_vm3 = vcmp.lt.s32.totalorder %v3731_v4, %v1813_v16  ;;  %v1955_v5 = vsel %vm1393_vm14, %v1900_v29, 0.0 }
 0x4a4   :  { %v1907_v50 = vsel %vm1874_vm3, %v4356_v46, 0.0  ;;  %v4716_v52 = vpop.xlane.xlu0 %1434  ;;  %v1126_v46 = vmax.f32 %v1089_v7, 0.0  ;;  %vm2087_vm3 = vcmask 7168  }
 0x4a8   :  { %v4726_v16 = vpop.permute.xlu0 %1797 }
 0x4a9   :  { %vm1869_vm12 = vcmp.lt.s32.totalorder %v3731_v4, %v4726_v16 }
 0x4b5   :  { %1923 = vadd.xlane.f32.xlu0 %v1922_v45  ;;  %v4679_v45 = vpop.xlane.xlu1 %1455 }
 0x4b6   :  { %1485 = vadd.xlane.f32.xlu1 %v1484_v34  ;;  %v1952_v34 = vsel %vm1393_vm14, %v1899_v38, 0.0 }
 0x4b9   :  { %1929 = vadd.xlane.f32.xlu0 %v1928_v57  ;;  %v1819_v25 = vpop.permute.xlu1 %1818 }
 0x4ba   :  { %vm1876_vm4 = vcmp.lt.s32.totalorder %v3731_v4, %v1819_v25  ;;  %v4736_v25 = vmul.f32 %v1258_v44, %v1126_v46 }
 0x4bb   :  { %v1909_v1 = vsel %vm1876_vm4, %v4396_v28, 0.0  ;;  %v4734_v28 = vpop.xlane.xlu0 %1440  ;;  %vm2121_vm4 = vcmask 15360  }
 0x4bd   :  { %1932 = vadd.xlane.f32.xlu0 %v1931_v0  ;;  %v4694_v42 = vpop.xlane.xlu1 %1461  ;;  %v1958_v0 = vsel %vm1393_vm14, %v1901_v35, 0.0 }
 0x4bf   :  { %v1804_v59 = vpop.permute.xlu0 %1803 }
 0x4c0   :  { %vm1871_vm13 = vcmp.lt.s32.totalorder %v3731_v4, %v1804_v59 }
 0x4c1   :  { %1935 = vadd.xlane.f32.xlu0 %v1934_v3  ;;  %v1825_v57 = vpop.permute.xlu1 %1824  ;;  %v1905_v3 = vsel %vm1872_vm2, %v4320_v43, 0.0  ;;  %v1976_v43 = vsel %vm1393_vm14, %v1907_v50, 0.0  ;;  %v2531_v50 = vld [vmem:[%s5215_s3 + $0x100] sm:$0xff]  ;;  %v1904_v6 = vsel %vm1871_vm13, %v4245_v63, 0.0 }
 0x4c2   :  { %v1970_v19 = vsel %vm1393_vm14, %v1905_v3, 0.0  ;;  %vm1878_vm5 = vcmp.lt.s32.totalorder %v3731_v4, %v1825_v57  ;;  %v1490_v57 = vsel %vm1393_vm14, %v4736_v25, 0.0  ;;  %v1967_v12 = vsel %vm1393_vm14, %v1904_v6, 0.0 }
 0x4c3   :  { %v1911_v38 = vsel %vm1878_vm5, %v4446_v23, 0.0  ;;  %v4746_v3 = vpop.xlane.xlu0 %1446 }
 0x4c5   :  { %1941 = vadd.xlane.f32.xlu0 %v1940_v13  ;;  %v4707_v27 = vpop.xlane.xlu1 %1467 }
 0x4c7   :  { %1848 = vperm.xlu1 %2461, %v2530_v30  }
 0x4c9   :  { %1947 = vadd.xlane.f32.xlu0 %v1946_v61  ;;  %v1831_v13 = vpop.permute.xlu1 %1830  ;;  %v1982_v61 = vsel %vm1393_vm14, %v1909_v1, 0.0 }
 0x4ca   :  { %vm1880_vm6 = vcmp.lt.s32.totalorder %v3731_v4, %v1831_v13 }
 0x4cb   :  { %v1913_v35 = vsel %vm1880_vm6, %v4502_v58, 0.0  ;;  %vm2155_vm6 = vcmask 23552  }
 0x4cc   :  { %v1994_v23 = vsel %vm1393_vm14, %v1913_v35, 0.0 }
 0x4cd   :  { %1953 = vadd.xlane.f32.xlu0 %v1952_v34  ;;  %v1988_v34 = vsel %vm1393_vm14, %v1911_v38, 0.0 }
 0x4d1   :  { %1959 = vadd.xlane.f32.xlu0 %v1958_v0 }
 0x4d5   :  { %1965 = vadd.xlane.f32.xlu0 %v1964_v40  ;;  %v4723_v30 = vpop.xlane.xlu1 %1473 }
 0x4d9   :  { %1971 = vadd.xlane.f32.xlu0 %v1970_v19  ;;  %v1837_v8 = vpop.permute.xlu1 %1836  ;;  %v1810_v19 = vpop.permute.xlu0 %1809 }
 0x4da   :  { %vm1882_vm7 = vcmp.lt.s32.totalorder %v3731_v4, %v1837_v8  ;;  %vm1873_vm15 = vcmp.lt.s32.totalorder %v3731_v4, %v1810_v19  ;;  %v2023_v19 = vsub.f32 %v4337_v54, %v4538_v22 }
 0x4db   :  { %v1915_v0 = vsel %vm1882_vm7, %v4564_v2, 0.0  ;;  %v1906_v16 = vsel %vm1873_vm15, %v4281_v37, 0.0  ;;  %vm2189_vm7 = vcmask 31744  }
 0x4dc   :  { %v2000_v40 = vsel %vm1393_vm14, %v1915_v0, 0.0  ;;  %v1973_v63 = vsel %vm1393_vm14, %v1906_v16, 0.0  ;;  %v2090_v54 = vsel %vm2087_vm3, %v4538_v22, %v2023_v19  ;;  %v5350_v19 = vld [vmem:[#allocation12_spill] sm:$0xff] }
 0x4dd   :  { %1977 = vadd.xlane.f32.xlu0 %v1976_v43  ;;  %v4748_v58 = vpop.xlane.xlu0 %1452 }
 0x4e1   :  { %1983 = vadd.xlane.f32.xlu0 %v1982_v61  ;;  %v1816_v13 = vpop.permute.xlu0 %1815 }
 0x4e2   :  { %vm1875_vm2 = vcmp.lt.s32.totalorder %v3731_v4, %v1816_v13 }
 0x4e5   :  { %1989 = vadd.xlane.f32.xlu0 %v1988_v34  ;;  %v4753_v7 = vpop.xlane.xlu0 %1458  ;;  %v1890_v34 = vsel %vm1857_vm1, %v4004_v26, 0.0 }
 0x4e9   :  { %1995 = vadd.xlane.f32.xlu0 %v1994_v23  ;;  %v4755_v2 = vpop.permute.xlu0 %1821  ;;  %v1925_v23 = vsel %vm1393_vm14, %v1890_v34, 0.0 }
 0x4ea   :  { %vm1877_vm5 = vcmp.lt.s32.totalorder %v3731_v4, %v4755_v2 }
 0x4eb   :  { %1491 = vadd.xlane.f32.xlu1 %v1490_v57 }
 0x4ed   :  { %2001 = vadd.xlane.f32.xlu0 %v2000_v40  ;;  %v4759_v1 = vpop.xlane.xlu0 %1464 }
 0x4f1   :  { %v4764_v44 = vpop.permute.xlu0 %1827 }
 0x4f5   :  { %v4766_v8 = vpop.xlane.xlu0 %1470 }
 0x4f9   :  { %v4771_v35 = vpop.permute.xlu0 %1833 }
 0x4fc   :  { %1854 = vperm.xlu1 %2461, %v2531_v50   ;;  %v1902_v50 = vsel %vm1869_vm12, %v4212_v24, 0.0  ;;  %v2021_v24 = vsub.f32 %v4324_v39, %v4534_v18 }
 0x4fd   :  { %v4777_v57 = vpop.xlane.xlu0 %1476 }
 0x4fe   :  { %v2088_v37 = vsel %vm2087_vm3, %v4534_v18, %v2021_v24  ;;  %v5348_v24 = vld [vmem:[#allocation36_spill] sm:$0xff] }
 0x501   :  { %v4785_v26 = vpop.permute.xlu0 %1839 }
 0x502   :  { %vm1883_vm9 = vcmp.lt.s32.totalorder %v3731_v4, %v4785_v26 }
 0x505   :  { %v4791_v40 = vpop.xlane.xlu0 %1482 }
 0x50a   :  { %v4757_v43 = vpop.xlane.xlu1 %1479 }
 0x50e   :  { %v1843_v46 = vpop.permute.xlu1 %1842 }
 0x50f   :  { %vm1884_vm0 = vcmp.lt.s32.totalorder %v3731_v4, %v1843_v46  ;;  %v4799_v46 = vpop.permute.xlu0 %1845 }
 0x510   :  { %v1917_v61 = vsel %vm1884_vm0, %v4616_v20, 0.0  ;;  %v1894_v20 = vsel %vm1861_vm8, %v4031_v47, 0.0  ;;  %v1898_v47 = vsel %vm1865_vm10, %v4122_v49, 0.0  ;;  %v1961_v49 = vsel %vm1393_vm14, %v1902_v50, 0.0  ;;  %v5345_v50 = vld [vmem:[#allocation25_spill] sm:$0xff] }
 0x511   :  { %v2006_v38 = vsel %vm1393_vm14, %v1917_v61, 0.0  ;;  %v1937_v0 = vsel %vm1393_vm14, %v1894_v20, 0.0  ;;  %v1949_v14 = vsel %vm1393_vm14, %v1898_v47, 0.0  ;;  %v1910_v20 = vsel %vm1877_vm5, %v4354_v32, 0.0 }
 0x512   :  { %2007 = vadd.xlane.f32.xlu0 %v2006_v38  ;;  %v1908_v38 = vsel %vm1875_vm2, %v4318_v60, 0.0  ;;  %vm1879_vm0 = vcmp.lt.s32.totalorder %v3731_v4, %v4764_v44  ;;  %v1985_v44 = vsel %vm1393_vm14, %v1910_v20, 0.0  ;;  %vm1881_vm8 = vcmp.lt.s32.totalorder %v3731_v4, %v4771_v35 }
 0x513   :  { %v4804_v61 = vpop.xlane.xlu0 %1488  ;;  %v1979_v60 = vsel %vm1393_vm14, %v1908_v38, 0.0  ;;  %v2025_v47 = vsub.f32 %v4360_v41, %v4456_v53  ;;  %vm1885_vm10 = vcmp.lt.s32.totalorder %v3731_v4, %v4799_v46 }
 0x517   :  { %v4812_v59 = vpop.permute.xlu0 %1851 }
 0x518   :  { %vm1887_vm11 = vcmp.lt.s32.totalorder %v3731_v4, %v4812_v59 }
 0x520   :  { %1926 = vadd.xlane.f32.xlu1 %v1925_v23 }
 0x524   :  { %1938 = vadd.xlane.f32.xlu1 %v1937_v0 }
 0x528   :  { %1944 = vadd.xlane.f32.xlu1 %v1943_v48  ;;  %v1912_v48 = vsel %vm1879_vm0, %v4392_v55, 0.0 }
 0x52c   :  { %1950 = vadd.xlane.f32.xlu1 %v1949_v14 }
 0x530   :  { %1956 = vadd.xlane.f32.xlu1 %v1955_v5  ;;  %v2092_v5 = vsel %vm2087_vm3, %v4456_v53, %v2025_v47 }
 0x534   :  { %1962 = vadd.xlane.f32.xlu1 %v1961_v49  ;;  %v5346_v49 = vld [vmem:[#allocation6_spill] sm:$0xff] }
 0x535   :  { %v2027_v6 = vsub.f32 %v5346_v49, %v5345_v50 }
 0x537   :  { %v2094_v38 = vsel %vm2087_vm3, %v5345_v50, %v2027_v6 }
 0x538   :  { %1968 = vadd.xlane.f32.xlu1 %v1967_v12  ;;  %v5347_v12 = vld [vmem:[#allocation54_spill] sm:$0xff] }
 0x53c   :  { %1974 = vadd.xlane.f32.xlu1 %v1973_v63  ;;  %v1916_v63 = vsel %vm1883_vm9, %v5348_v24, 0.0  ;;  %v5362_v24 = vld [vmem:[#allocation71_spill] sm:$0xff] }
 0x53d   :  { %v2003_v46 = vsel %vm1393_vm14, %v1916_v63, 0.0 }
 0x53e   :  { %v1924_v39 = vpop.xlane.xlu0 %1923 }
 0x53f   :  { %v2054_v13 = vsub.f32 %v4555_v31, %v1924_v39  ;;  %v2122_v34 = vsel %vm2121_vm4, %v2088_v37, %v1924_v39  ;;  %v4824_v23 = vpop.xlane.xlu1 %1485  ;;  %v2024_v31 = vsub.f32 %v4291_v56, %v4542_v36  ;;  %v5349_v37 = vld [vmem:[#allocation27_spill] sm:$0xff] }
 0x540   :  { %1980 = vadd.xlane.f32.xlu1 %v1979_v60  ;;  %v2029_v39 = vsub.f32 %v5350_v19, %v5349_v37  ;;  %v5363_v19 = vld [vmem:[#allocation35_spill] sm:$0xff] }
 0x541   :  { %v2156_v18 = vsel %vm2155_vm6, %v2122_v34, %v2054_v13  ;;  %v5351_v34 = vld [vmem:[#allocation56_spill] sm:$0xff] }
 0x542   :  { %2190 = vst.msk [vmem:[%s5220_s8] sm:$0xff] %vm2189_vm7, %v2156_v18  ;;  %v1930_v2 = vpop.xlane.xlu0 %1929  ;;  %v5352_v18 = vld [vmem:[#allocation51_spill] sm:$0xff] }
 0x543   :  { %v2056_v32 = vsub.f32 %v4568_v15, %v1930_v2  ;;  %v2124_v0 = vsel %vm2121_vm4, %v2090_v54, %v1930_v2  ;;  %v1849_v21 = vpop.permute.xlu1 %1848  ;;  %v2091_v15 = vsel %vm2087_vm3, %v4542_v36, %v2024_v31  ;;  %v1914_v36 = vsel %vm1881_vm8, %v4442_v17, 0.0 }
 0x544   :  { %vm1886_vm1 = vcmp.lt.s32.totalorder %v3731_v4, %v1849_v21  ;;  %1986 = vadd.xlane.f32.xlu1 %v1985_v44  ;;  %v1997_v26 = vsel %vm1393_vm14, %v1914_v36, 0.0  ;;  %v1918_v54 = vsel %vm1885_vm10, %v5352_v18, 0.0  ;;  %v2096_v2 = vsel %vm2087_vm3, %v5349_v37, %v2029_v39  ;;  %v5364_v39 = vld [vmem:[#allocation28_spill] sm:$0xff] }
 0x545   :  { %v2158_v56 = vsel %vm2155_vm6, %v2124_v0, %v2056_v32  ;;  %v1919_v22 = vsel %vm1886_vm1, %v4663_v62, 0.0  ;;  %v1991_v62 = vsel %vm1393_vm14, %v1912_v48, 0.0  ;;  %v5353_v32 = vld [vmem:[#allocation29_spill] sm:$0xff]  ;;  %v5355_v48 = vld [vmem:[#allocation66_spill] sm:$0xff]  ;;  %v2009_v59 = vsel %vm1393_vm14, %v1918_v54, 0.0 }
 0x546   :  { %2192 = vst.msk [vmem:[%s5220_s8 + $0x10] sm:$0xff] %vm2189_vm7, %v2158_v56  ;;  %v1933_v55 = vpop.xlane.xlu0 %1932  ;;  %v2012_v14 = vsel %vm1393_vm14, %v1919_v22, 0.0  ;;  %v5354_v0 = vld [vmem:[#allocation17_spill] sm:$0xff] }
 0x547   :  { %v2057_v35 = vsub.f32 %v4646_v9, %v1933_v55  ;;  %v2125_v29 = vsel %vm2121_vm4, %v2091_v15, %v1933_v55  ;;  %2013 = vadd.xlane.f32.xlu0 %v2012_v14  ;;  %v2031_v21 = vsub.f32 %v5354_v0, %v5353_v32  ;;  %v5356_v15 = vld [vmem:[#allocation63_spill] sm:$0xff] }
 0x548   :  { %1992 = vadd.xlane.f32.xlu1 %v1991_v62  ;;  %v1920_v47 = vsel %vm1887_vm11, %v5356_v15, 0.0 }
 0x549   :  { %v2159_v41 = vsel %vm2155_vm6, %v2125_v29, %v2057_v35  ;;  %v2098_v14 = vsel %vm2087_vm3, %v5353_v32, %v2031_v21  ;;  %v5357_v35 = vld [vmem:[#allocation31_spill] sm:$0xff]  ;;  %v2015_v49 = vsel %vm1393_vm14, %v1920_v47, 0.0 }
 0x54a   :  { %2193 = vst.msk [vmem:[%s5220_s8 + $0x18] sm:$0xff] %vm2189_vm7, %v2159_v41  ;;  %v1936_v9 = vpop.xlane.xlu0 %1935  ;;  %v5358_v29 = vld [vmem:[#allocation23_spill] sm:$0xff]  ;;  %v5359_v41 = vld [vmem:[#allocation68_spill] sm:$0xff] }
 0x54b   :  { %v2058_v17 = vsub.f32 %v5347_v12, %v1936_v9  ;;  %v2126_v16 = vsel %vm2121_vm4, %v2092_v5, %v1936_v9  ;;  %v2033_v62 = vsub.f32 %v5358_v29, %v5357_v35  ;;  %v5360_v12 = vld [vmem:[#allocation33_spill] sm:$0xff]  ;;  %v5370_v29 = vld [vmem:[#allocation42_spill] sm:$0xff] }
 0x54c   :  { %1998 = vadd.xlane.f32.xlu1 %v1997_v26 }
 0x54d   :  { %v2160_v53 = vsel %vm2155_vm6, %v2126_v16, %v2058_v17  ;;  %v2100_v9 = vsel %vm2087_vm3, %v5357_v35, %v2033_v62  ;;  %v5361_v17 = vld [vmem:[#allocation26_spill] sm:$0xff] }
 0x54e   :  { %2194 = vst.msk [vmem:[%s5220_s8 + $0x20] sm:$0xff] %vm2189_vm7, %v2160_v53  ;;  %v1942_v13 = vpop.xlane.xlu0 %1941  ;;  %v2035_v16 = vsub.f32 %v5361_v17, %v5360_v12  ;;  %v5371_v62 = vld [vmem:[#allocation34_spill] sm:$0xff] }
 0x54f   :  { %v2060_v60 = vsub.f32 %v5351_v34, %v1942_v13  ;;  %v2128_v20 = vsel %vm2121_vm4, %v2094_v38, %v1942_v13  ;;  %v2037_v13 = vsub.f32 %v5364_v39, %v5363_v19 }
 0x550   :  { %2004 = vadd.xlane.f32.xlu1 %v2003_v46  ;;  %v2102_v37 = vsel %vm2087_vm3, %v5360_v12, %v2035_v16 }
 0x551   :  { %v2162_v31 = vsel %vm2155_vm6, %v2128_v20, %v2060_v60  ;;  %v5365_v60 = vld [vmem:[#allocation73_spill] sm:$0xff]  ;;  %v2104_v54 = vsel %vm2087_vm3, %v5363_v19, %v2037_v13 }
 0x552   :  { %2196 = vst.msk [vmem:[%s5220_s8 + $0x30] sm:$0xff] %vm2189_vm7, %v2162_v31  ;;  %v1948_v44 = vpop.xlane.xlu0 %1947  ;;  %v5366_v31 = vld [vmem:[#allocation38_spill] sm:$0xff] }
 0x553   :  { %v2062_v56 = vsub.f32 %v5355_v48, %v1948_v44  ;;  %v2130_v22 = vsel %vm2121_vm4, %v2096_v2, %v1948_v44  ;;  %v5367_v2 = vld [vmem:[#allocation30_spill] sm:$0xff] }
 0x554   :  { %2010 = vadd.xlane.f32.xlu1 %v2009_v59  ;;  %v2039_v32 = vsub.f32 %v5367_v2, %v5366_v31  ;;  %v5369_v59 = vld [vmem:[#allocation32_spill] sm:$0xff]  ;;  %v5376_v2 = vld [vmem:[#allocation47_spill] sm:$0xff] }
 0x555   :  { %v2164_v55 = vsel %vm2155_vm6, %v2130_v22, %v2062_v56  ;;  %v5368_v22 = vld [vmem:[#allocation40_spill] sm:$0xff] }
 0x556   :  { %2198 = vst.msk [vmem:[%s5220_s8 + $0x40] sm:$0xff] %vm2189_vm7, %v2164_v55  ;;  %v1954_v36 = vpop.xlane.xlu0 %1953  ;;  %v2106_v56 = vsel %vm2087_vm3, %v5366_v31, %v2039_v32  ;;  %v2041_v15 = vsub.f32 %v5369_v59, %v5368_v22  ;;  %v5377_v32 = vld [vmem:[#allocation41_spill] sm:$0xff]  ;;  %v5380_v59 = vld [vmem:[#allocation50_spill] sm:$0xff] }
 0x557   :  { %v2064_v5 = vsub.f32 %v5359_v41, %v1954_v36  ;;  %v2132_v50 = vsel %vm2121_vm4, %v2098_v14, %v1954_v36  ;;  %v2043_v36 = vsub.f32 %v5371_v62, %v5370_v29 }
 0x558   :  { %2016 = vadd.xlane.f32.xlu1 %v2015_v49  ;;  %v2108_v35 = vsel %vm2087_vm3, %v5368_v22, %v2041_v15  ;;  %v5381_v15 = vld [vmem:[#allocation7_spill] sm:$0xff] }
 0x559   :  { %v2166_v6 = vsel %vm2155_vm6, %v2132_v50, %v2064_v5  ;;  %v2110_v49 = vsel %vm2087_vm3, %v5370_v29, %v2043_v36  ;;  %v5383_v36 = vld [vmem:[#allocation52_spill] sm:$0xff] }
 0x55a   :  { %2200 = vst.msk [vmem:[%s5220_s8 + $0x50] sm:$0xff] %vm2189_vm7, %v2166_v6  ;;  %v1960_v26 = vpop.xlane.xlu0 %1959  ;;  %v5372_v6 = vld [vmem:[#allocation44_spill] sm:$0xff] }
 0x55b   :  { %v2066_v63 = vsub.f32 %v5362_v24, %v1960_v26  ;;  %v2134_v53 = vsel %vm2121_vm4, %v2100_v9, %v1960_v26  ;;  %v5373_v9 = vld [vmem:[#allocation37_spill] sm:$0xff] }
 0x55c   :  { %v2045_v12 = vsub.f32 %v5373_v9, %v5372_v6 }
 0x55d   :  { %v2168_v38 = vsel %vm2155_vm6, %v2134_v53, %v2066_v63  ;;  %v5374_v63 = vld [vmem:[#allocation46_spill] sm:$0xff]  ;;  %v5375_v53 = vld [vmem:[#allocation39_spill] sm:$0xff] }
 0x55e   :  { %2202 = vst.msk [vmem:[%s5220_s8 + $0x60] sm:$0xff] %vm2189_vm7, %v2168_v38  ;;  %v1966_v34 = vpop.xlane.xlu0 %1965  ;;  %v2112_v24 = vsel %vm2087_vm3, %v5372_v6, %v2045_v12  ;;  %v2047_v38 = vsub.f32 %v5375_v53, %v5374_v63 }
 0x55f   :  { %v2068_v20 = vsub.f32 %v5365_v60, %v1966_v34  ;;  %v2136_v46 = vsel %vm2121_vm4, %v2102_v37, %v1966_v34 }
 0x560   :  { %v2114_v34 = vsel %vm2087_vm3, %v5374_v63, %v2047_v38 }
 0x561   :  { %v2170_v18 = vsel %vm2155_vm6, %v2136_v46, %v2068_v20 }
 0x562   :  { %2204 = vst.msk [vmem:[%s5220_s8 + $0x70] sm:$0xff] %vm2189_vm7, %v2170_v18  ;;  %v1972_v0 = vpop.xlane.xlu0 %1971 }
 0x563   :  { %v2070_v21 = vsub.f32 %v4656_v10, %v1972_v0  ;;  %v2138_v44 = vsel %vm2121_vm4, %v2104_v54, %v1972_v0 }
 0x565   :  { %v2172_v48 = vsel %vm2155_vm6, %v2138_v44, %v2070_v21 }
 0x566   :  { %2206 = vst.msk [vmem:[%s5220_s8 + $0x80] sm:$0xff] %vm2189_vm7, %v2172_v48  ;;  %v1978_v47 = vpop.xlane.xlu0 %1977 }
 0x567   :  { %v2072_v55 = vsub.f32 %v4668_v51, %v1978_v47  ;;  %v2140_v10 = vsel %vm2121_vm4, %v2106_v56, %v1978_v47  ;;  %v5379_v56 = vld [vmem:[#allocation10_spill] sm:$0xff]  ;;  %v2026_v47 = vsub.f32 %v5381_v15, %v5380_v59 }
 0x568   :  { %v5396_v15 = vld [vmem:[#allocation14_spill] sm:$0xff] }
 0x569   :  { %v2174_v14 = vsel %vm2155_vm6, %v2140_v10, %v2072_v55  ;;  %v2093_v62 = vsel %vm2087_vm3, %v5380_v59, %v2026_v47  ;;  %v5395_v59 = vld [vmem:[#allocation59_spill] sm:$0xff] }
 0x56a   :  { %2208 = vst.msk [vmem:[%s5220_s8 + $0x90] sm:$0xff] %vm2189_vm7, %v2174_v14  ;;  %v1984_v41 = vpop.xlane.xlu0 %1983  ;;  %v2038_v47 = vsub.f32 %v5396_v15, %v5395_v59 }
 0x56b   :  { %v2074_v5 = vsub.f32 %v4679_v45, %v1984_v41  ;;  %v2142_v51 = vsel %vm2121_vm4, %v2108_v35, %v1984_v41  ;;  %v5384_v41 = vld [vmem:[#allocation11_spill] sm:$0xff] }
 0x56d   :  { %v2176_v50 = vsel %vm2155_vm6, %v2142_v51, %v2074_v5  ;;  %v2028_v5 = vsub.f32 %v5384_v41, %v5383_v36 }
 0x56e   :  { %2210 = vst.msk [vmem:[%s5220_s8 + $0xa0] sm:$0xff] %vm2189_vm7, %v2176_v50  ;;  %v1990_v17 = vpop.xlane.xlu0 %1989  ;;  %v5385_v50 = vld [vmem:[#allocation72_spill] sm:$0xff] }
 0x56f   :  { %v2076_v16 = vsub.f32 %v4694_v42, %v1990_v17  ;;  %v2144_v45 = vsel %vm2121_vm4, %v2110_v49, %v1990_v17  ;;  %v2095_v12 = vsel %vm2087_vm3, %v5383_v36, %v2028_v5  ;;  %v5386_v17 = vld [vmem:[#allocation53_spill] sm:$0xff] }
 0x571   :  { %v2178_v26 = vsel %vm2155_vm6, %v2144_v45, %v2076_v16  ;;  %v5387_v16 = vld [vmem:[#allocation9_spill] sm:$0xff] }
 0x572   :  { %2212 = vst.msk [vmem:[%s5220_s8 + $0xb0] sm:$0xff] %vm2189_vm7, %v2178_v26  ;;  %v1996_v37 = vpop.xlane.xlu0 %1995  ;;  %v2030_v45 = vsub.f32 %v5387_v16, %v5386_v17  ;;  %v5402_v16 = vld [vmem:[#allocation43_spill] sm:$0xff] }
 0x573   :  { %v2078_v19 = vsub.f32 %v4707_v27, %v1996_v37  ;;  %v2146_v42 = vsel %vm2121_vm4, %v2112_v24, %v1996_v37  ;;  %v5388_v24 = vld [vmem:[#allocation74_spill] sm:$0xff] }
 0x574   :  { %v4995_v39 = vpop.xlane.xlu1 %1491  ;;  %v2097_v37 = vsel %vm2087_vm3, %v5386_v17, %v2030_v45  ;;  %v5401_v17 = vld [vmem:[#allocation48_spill] sm:$0xff] }
 0x575   :  { %v2180_v13 = vsel %vm2155_vm6, %v2146_v42, %v2078_v19  ;;  %v5389_v19 = vld [vmem:[#allocation55_spill] sm:$0xff]  ;;  %v5390_v42 = vld [vmem:[#allocation5_spill] sm:$0xff]  ;;  %v2051_v45 = vsub.f32 %v5402_v16, %v5401_v17 }
 0x576   :  { %2214 = vst.msk [vmem:[%s5220_s8 + $0xc0] sm:$0xff] %vm2189_vm7, %v2180_v13  ;;  %v2002_v60 = vpop.xlane.xlu0 %2001  ;;  %v2032_v13 = vsub.f32 %v5390_v42, %v5389_v19 }
 0x577   :  { %v2080_v20 = vsub.f32 %v4723_v30, %v2002_v60  ;;  %v2148_v46 = vsel %vm2121_vm4, %v2114_v34, %v2002_v60  ;;  %v2049_v30 = vsub.f32 %v5377_v32, %v5376_v2  ;;  %v2118_v42 = vsel %vm2087_vm3, %v5401_v17, %v2051_v45 }
 0x578   :  { %v1855_v27 = vpop.permute.xlu1 %1854 }
 0x579   :  { %v2182_v18 = vsel %vm2155_vm6, %v2148_v46, %v2080_v20  ;;  %vm1888_vm12 = vcmp.lt.s32.totalorder %v3731_v4, %v1855_v27  ;;  %v2116_v0 = vsel %vm2087_vm3, %v5376_v2, %v2049_v30  ;;  %v2099_v27 = vsel %vm2087_vm3, %v5389_v19, %v2032_v13 }
 0x57a   :  { %2216 = vst.msk [vmem:[%s5220_s8 + $0xd0] sm:$0xff] %vm2189_vm7, %v2182_v18  ;;  %v1921_v54 = vsel %vm1888_vm12, %v4736_v25, 0.0  ;;  %v5378_v25 = vld [vmem:[#allocation24_spill] sm:$0xff]  ;;  %v5391_v18 = vld [vmem:[#allocation57_spill] sm:$0xff] }
 0x57b   :  { %v2018_v31 = vsel %vm1393_vm14, %v1921_v54, 0.0  ;;  %v2022_v22 = vsub.f32 %v5379_v56, %v5378_v25  ;;  %v5392_v54 = vld [vmem:[#allocation8_spill] sm:$0xff] }
 0x57c   :  { %2019 = vadd.xlane.f32.xlu0 %v2018_v31  ;;  %v2034_v31 = vsub.f32 %v5392_v54, %v5391_v18 }
 0x57d   :  { %v2089_v55 = vsel %vm2087_vm3, %v5378_v25, %v2022_v22 }
 0x59b   :  { %v2008_v21 = vpop.xlane.xlu0 %2007 }
 0x59c   :  { %v2082_v44 = vsub.f32 %v4757_v43, %v2008_v21  ;;  %v2150_v4 = vsel %vm2121_vm4, %v2116_v0, %v2008_v21  ;;  %v5382_v43 = vld [vmem:[#allocation70_spill] sm:$0xff]  ;;  %v2101_v0 = vsel %vm2087_vm3, %v5391_v18, %v2034_v31 }
 0x59d   :  { %v5393_v21 = vld [vmem:[#allocation58_spill] sm:$0xff] }
 0x59e   :  { %v2184_v48 = vsel %vm2155_vm6, %v2150_v4, %v2082_v44  ;;  %v5394_v44 = vld [vmem:[#allocation13_spill] sm:$0xff] }
 0x59f   :  { %2218 = vst.msk [vmem:[%s5220_s8 + $0xe0] sm:$0xff] %vm2189_vm7, %v2184_v48  ;;  %v2036_v4 = vsub.f32 %v5394_v44, %v5393_v21 }
 0x5a1   :  { %v2103_v22 = vsel %vm2087_vm3, %v5393_v21, %v2036_v4 }
 0x5a9   :  { %v1927_v10 = vpop.xlane.xlu1 %1926 }
 0x5aa   :  { %v2055_v14 = vsub.f32 %v5382_v43, %v1927_v10  ;;  %v2123_v35 = vsel %vm2121_vm4, %v2089_v55, %v1927_v10 }
 0x5ac   :  { %v2157_v29 = vsel %vm2155_vm6, %v2123_v35, %v2055_v14  ;;  %v2105_v14 = vsel %vm2087_vm3, %v5395_v59, %v2038_v47  ;;  %v5397_v35 = vld [vmem:[#allocation60_spill] sm:$0xff] }
 0x5ad   :  { %2191 = vst.msk [vmem:[%s5220_s8 + $0x8] sm:$0xff] %vm2189_vm7, %v2157_v29  ;;  %v1939_v51 = vpop.xlane.xlu1 %1938  ;;  %v5398_v29 = vld [vmem:[#allocation15_spill] sm:$0xff] }
 0x5ae   :  { %v2059_v49 = vsub.f32 %v5385_v50, %v1939_v51  ;;  %v2127_v6 = vsel %vm2121_vm4, %v2093_v62, %v1939_v51  ;;  %v2040_v62 = vsub.f32 %v5398_v29, %v5397_v35  ;;  %v5399_v50 = vld [vmem:[#allocation61_spill] sm:$0xff] }
 0x5b0   :  { %v2161_v9 = vsel %vm2155_vm6, %v2127_v6, %v2059_v49  ;;  %v2107_v51 = vsel %vm2087_vm3, %v5397_v35, %v2040_v62  ;;  %v5400_v49 = vld [vmem:[#allocation16_spill] sm:$0xff] }
 0x5b1   :  { %2195 = vst.msk [vmem:[%s5220_s8 + $0x28] sm:$0xff] %vm2189_vm7, %v2161_v9  ;;  %v1945_v26 = vpop.xlane.xlu1 %1944  ;;  %v2042_v6 = vsub.f32 %v5400_v49, %v5399_v50 }
 0x5b2   :  { %v2061_v63 = vsub.f32 %v5388_v24, %v1945_v26  ;;  %v2129_v53 = vsel %vm2121_vm4, %v2095_v12, %v1945_v26 }
 0x5b3   :  { %v2109_v24 = vsel %vm2087_vm3, %v5399_v50, %v2042_v6 }
 0x5b4   :  { %v2163_v38 = vsel %vm2155_vm6, %v2129_v53, %v2061_v63  ;;  %v5403_v63 = vld [vmem:[#allocation62_spill] sm:$0xff] }
 0x5b5   :  { %2197 = vst.msk [vmem:[%s5220_s8 + $0x38] sm:$0xff] %vm2189_vm7, %v2163_v38  ;;  %v1951_v34 = vpop.xlane.xlu1 %1950  ;;  %v5404_v53 = vld [vmem:[#allocation18_spill] sm:$0xff] }
 0x5b6   :  { %v2063_v60 = vsub.f32 %v4686_v33, %v1951_v34  ;;  %v2131_v20 = vsel %vm2121_vm4, %v2097_v37, %v1951_v34  ;;  %v2044_v38 = vsub.f32 %v5404_v53, %v5403_v63 }
 0x5b8   :  { %v2165_v46 = vsel %vm2155_vm6, %v2131_v20, %v2063_v60  ;;  %v2111_v60 = vsel %vm2087_vm3, %v5403_v63, %v2044_v38  ;;  %v5405_v20 = vld [vmem:[#allocation64_spill] sm:$0xff] }
 0x5b9   :  { %2199 = vst.msk [vmem:[%s5220_s8 + $0x48] sm:$0xff] %vm2189_vm7, %v2165_v46  ;;  %v1957_v2 = vpop.xlane.xlu1 %1956  ;;  %v5406_v46 = vld [vmem:[#allocation19_spill] sm:$0xff] }
 0x5ba   :  { %v2065_v32 = vsub.f32 %v4702_v11, %v1957_v2  ;;  %v2133_v33 = vsel %vm2121_vm4, %v2099_v27, %v1957_v2  ;;  %v2046_v27 = vsub.f32 %v5406_v46, %v5405_v20 }
 0x5bc   :  { %v2167_v30 = vsel %vm2155_vm6, %v2133_v33, %v2065_v32 }
 0x5bd   :  { %2201 = vst.msk [vmem:[%s5220_s8 + $0x58] sm:$0xff] %vm2189_vm7, %v2167_v30  ;;  %v1963_v48 = vpop.xlane.xlu1 %1962  ;;  %v2113_v30 = vsel %vm2087_vm3, %v5405_v20, %v2046_v27 }
 0x5be   :  { %v2067_v25 = vsub.f32 %v4716_v52, %v1963_v48  ;;  %v2135_v11 = vsel %vm2121_vm4, %v2101_v0, %v1963_v48  ;;  %v5408_v0 = vld [vmem:[#allocation20_spill] sm:$0xff] }
 0x5c0   :  { %v2169_v56 = vsel %vm2155_vm6, %v2135_v11, %v2067_v25  ;;  %v5409_v11 = vld [vmem:[#allocation67_spill] sm:$0xff] }
 0x5c1   :  { %2203 = vst.msk [vmem:[%s5220_s8 + $0x68] sm:$0xff] %vm2189_vm7, %v2169_v56  ;;  %v1969_v55 = vpop.xlane.xlu1 %1968  ;;  %v5410_v56 = vld [vmem:[#allocation21_spill] sm:$0xff] }
 0x5c2   :  { %v2069_v10 = vsub.f32 %v4734_v28, %v1969_v55  ;;  %v2137_v52 = vsel %vm2121_vm4, %v2103_v22, %v1969_v55  ;;  %v2050_v22 = vsub.f32 %v5410_v56, %v5409_v11 }
 0x5c4   :  { %v2171_v43 = vsel %vm2155_vm6, %v2137_v52, %v2069_v10  ;;  %v2117_v55 = vsel %vm2087_vm3, %v5409_v11, %v2050_v22  ;;  %v5411_v10 = vld [vmem:[#allocation69_spill] sm:$0xff]  ;;  %v5412_v52 = vld [vmem:[#allocation22_spill] sm:$0xff] }
 0x5c5   :  { %2205 = vst.msk [vmem:[%s5220_s8 + $0x78] sm:$0xff] %vm2189_vm7, %v2171_v43  ;;  %v1975_v36 = vpop.xlane.xlu1 %1974  ;;  %v2052_v43 = vsub.f32 %v5412_v52, %v5411_v10 }
 0x5c6   :  { %v2071_v41 = vsub.f32 %v4746_v3, %v1975_v36  ;;  %v2139_v28 = vsel %vm2121_vm4, %v2105_v14, %v1975_v36 }
 0x5c7   :  { %v2119_v62 = vsel %vm2087_vm3, %v5411_v10, %v2052_v43 }
 0x5c8   :  { %v2173_v5 = vsel %vm2155_vm6, %v2139_v28, %v2071_v41 }
 0x5c9   :  { %2207 = vst.msk [vmem:[%s5220_s8 + $0x88] sm:$0xff] %vm2189_vm7, %v2173_v5  ;;  %v1981_v9 = vpop.xlane.xlu1 %1980 }
 0x5ca   :  { %v2073_v12 = vsub.f32 %v4748_v58, %v1981_v9  ;;  %v2141_v3 = vsel %vm2121_vm4, %v2107_v51, %v1981_v9  ;;  %v5414_v51 = vld [vmem:[#allocation45_spill] sm:$0xff] }
 0x5cc   :  { %v2175_v26 = vsel %vm2155_vm6, %v2141_v3, %v2073_v12 }
 0x5cd   :  { %2209 = vst.msk [vmem:[%s5220_s8 + $0x98] sm:$0xff] %vm2189_vm7, %v2175_v26  ;;  %v1987_v37 = vpop.xlane.xlu1 %1986 }
 0x5ce   :  { %v2075_v58 = vsub.f32 %v4753_v7, %v1987_v37  ;;  %v2143_v19 = vsel %vm2121_vm4, %v2109_v24, %v1987_v37 }
 0x5d0   :  { %v2177_v13 = vsel %vm2155_vm6, %v2143_v19, %v2075_v58  ;;  %v2014_v34 = vpop.xlane.xlu0 %2013 }
 0x5d1   :  { %2211 = vst.msk [vmem:[%s5220_s8 + $0xa8] sm:$0xff] %vm2189_vm7, %v2177_v13  ;;  %v2084_v7 = vsub.f32 %v4824_v23, %v2014_v34  ;;  %v2152_v18 = vsel %vm2121_vm4, %v2118_v42, %v2014_v34  ;;  %v1993_v54 = vpop.xlane.xlu1 %1992  ;;  %v5407_v23 = vld [vmem:[#allocation65_spill] sm:$0xff] }
 0x5d2   :  { %v2077_v31 = vsub.f32 %v4759_v1, %v1993_v54  ;;  %v2145_v2 = vsel %vm2121_vm4, %v2111_v60, %v1993_v54  ;;  %v2048_v21 = vsub.f32 %v5408_v0, %v5407_v23 }
 0x5d3   :  { %v2186_v32 = vsel %vm2155_vm6, %v2152_v18, %v2084_v7 }
 0x5d4   :  { %2220 = vst.msk [vmem:[%s5220_s8 + $0xf0] sm:$0xff] %vm2189_vm7, %v2186_v32  ;;  %v2179_v33 = vsel %vm2155_vm6, %v2145_v2, %v2077_v31  ;;  %v2115_v25 = vsel %vm2087_vm3, %v5407_v23, %v2048_v21 }
 0x5d5   :  { %2213 = vst.msk [vmem:[%s5220_s8 + $0xb8] sm:$0xff] %vm2189_vm7, %v2179_v33  ;;  %v1999_v1 = vpop.xlane.xlu1 %1998 }
 0x5d6   :  { %v2079_v44 = vsub.f32 %v4766_v8, %v1999_v1  ;;  %v2147_v4 = vsel %vm2121_vm4, %v2113_v30, %v1999_v1 }
 0x5d8   :  { %v2181_v48 = vsel %vm2155_vm6, %v2147_v4, %v2079_v44 }
 0x5d9   :  { %2215 = vst.msk [vmem:[%s5220_s8 + $0xc8] sm:$0xff] %vm2189_vm7, %v2181_v48  ;;  %v2005_v59 = vpop.xlane.xlu1 %2004 }
 0x5da   :  { %v2081_v15 = vsub.f32 %v4777_v57, %v2005_v59  ;;  %v2149_v8 = vsel %vm2121_vm4, %v2115_v25, %v2005_v59 }
 0x5dc   :  { %v2183_v47 = vsel %vm2155_vm6, %v2149_v8, %v2081_v15 }
 0x5dd   :  { %2217 = vst.msk [vmem:[%s5220_s8 + $0xd8] sm:$0xff] %vm2189_vm7, %v2183_v47  ;;  %v2011_v14 = vpop.xlane.xlu1 %2010 }
 0x5de   :  { %v2083_v35 = vsub.f32 %v4791_v40, %v2011_v14  ;;  %v2151_v57 = vsel %vm2121_vm4, %v2117_v55, %v2011_v14  ;;  %v5413_v40 = vld [vmem:[#allocation49_spill] sm:$0xff] }
 0x5df   :  { %v2053_v50 = vsub.f32 %v5414_v51, %v5413_v40 }
 0x5e0   :  { %v2185_v29 = vsel %vm2155_vm6, %v2151_v57, %v2083_v35 }
 0x5e1   :  { %2219 = vst.msk [vmem:[%s5220_s8 + $0xe8] sm:$0xff] %vm2189_vm7, %v2185_v29  ;;  %v2017_v36 = vpop.xlane.xlu1 %2016  ;;  %v2120_v49 = vsel %vm2087_vm3, %v5413_v40, %v2053_v50 }
 0x5e2   :  { %v2085_v41 = vsub.f32 %v4804_v61, %v2017_v36  ;;  %v2153_v28 = vsel %vm2121_vm4, %v2119_v62, %v2017_v36 }
 0x5e4   :  { %v2187_v5 = vsel %vm2155_vm6, %v2153_v28, %v2085_v41 }
 0x5e5   :  { %2221 = vst.msk [vmem:[%s5220_s8 + $0xf8] sm:$0xff] %vm2189_vm7, %v2187_v5 }
 0x605   :  { %v2020_v6 = vpop.xlane.xlu0 %2019 }
 0x606   :  { %v2086_v9 = vsub.f32 %v4995_v39, %v2020_v6  ;;  %v2154_v61 = vsel %vm2121_vm4, %v2120_v49, %v2020_v6 }
 0x608   :  { %v2188_v12 = vsel %vm2155_vm6, %v2154_v61, %v2086_v9 }
 0x609   :  { %2222 = vst.msk [vmem:[%s5220_s8 + $0x100] sm:$0xff] %vm2189_vm7, %v2188_v12 }
 0x60a   :  { %2227 = vsyncpa [#allocation3], 1 }

</bundles_post_ra>
